<compile_context>
chip_gen: v7x
topology: tpu7x:2x2x1
jax: 0.10.0
libtpu: 0.0.40
codegen_flags: <defaults>
</compile_context>

<pallas_src>
import jax
import jax.numpy as jnp
from jax import lax
from jax.experimental import pallas as pl
from jax.experimental.pallas import tpu as pltpu

_CONV_CFG = [(3, 32), (32, 64), (64, 128)]


def _layer_dims(in_hw):
    dims = []
    h = w = in_hw
    for cin, cout in _CONV_CFG:
        hp, wp = (h - 2) // 2, (w - 2) // 2
        assert hp >= 1 and wp >= 1, "input too small for the 3-layer conv stack"
        dims.append((h, w, cin, cout, hp, wp))
        h, w = hp, wp
    return dims, h, w


def _im2col3x3(x, hp, wp):
    """XLA-side im2col for the first conv layer (fixes the Cin=3 layout).

    (N, H, W, C) -> (N, 4*hp*wp, 9*C); row m = conv_row * (2*wp) + conv_col,
    lane k = (kh*3 + kw)*C + c.  Only conv rows/cols feeding the floor
    MaxPool2d(2) are materialized.
    """
    n, _, _, c = x.shape
    taps = [x[:, kh:kh + 2 * hp, kw:kw + 2 * wp, :]
            for kh in range(3) for kw in range(3)]
    p = jnp.concatenate(taps, axis=-1)              # (N, 2hp, 2wp, 9C)
    return p.reshape(n, 4 * hp * wp, 9 * c)


def _build_fused_cnn(in_hw, batch):
    dims, _, _ = _layer_dims(in_hw)
    (_, _, cin1, c1, hp1, wp1) = dims[0]
    (_, _, _, c2, hp2, wp2) = dims[1]
    (_, _, _, c3, hp3, wp3) = dims[2]
    feat_pos = hp3 * wp3                      # flattened spatial positions (4)
    feat_dim = feat_pos * c3                  # classifier input features (512)
    m1, k1 = 4 * hp1 * wp1, 9 * cin1          # layer-1 patch rows / K

    def _pool_row(cm, bias, rmax_ref, wp):
        # cm: (4*wp, C) f32 conv output for pooled row i: first 2*wp rows are
        # conv row 2i (cols 0..2wp-1), next 2*wp rows are conv row 2i+1.
        rmax_ref[...] = jnp.maximum(cm[:2 * wp, :], cm[2 * wp:, :])   # row-pair max
        pooled = jnp.maximum(rmax_ref[pl.ds(0, wp, stride=2), :],     # col-pair max
                             rmax_ref[pl.ds(1, wp, stride=2), :])
        # Per-channel bias + ReLU commute with the window max.
        return jnp.maximum(pooled + bias, 0.0)                        # (wp, C) f32

    def _row_patches(act_ref, w_in, i, wp):
        # (4*wp, 9*Cin) bf16 im2col operand for pooled output row i, built from
        # the flattened (H*W, Cin) f32 activation scratch with contiguous slices.
        rv = [act_ref[(2 * i + j) * w_in:(2 * i + j + 1) * w_in, :]
              for j in range(4)]                                      # 4 image rows
        taps = []
        for kh in range(3):
            for kw in range(3):
                blk = jnp.concatenate([rv[kh][kw:kw + 2 * wp, :],
                                       rv[kh + 1][kw:kw + 2 * wp, :]], axis=0)
                taps.append(blk.astype(jnp.bfloat16))
        return jnp.concatenate(taps, axis=-1)                         # (4wp, 9Cin)

    def kernel(p1_ref, w1_ref, b1_ref, w2_ref, b2_ref, w3_ref, b3_ref,
               fw1_ref, fb1_ref, fw2_ref, fb2_ref, o_ref,
               act1, act2, act3, rmax1, rmax2, rmax3):
        # ---- conv1 + ReLU + pool: K = 27, one MXU dot per pooled row (M = 60)
        for i in range(hp1):
            lhs = p1_ref[i * 4 * wp1:(i + 1) * 4 * wp1, :]
            cm = jnp.dot(lhs, w1_ref[...], preferred_element_type=jnp.float32)
            act1[i * wp1:(i + 1) * wp1, :] = _pool_row(cm, b1_ref[...], rmax1, wp1)
        # ---- conv2 + ReLU + pool: K = 288 (in-kernel im2col from VMEM scratch)
        for i in range(hp2):
            lhs = _row_patches(act1, wp1, i, wp2)
            cm = jnp.dot(lhs, w2_ref[...], preferred_element_type=jnp.float32)
            act2[i * wp2:(i + 1) * wp2, :] = _pool_row(cm, b2_ref[...], rmax2, wp2)
        # ---- conv3 + ReLU + pool: K = 576
        for i in range(hp3):
            lhs = _row_patches(act2, wp2, i, wp3)
            cm = jnp.dot(lhs, w3_ref[...], preferred_element_type=jnp.float32)
            act3[i * wp3:(i + 1) * wp3, :] = _pool_row(cm, b3_ref[...], rmax3, wp3)
        # ---- classifier head (fused): fc1 + ReLU, fc2 (width 1) + sigmoid
        feat = act3[...].astype(jnp.bfloat16)                         # (4, 128)
        feat_row = jnp.concatenate(
            [feat[p:p + 1, :] for p in range(feat_pos)], axis=1)      # (1, 512)
        hid = jnp.dot(feat_row, fw1_ref[...], preferred_element_type=jnp.float32)
        hid = jnp.maximum(hid + fb1_ref[...], 0.0)                    # (1, 128) f32
        # fc2 output width is 1: VPU multiply + lane reduction (no masked MXU matmul).
        logit = jnp.sum(hid * fw2_ref[...], axis=-1, keepdims=True) + fb2_ref[...]
        o_ref[...] = 1.0 / (1.0 + jnp.exp(-logit))                    # sigmoid

    grid_spec = pltpu.PrefetchScalarGridSpec(
        num_scalar_prefetch=0,
        grid=(batch,),
        in_specs=[
            pl.BlockSpec((None, m1, k1), lambda i: (i, 0, 0)),   # layer-1 patches
            pl.BlockSpec((k1, c1), lambda i: (0, 0)),            # conv1 w (27,32)
            pl.BlockSpec((1, c1), lambda i: (0, 0)),             # conv1 b
            pl.BlockSpec((9 * c1, c2), lambda i: (0, 0)),        # conv2 w (288,64)
            pl.BlockSpec((1, c2), lambda i: (0, 0)),             # conv2 b
            pl.BlockSpec((9 * c2, c3), lambda i: (0, 0)),        # conv3 w (576,128)
            pl.BlockSpec((1, c3), lambda i: (0, 0)),             # conv3 b
            pl.BlockSpec((feat_dim, 128), lambda i: (0, 0)),     # fc1 w (512,128)
            pl.BlockSpec((1, 128), lambda i: (0, 0)),            # fc1 b
            pl.BlockSpec((1, 128), lambda i: (0, 0)),            # fc2 w (row vector)
            pl.BlockSpec((1, 1), lambda i: (0, 0)),              # fc2 b
        ],
        out_specs=pl.BlockSpec((None, 1, 1), lambda i: (i, 0, 0)),
        scratch_shapes=[
            pltpu.VMEM((hp1 * wp1, c1), jnp.float32),            # act1 (15*15, 32)
            pltpu.VMEM((hp2 * wp2, c2), jnp.float32),            # act2 (6*6, 64)
            pltpu.VMEM((hp3 * wp3, c3), jnp.float32),            # act3 (2*2, 128)
            pltpu.VMEM((2 * wp1, c1), jnp.float32),              # rmax1
            pltpu.VMEM((2 * wp2, c2), jnp.float32),              # rmax2
            pltpu.VMEM((2 * wp3, c3), jnp.float32),              # rmax3
        ],
    )
    return pl.pallas_call(
        kernel,
        out_shape=jax.ShapeDtypeStruct((batch, 1, 1), jnp.float32),
        grid_spec=grid_spec,
        compiler_params=pltpu.CompilerParams(
            dimension_semantics=("parallel",)),
    )


# ---------------------------------------------------------------------------
# Parameter init (mirrors CNNModel shapes) and one-time Pallas repack
# ---------------------------------------------------------------------------
def init_params(key, in_hw):
    dims, hf, wf = _layer_dims(in_hw)
    keys = jax.random.split(key, 10)
    params = {}
    ki = 0
    for li, (_, _, cin, cout, _, _) in enumerate(dims):
        scale = 1.0 / jnp.sqrt(jnp.float32(cin * 9))
        params[f"conv{li}_w"] = scale * jax.random.normal(
            keys[ki], (3, 3, cin, cout), jnp.float32); ki += 1
        params[f"conv{li}_b"] = scale * jax.random.normal(
            keys[ki], (cout,), jnp.float32); ki += 1
    feat = 128 * hf * wf                     # analytic (torch uses a dummy forward)
    s1 = 1.0 / jnp.sqrt(jnp.float32(feat))
    params["fc1_w"] = s1 * jax.random.normal(keys[ki], (feat, 128), jnp.float32); ki += 1
    params["fc1_b"] = s1 * jax.random.normal(keys[ki], (128,), jnp.float32); ki += 1
    s2 = 1.0 / jnp.sqrt(jnp.float32(128))
    params["fc2_w"] = s2 * jax.random.normal(keys[ki], (128, 1), jnp.float32); ki += 1
    params["fc2_b"] = s2 * jax.random.normal(keys[ki], (1,), jnp.float32); ki += 1
    return params


def prepare_pallas_params(params, in_hw):
    """Repack for the Pallas path: bf16 matmul weights, (9*Cin, Cout) conv
    weights (tap-major rows), fc1_w rows permuted so the kernel's NHWC flatten
    matches torch's NCHW flatten, fc2_w as a (1,128) row vector."""
    dims, hf, wf = _layer_dims(in_hw)
    p = {}
    for li, (_, _, cin, cout, _, _) in enumerate(dims):
        p[f"conv{li}_w"] = params[f"conv{li}_w"].reshape(9 * cin, cout).astype(jnp.bfloat16)
        p[f"conv{li}_b"] = params[f"conv{li}_b"].reshape(1, cout).astype(jnp.float32)
    c = 128
    hh, ww, cc = jnp.meshgrid(jnp.arange(hf), jnp.arange(wf), jnp.arange(c),
                              indexing="ij")
    chw_idx = (cc * hf + hh) * wf + ww        # torch (C,H,W)-flatten index per (h,w,c)
    p["fc1_w"] = params["fc1_w"][chw_idx.reshape(-1), :].astype(jnp.bfloat16)
    p["fc1_b"] = params["fc1_b"].reshape(1, 128).astype(jnp.float32)
    p["fc2_w"] = params["fc2_w"].reshape(1, 128).astype(jnp.float32)
    p["fc2_b"] = params["fc2_b"].reshape(1, 1).astype(jnp.float32)
    return p


# ---------------------------------------------------------------------------
# Forward pass (Pallas) and pure-JAX f32 reference
# ---------------------------------------------------------------------------
@jax.jit
def cnn_forward(x_nchw, pparams):
    n, _, h, w = x_nchw.shape
    assert h == w
    dims, _, _ = _layer_dims(h)
    hp1, wp1 = dims[0][4], dims[0][5]
    x = jnp.transpose(x_nchw, (0, 2, 3, 1)).astype(jnp.bfloat16)   # NCHW -> NHWC bf16
    patches1 = _im2col3x3(x, hp1, wp1)                              # (N, 900, 27)
    fwd = _build_fused_cnn(h, n)
    out = fwd(patches1,
              pparams["conv0_w"], pparams["conv0_b"],
              pparams["conv1_w"], pparams["conv1_b"],
              pparams["conv2_w"], pparams["conv2_b"],
              pparams["fc1_w"], pparams["fc1_b"],
              pparams["fc2_w"], pparams["fc2_b"])
    return out.reshape(n, 1)


def cnn_forward_reference(x_nchw, params):
    x = jnp.transpose(x_nchw, (0, 2, 3, 1))
    for li in range(3):
        x = lax.conv_general_dilated(
            x, params[f"conv{li}_w"], (1, 1), "VALID",
            dimension_numbers=("NHWC", "HWIO", "NHWC")) + params[f"conv{li}_b"]
        x = jnp.maximum(x, 0.0)
        x = lax.reduce_window(x, -jnp.inf, lax.max,
                              (1, 2, 2, 1), (1, 2, 2, 1), "VALID")
    n = x.shape[0]
    x = jnp.transpose(x, (0, 3, 1, 2)).reshape(n, -1)              # torch (C,H,W) flatten
    x = jnp.maximum(x @ params["fc1_w"] + params["fc1_b"], 0.0)
    x = jax.nn.sigmoid(x @ params["fc2_w"] + params["fc2_b"])
    return x


if __name__ == "__main__":
    # 32x32 input: 30x30x32 -> pool 15x15 -> 13x13x64 -> pool 6x6 -> 4x4x128
    # -> pool 2x2 -> flatten 512 -> 128 -> 1.  Batch 2 (even: both v7x TCs busy).
    IN_HW = 32
    key = jax.random.PRNGKey(0)
    k_x, k_p = jax.random.split(key)
    x = jax.random.normal(k_x, (2, 3, IN_HW, IN_HW), jnp.float32)

    params = init_params(k_p, IN_HW)
    pparams = prepare_pallas_params(params, IN_HW)

    out = jax.block_until_ready(cnn_forward(x, pparams))
    assert out.shape == (2, 1), out.shape

    ref = cnn_forward_reference(x, params)
    err = float(jnp.max(jnp.abs(out - ref)))
    # bf16 weights/activations with f32 accumulation vs the pure-f32 reference.
    assert err < 2e-2, f"max abs err = {err}"
    print("KERNEL_OK")
</pallas_src>

<mosaic_0001>
module attributes {stable_mosaic.version = 11 : i64} {
  func.func @kernel(%arg0: i32, %arg1: memref<1x900x27xbf16, #tpu.memory_space<vmem>>, %arg2: memref<27x32xbf16, #tpu.memory_space<vmem>>, %arg3: memref<1x32xf32, #tpu.memory_space<vmem>>, %arg4: memref<288x64xbf16, #tpu.memory_space<vmem>>, %arg5: memref<1x64xf32, #tpu.memory_space<vmem>>, %arg6: memref<576x128xbf16, #tpu.memory_space<vmem>>, %arg7: memref<1x128xf32, #tpu.memory_space<vmem>>, %arg8: memref<512x128xbf16, #tpu.memory_space<vmem>>, %arg9: memref<1x128xf32, #tpu.memory_space<vmem>>, %arg10: memref<1x128xf32, #tpu.memory_space<vmem>>, %arg11: memref<1x1xf32, #tpu.memory_space<vmem>>, %arg12: memref<1x1x1xf32, #tpu.memory_space<vmem>>, %arg13: memref<225x32xf32, #tpu.memory_space<vmem>>, %arg14: memref<36x64xf32, #tpu.memory_space<vmem>>, %arg15: memref<4x128xf32, #tpu.memory_space<vmem>>, %arg16: memref<30x32xf32, #tpu.memory_space<vmem>>, %arg17: memref<12x64xf32, #tpu.memory_space<vmem>>, %arg18: memref<4x128xf32, #tpu.memory_space<vmem>>) attributes {dimension_semantics = [#tpu.dimension_semantics<parallel>], iteration_bounds = array<i64: 2>, scalar_prefetch = 0 : i64, scratch_operands = 6 : i64, tpu.core_type = #tpu.core_type<tc>, window_params = [{transform_indices = @transform_0, window_bounds = array<i64: 1, 900, 27>}, {pipeline_mode = #tpu.pipeline_mode<synchronous>, transform_indices = @transform_1, window_bounds = array<i64: 27, 32>}, {pipeline_mode = #tpu.pipeline_mode<synchronous>, transform_indices = @transform_2, window_bounds = array<i64: 1, 32>}, {pipeline_mode = #tpu.pipeline_mode<synchronous>, transform_indices = @transform_3, window_bounds = array<i64: 288, 64>}, {pipeline_mode = #tpu.pipeline_mode<synchronous>, transform_indices = @transform_4, window_bounds = array<i64: 1, 64>}, {pipeline_mode = #tpu.pipeline_mode<synchronous>, transform_indices = @transform_5, window_bounds = array<i64: 576, 128>}, {pipeline_mode = #tpu.pipeline_mode<synchronous>, transform_indices = @transform_6, window_bounds = array<i64: 1, 128>}, {pipeline_mode = #tpu.pipeline_mode<synchronous>, transform_indices = @transform_7, window_bounds = array<i64: 512, 128>}, {pipeline_mode = #tpu.pipeline_mode<synchronous>, transform_indices = @transform_8, window_bounds = array<i64: 1, 128>}, {pipeline_mode = #tpu.pipeline_mode<synchronous>, transform_indices = @transform_9, window_bounds = array<i64: 1, 128>}, {pipeline_mode = #tpu.pipeline_mode<synchronous>, transform_indices = @transform_10, window_bounds = array<i64: 1, 1>}, {transform_indices = @transform_11, window_bounds = array<i64: 1, 1, 1>}]} {
    %c0 = arith.constant 0 : index
    %c0_0 = arith.constant 0 : index
    %c0_1 = arith.constant 0 : index
    %0 = vector.load %arg1[%c0, %c0_0, %c0_1] : memref<1x900x27xbf16, #tpu.memory_space<vmem>>, vector<1x60x27xbf16>
    %1 = vector.shape_cast %0 : vector<1x60x27xbf16> to vector<60x27xbf16>
    %c0_2 = arith.constant 0 : index
    %c0_3 = arith.constant 0 : index
    %2 = vector.load %arg2[%c0_2, %c0_3] : memref<27x32xbf16, #tpu.memory_space<vmem>>, vector<27x32xbf16>
    %cst = arith.constant dense<0.000000e+00> : vector<60x32xf32>
    %3 = tpu.matmul %1, %2, %cst {dimension_numbers = #tpu.dot_dimension_numbers<[1], [0], [0], [1], [0, 0, 1, 1], [], []>} : vector<60x27xbf16>, vector<27x32xbf16>, vector<60x32xf32> -> vector<60x32xf32>
    %c0_4 = arith.constant 0 : index
    %c0_5 = arith.constant 0 : index
    %4 = vector.load %arg3[%c0_4, %c0_5] : memref<1x32xf32, #tpu.memory_space<vmem>>, vector<1x32xf32>
    %5 = vector.extract_strided_slice %3 {offsets = [0, 0], sizes = [30, 32], strides = [1, 1]} : vector<60x32xf32> to vector<30x32xf32>
    %6 = vector.extract_strided_slice %3 {offsets = [30, 0], sizes = [30, 32], strides = [1, 1]} : vector<60x32xf32> to vector<30x32xf32>
    %7 = arith.maximumf %5, %6 : vector<30x32xf32>
    %c0_6 = arith.constant 0 : index
    %c0_7 = arith.constant 0 : index
    %8 = vector.load %arg16[%c0_6, %c0_7] : memref<30x32xf32, #tpu.memory_space<vmem>>, vector<30x32xf32>
    tpu.vector_store %arg16[%c0_6, %c0_7], %7 {strides = array<i32>} : memref<30x32xf32, #tpu.memory_space<vmem>>, vector<30x32xf32>,
    %c0_8 = arith.constant 0 : index
    %c0_9 = arith.constant 0 : index
    %9 = tpu.strided_load %arg16[%c0_8, %c0_9] {strides = array<i32: 2, 1>} : memref<30x32xf32, #tpu.memory_space<vmem>>, vector<15x32xf32>
    %c1 = arith.constant 1 : index
    %c0_10 = arith.constant 0 : index
    %10 = tpu.strided_load %arg16[%c1, %c0_10] {strides = array<i32: 2, 1>} : memref<30x32xf32, #tpu.memory_space<vmem>>, vector<15x32xf32>
    %11 = arith.maximumf %9, %10 : vector<15x32xf32>
    %12 = vector.broadcast %4 : vector<1x32xf32> to vector<15x32xf32>
    %13 = arith.addf %11, %12 : vector<15x32xf32>
    %cst_11 = arith.constant 0.000000e+00 : f32
    %14 = vector.broadcast %cst_11 : f32 to vector<15x32xf32>
    %15 = arith.maximumf %13, %14 : vector<15x32xf32>
    %c0_12 = arith.constant 0 : index
    %c0_13 = arith.constant 0 : index
    %16 = vector.load %arg13[%c0_12, %c0_13] : memref<225x32xf32, #tpu.memory_space<vmem>>, vector<15x32xf32>
    tpu.vector_store %arg13[%c0_12, %c0_13], %15 {strides = array<i32>} : memref<225x32xf32, #tpu.memory_space<vmem>>, vector<15x32xf32>,
    %c0_14 = arith.constant 0 : index
    %c60 = arith.constant 60 : index
    %c0_15 = arith.constant 0 : index
    %17 = vector.load %arg1[%c0_14, %c60, %c0_15] : memref<1x900x27xbf16, #tpu.memory_space<vmem>>, vector<1x60x27xbf16>
    %18 = vector.shape_cast %17 : vector<1x60x27xbf16> to vector<60x27xbf16>
    %c0_16 = arith.constant 0 : index
    %c0_17 = arith.constant 0 : index
    %19 = vector.load %arg2[%c0_16, %c0_17] : memref<27x32xbf16, #tpu.memory_space<vmem>>, vector<27x32xbf16>
    %cst_18 = arith.constant dense<0.000000e+00> : vector<60x32xf32>
    %20 = tpu.matmul %18, %19, %cst_18 {dimension_numbers = #tpu.dot_dimension_numbers<[1], [0], [0], [1], [0, 0, 1, 1], [], []>} : vector<60x27xbf16>, vector<27x32xbf16>, vector<60x32xf32> -> vector<60x32xf32>
    %c0_19 = arith.constant 0 : index
    %c0_20 = arith.constant 0 : index
    %21 = vector.load %arg3[%c0_19, %c0_20] : memref<1x32xf32, #tpu.memory_space<vmem>>, vector<1x32xf32>
    %22 = vector.extract_strided_slice %20 {offsets = [0, 0], sizes = [30, 32], strides = [1, 1]} : vector<60x32xf32> to vector<30x32xf32>
    %23 = vector.extract_strided_slice %20 {offsets = [30, 0], sizes = [30, 32], strides = [1, 1]} : vector<60x32xf32> to vector<30x32xf32>
    %24 = arith.maximumf %22, %23 : vector<30x32xf32>
    %c0_21 = arith.constant 0 : index
    %c0_22 = arith.constant 0 : index
    %25 = vector.load %arg16[%c0_21, %c0_22] : memref<30x32xf32, #tpu.memory_space<vmem>>, vector<30x32xf32>
    tpu.vector_store %arg16[%c0_21, %c0_22], %24 {strides = array<i32>} : memref<30x32xf32, #tpu.memory_space<vmem>>, vector<30x32xf32>,
    %c0_23 = arith.constant 0 : index
    %c0_24 = arith.constant 0 : index
    %26 = tpu.strided_load %arg16[%c0_23, %c0_24] {strides = array<i32: 2, 1>} : memref<30x32xf32, #tpu.memory_space<vmem>>, vector<15x32xf32>
    %c1_25 = arith.constant 1 : index
    %c0_26 = arith.constant 0 : index
    %27 = tpu.strided_load %arg16[%c1_25, %c0_26] {strides = array<i32: 2, 1>} : memref<30x32xf32, #tpu.memory_space<vmem>>, vector<15x32xf32>
    %28 = arith.maximumf %26, %27 : vector<15x32xf32>
    %29 = vector.broadcast %21 : vector<1x32xf32> to vector<15x32xf32>
    %30 = arith.addf %28, %29 : vector<15x32xf32>
    %cst_27 = arith.constant 0.000000e+00 : f32
    %31 = vector.broadcast %cst_27 : f32 to vector<15x32xf32>
    %32 = arith.maximumf %30, %31 : vector<15x32xf32>
    %c15 = arith.constant 15 : index
    %c0_28 = arith.constant 0 : index
    %33 = vector.load %arg13[%c15, %c0_28] : memref<225x32xf32, #tpu.memory_space<vmem>>, vector<15x32xf32>
    tpu.vector_store %arg13[%c15, %c0_28], %32 {strides = array<i32>} : memref<225x32xf32, #tpu.memory_space<vmem>>, vector<15x32xf32>,
    %c0_29 = arith.constant 0 : index
    %c120 = arith.constant 120 : index
    %c0_30 = arith.constant 0 : index
    %34 = vector.load %arg1[%c0_29, %c120, %c0_30] : memref<1x900x27xbf16, #tpu.memory_space<vmem>>, vector<1x60x27xbf16>
    %35 = vector.shape_cast %34 : vector<1x60x27xbf16> to vector<60x27xbf16>
    %c0_31 = arith.constant 0 : index
    %c0_32 = arith.constant 0 : index
    %36 = vector.load %arg2[%c0_31, %c0_32] : memref<27x32xbf16, #tpu.memory_space<vmem>>, vector<27x32xbf16>
    %cst_33 = arith.constant dense<0.000000e+00> : vector<60x32xf32>
    %37 = tpu.matmul %35, %36, %cst_33 {dimension_numbers = #tpu.dot_dimension_numbers<[1], [0], [0], [1], [0, 0, 1, 1], [], []>} : vector<60x27xbf16>, vector<27x32xbf16>, vector<60x32xf32> -> vector<60x32xf32>
    %c0_34 = arith.constant 0 : index
    %c0_35 = arith.constant 0 : index
    %38 = vector.load %arg3[%c0_34, %c0_35] : memref<1x32xf32, #tpu.memory_space<vmem>>, vector<1x32xf32>
    %39 = vector.extract_strided_slice %37 {offsets = [0, 0], sizes = [30, 32], strides = [1, 1]} : vector<60x32xf32> to vector<30x32xf32>
    %40 = vector.extract_strided_slice %37 {offsets = [30, 0], sizes = [30, 32], strides = [1, 1]} : vector<60x32xf32> to vector<30x32xf32>
    %41 = arith.maximumf %39, %40 : vector<30x32xf32>
    %c0_36 = arith.constant 0 : index
    %c0_37 = arith.constant 0 : index
    %42 = vector.load %arg16[%c0_36, %c0_37] : memref<30x32xf32, #tpu.memory_space<vmem>>, vector<30x32xf32>
    tpu.vector_store %arg16[%c0_36, %c0_37], %41 {strides = array<i32>} : memref<30x32xf32, #tpu.memory_space<vmem>>, vector<30x32xf32>,
    %c0_38 = arith.constant 0 : index
    %c0_39 = arith.constant 0 : index
    %43 = tpu.strided_load %arg16[%c0_38, %c0_39] {strides = array<i32: 2, 1>} : memref<30x32xf32, #tpu.memory_space<vmem>>, vector<15x32xf32>
    %c1_40 = arith.constant 1 : index
    %c0_41 = arith.constant 0 : index
    %44 = tpu.strided_load %arg16[%c1_40, %c0_41] {strides = array<i32: 2, 1>} : memref<30x32xf32, #tpu.memory_space<vmem>>, vector<15x32xf32>
    %45 = arith.maximumf %43, %44 : vector<15x32xf32>
    %46 = vector.broadcast %38 : vector<1x32xf32> to vector<15x32xf32>
    %47 = arith.addf %45, %46 : vector<15x32xf32>
    %cst_42 = arith.constant 0.000000e+00 : f32
    %48 = vector.broadcast %cst_42 : f32 to vector<15x32xf32>
    %49 = arith.maximumf %47, %48 : vector<15x32xf32>
    %c30 = arith.constant 30 : index
    %c0_43 = arith.constant 0 : index
    %50 = vector.load %arg13[%c30, %c0_43] : memref<225x32xf32, #tpu.memory_space<vmem>>, vector<15x32xf32>
    tpu.vector_store %arg13[%c30, %c0_43], %49 {strides = array<i32>} : memref<225x32xf32, #tpu.memory_space<vmem>>, vector<15x32xf32>,
    %c0_44 = arith.constant 0 : index
    %c180 = arith.constant 180 : index
    %c0_45 = arith.constant 0 : index
    %51 = vector.load %arg1[%c0_44, %c180, %c0_45] : memref<1x900x27xbf16, #tpu.memory_space<vmem>>, vector<1x60x27xbf16>
    %52 = vector.shape_cast %51 : vector<1x60x27xbf16> to vector<60x27xbf16>
    %c0_46 = arith.constant 0 : index
    %c0_47 = arith.constant 0 : index
    %53 = vector.load %arg2[%c0_46, %c0_47] : memref<27x32xbf16, #tpu.memory_space<vmem>>, vector<27x32xbf16>
    %cst_48 = arith.constant dense<0.000000e+00> : vector<60x32xf32>
    %54 = tpu.matmul %52, %53, %cst_48 {dimension_numbers = #tpu.dot_dimension_numbers<[1], [0], [0], [1], [0, 0, 1, 1], [], []>} : vector<60x27xbf16>, vector<27x32xbf16>, vector<60x32xf32> -> vector<60x32xf32>
    %c0_49 = arith.constant 0 : index
    %c0_50 = arith.constant 0 : index
    %55 = vector.load %arg3[%c0_49, %c0_50] : memref<1x32xf32, #tpu.memory_space<vmem>>, vector<1x32xf32>
    %56 = vector.extract_strided_slice %54 {offsets = [0, 0], sizes = [30, 32], strides = [1, 1]} : vector<60x32xf32> to vector<30x32xf32>
    %57 = vector.extract_strided_slice %54 {offsets = [30, 0], sizes = [30, 32], strides = [1, 1]} : vector<60x32xf32> to vector<30x32xf32>
    %58 = arith.maximumf %56, %57 : vector<30x32xf32>
    %c0_51 = arith.constant 0 : index
    %c0_52 = arith.constant 0 : index
    %59 = vector.load %arg16[%c0_51, %c0_52] : memref<30x32xf32, #tpu.memory_space<vmem>>, vector<30x32xf32>
    tpu.vector_store %arg16[%c0_51, %c0_52], %58 {strides = array<i32>} : memref<30x32xf32, #tpu.memory_space<vmem>>, vector<30x32xf32>,
    %c0_53 = arith.constant 0 : index
    %c0_54 = arith.constant 0 : index
    %60 = tpu.strided_load %arg16[%c0_53, %c0_54] {strides = array<i32: 2, 1>} : memref<30x32xf32, #tpu.memory_space<vmem>>, vector<15x32xf32>
    %c1_55 = arith.constant 1 : index
    %c0_56 = arith.constant 0 : index
    %61 = tpu.strided_load %arg16[%c1_55, %c0_56] {strides = array<i32: 2, 1>} : memref<30x32xf32, #tpu.memory_space<vmem>>, vector<15x32xf32>
    %62 = arith.maximumf %60, %61 : vector<15x32xf32>
    %63 = vector.broadcast %55 : vector<1x32xf32> to vector<15x32xf32>
    %64 = arith.addf %62, %63 : vector<15x32xf32>
    %cst_57 = arith.constant 0.000000e+00 : f32
    %65 = vector.broadcast %cst_57 : f32 to vector<15x32xf32>
    %66 = arith.maximumf %64, %65 : vector<15x32xf32>
    %c45 = arith.constant 45 : index
    %c0_58 = arith.constant 0 : index
    %67 = vector.load %arg13[%c45, %c0_58] : memref<225x32xf32, #tpu.memory_space<vmem>>, vector<15x32xf32>
    tpu.vector_store %arg13[%c45, %c0_58], %66 {strides = array<i32>} : memref<225x32xf32, #tpu.memory_space<vmem>>, vector<15x32xf32>,
    %c0_59 = arith.constant 0 : index
    %c240 = arith.constant 240 : index
    %c0_60 = arith.constant 0 : index
    %68 = vector.load %arg1[%c0_59, %c240, %c0_60] : memref<1x900x27xbf16, #tpu.memory_space<vmem>>, vector<1x60x27xbf16>
    %69 = vector.shape_cast %68 : vector<1x60x27xbf16> to vector<60x27xbf16>
    %c0_61 = arith.constant 0 : index
    %c0_62 = arith.constant 0 : index
    %70 = vector.load %arg2[%c0_61, %c0_62] : memref<27x32xbf16, #tpu.memory_space<vmem>>, vector<27x32xbf16>
    %cst_63 = arith.constant dense<0.000000e+00> : vector<60x32xf32>
    %71 = tpu.matmul %69, %70, %cst_63 {dimension_numbers = #tpu.dot_dimension_numbers<[1], [0], [0], [1], [0, 0, 1, 1], [], []>} : vector<60x27xbf16>, vector<27x32xbf16>, vector<60x32xf32> -> vector<60x32xf32>
    %c0_64 = arith.constant 0 : index
    %c0_65 = arith.constant 0 : index
    %72 = vector.load %arg3[%c0_64, %c0_65] : memref<1x32xf32, #tpu.memory_space<vmem>>, vector<1x32xf32>
    %73 = vector.extract_strided_slice %71 {offsets = [0, 0], sizes = [30, 32], strides = [1, 1]} : vector<60x32xf32> to vector<30x32xf32>
    %74 = vector.extract_strided_slice %71 {offsets = [30, 0], sizes = [30, 32], strides = [1, 1]} : vector<60x32xf32> to vector<30x32xf32>
    %75 = arith.maximumf %73, %74 : vector<30x32xf32>
    %c0_66 = arith.constant 0 : index
    %c0_67 = arith.constant 0 : index
    %76 = vector.load %arg16[%c0_66, %c0_67] : memref<30x32xf32, #tpu.memory_space<vmem>>, vector<30x32xf32>
    tpu.vector_store %arg16[%c0_66, %c0_67], %75 {strides = array<i32>} : memref<30x32xf32, #tpu.memory_space<vmem>>, vector<30x32xf32>,
    %c0_68 = arith.constant 0 : index
    %c0_69 = arith.constant 0 : index
    %77 = tpu.strided_load %arg16[%c0_68, %c0_69] {strides = array<i32: 2, 1>} : memref<30x32xf32, #tpu.memory_space<vmem>>, vector<15x32xf32>
    %c1_70 = arith.constant 1 : index
    %c0_71 = arith.constant 0 : index
    %78 = tpu.strided_load %arg16[%c1_70, %c0_71] {strides = array<i32: 2, 1>} : memref<30x32xf32, #tpu.memory_space<vmem>>, vector<15x32xf32>
    %79 = arith.maximumf %77, %78 : vector<15x32xf32>
    %80 = vector.broadcast %72 : vector<1x32xf32> to vector<15x32xf32>
    %81 = arith.addf %79, %80 : vector<15x32xf32>
    %cst_72 = arith.constant 0.000000e+00 : f32
    %82 = vector.broadcast %cst_72 : f32 to vector<15x32xf32>
    %83 = arith.maximumf %81, %82 : vector<15x32xf32>
    %c60_73 = arith.constant 60 : index
    %c0_74 = arith.constant 0 : index
    %84 = vector.load %arg13[%c60_73, %c0_74] : memref<225x32xf32, #tpu.memory_space<vmem>>, vector<15x32xf32>
    tpu.vector_store %arg13[%c60_73, %c0_74], %83 {strides = array<i32>} : memref<225x32xf32, #tpu.memory_space<vmem>>, vector<15x32xf32>,
    %c0_75 = arith.constant 0 : index
    %c300 = arith.constant 300 : index
    %c0_76 = arith.constant 0 : index
    %85 = vector.load %arg1[%c0_75, %c300, %c0_76] : memref<1x900x27xbf16, #tpu.memory_space<vmem>>, vector<1x60x27xbf16>
    %86 = vector.shape_cast %85 : vector<1x60x27xbf16> to vector<60x27xbf16>
    %c0_77 = arith.constant 0 : index
    %c0_78 = arith.constant 0 : index
    %87 = vector.load %arg2[%c0_77, %c0_78] : memref<27x32xbf16, #tpu.memory_space<vmem>>, vector<27x32xbf16>
    %cst_79 = arith.constant dense<0.000000e+00> : vector<60x32xf32>
    %88 = tpu.matmul %86, %87, %cst_79 {dimension_numbers = #tpu.dot_dimension_numbers<[1], [0], [0], [1], [0, 0, 1, 1], [], []>} : vector<60x27xbf16>, vector<27x32xbf16>, vector<60x32xf32> -> vector<60x32xf32>
    %c0_80 = arith.constant 0 : index
    %c0_81 = arith.constant 0 : index
    %89 = vector.load %arg3[%c0_80, %c0_81] : memref<1x32xf32, #tpu.memory_space<vmem>>, vector<1x32xf32>
    %90 = vector.extract_strided_slice %88 {offsets = [0, 0], sizes = [30, 32], strides = [1, 1]} : vector<60x32xf32> to vector<30x32xf32>
    %91 = vector.extract_strided_slice %88 {offsets = [30, 0], sizes = [30, 32], strides = [1, 1]} : vector<60x32xf32> to vector<30x32xf32>
    %92 = arith.maximumf %90, %91 : vector<30x32xf32>
    %c0_82 = arith.constant 0 : index
    %c0_83 = arith.constant 0 : index
    %93 = vector.load %arg16[%c0_82, %c0_83] : memref<30x32xf32, #tpu.memory_space<vmem>>, vector<30x32xf32>
    tpu.vector_store %arg16[%c0_82, %c0_83], %92 {strides = array<i32>} : memref<30x32xf32, #tpu.memory_space<vmem>>, vector<30x32xf32>,
    %c0_84 = arith.constant 0 : index
    %c0_85 = arith.constant 0 : index
    %94 = tpu.strided_load %arg16[%c0_84, %c0_85] {strides = array<i32: 2, 1>} : memref<30x32xf32, #tpu.memory_space<vmem>>, vector<15x32xf32>
    %c1_86 = arith.constant 1 : index
    %c0_87 = arith.constant 0 : index
    %95 = tpu.strided_load %arg16[%c1_86, %c0_87] {strides = array<i32: 2, 1>} : memref<30x32xf32, #tpu.memory_space<vmem>>, vector<15x32xf32>
    %96 = arith.maximumf %94, %95 : vector<15x32xf32>
    %97 = vector.broadcast %89 : vector<1x32xf32> to vector<15x32xf32>
    %98 = arith.addf %96, %97 : vector<15x32xf32>
    %cst_88 = arith.constant 0.000000e+00 : f32
    %99 = vector.broadcast %cst_88 : f32 to vector<15x32xf32>
    %100 = arith.maximumf %98, %99 : vector<15x32xf32>
    %c75 = arith.constant 75 : index
    %c0_89 = arith.constant 0 : index
    %101 = vector.load %arg13[%c75, %c0_89] : memref<225x32xf32, #tpu.memory_space<vmem>>, vector<15x32xf32>
    tpu.vector_store %arg13[%c75, %c0_89], %100 {strides = array<i32>} : memref<225x32xf32, #tpu.memory_space<vmem>>, vector<15x32xf32>,
    %c0_90 = arith.constant 0 : index
    %c360 = arith.constant 360 : index
    %c0_91 = arith.constant 0 : index
    %102 = vector.load %arg1[%c0_90, %c360, %c0_91] : memref<1x900x27xbf16, #tpu.memory_space<vmem>>, vector<1x60x27xbf16>
    %103 = vector.shape_cast %102 : vector<1x60x27xbf16> to vector<60x27xbf16>
    %c0_92 = arith.constant 0 : index
    %c0_93 = arith.constant 0 : index
    %104 = vector.load %arg2[%c0_92, %c0_93] : memref<27x32xbf16, #tpu.memory_space<vmem>>, vector<27x32xbf16>
    %cst_94 = arith.constant dense<0.000000e+00> : vector<60x32xf32>
    %105 = tpu.matmul %103, %104, %cst_94 {dimension_numbers = #tpu.dot_dimension_numbers<[1], [0], [0], [1], [0, 0, 1, 1], [], []>} : vector<60x27xbf16>, vector<27x32xbf16>, vector<60x32xf32> -> vector<60x32xf32>
    %c0_95 = arith.constant 0 : index
    %c0_96 = arith.constant 0 : index
    %106 = vector.load %arg3[%c0_95, %c0_96] : memref<1x32xf32, #tpu.memory_space<vmem>>, vector<1x32xf32>
    %107 = vector.extract_strided_slice %105 {offsets = [0, 0], sizes = [30, 32], strides = [1, 1]} : vector<60x32xf32> to vector<30x32xf32>
    %108 = vector.extract_strided_slice %105 {offsets = [30, 0], sizes = [30, 32], strides = [1, 1]} : vector<60x32xf32> to vector<30x32xf32>
    %109 = arith.maximumf %107, %108 : vector<30x32xf32>
    %c0_97 = arith.constant 0 : index
    %c0_98 = arith.constant 0 : index
    %110 = vector.load %arg16[%c0_97, %c0_98] : memref<30x32xf32, #tpu.memory_space<vmem>>, vector<30x32xf32>
    tpu.vector_store %arg16[%c0_97, %c0_98], %109 {strides = array<i32>} : memref<30x32xf32, #tpu.memory_space<vmem>>, vector<30x32xf32>,
    %c0_99 = arith.constant 0 : index
    %c0_100 = arith.constant 0 : index
    %111 = tpu.strided_load %arg16[%c0_99, %c0_100] {strides = array<i32: 2, 1>} : memref<30x32xf32, #tpu.memory_space<vmem>>, vector<15x32xf32>
    %c1_101 = arith.constant 1 : index
    %c0_102 = arith.constant 0 : index
    %112 = tpu.strided_load %arg16[%c1_101, %c0_102] {strides = array<i32: 2, 1>} : memref<30x32xf32, #tpu.memory_space<vmem>>, vector<15x32xf32>
    %113 = arith.maximumf %111, %112 : vector<15x32xf32>
    %114 = vector.broadcast %106 : vector<1x32xf32> to vector<15x32xf32>
    %115 = arith.addf %113, %114 : vector<15x32xf32>
    %cst_103 = arith.constant 0.000000e+00 : f32
    %116 = vector.broadcast %cst_103 : f32 to vector<15x32xf32>
    %117 = arith.maximumf %115, %116 : vector<15x32xf32>
    %c90 = arith.constant 90 : index
    %c0_104 = arith.constant 0 : index
    %118 = vector.load %arg13[%c90, %c0_104] : memref<225x32xf32, #tpu.memory_space<vmem>>, vector<15x32xf32>
    tpu.vector_store %arg13[%c90, %c0_104], %117 {strides = array<i32>} : memref<225x32xf32, #tpu.memory_space<vmem>>, vector<15x32xf32>,
    %c0_105 = arith.constant 0 : index
    %c420 = arith.constant 420 : index
    %c0_106 = arith.constant 0 : index
    %119 = vector.load %arg1[%c0_105, %c420, %c0_106] : memref<1x900x27xbf16, #tpu.memory_space<vmem>>, vector<1x60x27xbf16>
    %120 = vector.shape_cast %119 : vector<1x60x27xbf16> to vector<60x27xbf16>
    %c0_107 = arith.constant 0 : index
    %c0_108 = arith.constant 0 : index
    %121 = vector.load %arg2[%c0_107, %c0_108] : memref<27x32xbf16, #tpu.memory_space<vmem>>, vector<27x32xbf16>
    %cst_109 = arith.constant dense<0.000000e+00> : vector<60x32xf32>
    %122 = tpu.matmul %120, %121, %cst_109 {dimension_numbers = #tpu.dot_dimension_numbers<[1], [0], [0], [1], [0, 0, 1, 1], [], []>} : vector<60x27xbf16>, vector<27x32xbf16>, vector<60x32xf32> -> vector<60x32xf32>
    %c0_110 = arith.constant 0 : index
    %c0_111 = arith.constant 0 : index
    %123 = vector.load %arg3[%c0_110, %c0_111] : memref<1x32xf32, #tpu.memory_space<vmem>>, vector<1x32xf32>
    %124 = vector.extract_strided_slice %122 {offsets = [0, 0], sizes = [30, 32], strides = [1, 1]} : vector<60x32xf32> to vector<30x32xf32>
    %125 = vector.extract_strided_slice %122 {offsets = [30, 0], sizes = [30, 32], strides = [1, 1]} : vector<60x32xf32> to vector<30x32xf32>
    %126 = arith.maximumf %124, %125 : vector<30x32xf32>
    %c0_112 = arith.constant 0 : index
    %c0_113 = arith.constant 0 : index
    %127 = vector.load %arg16[%c0_112, %c0_113] : memref<30x32xf32, #tpu.memory_space<vmem>>, vector<30x32xf32>
    tpu.vector_store %arg16[%c0_112, %c0_113], %126 {strides = array<i32>} : memref<30x32xf32, #tpu.memory_space<vmem>>, vector<30x32xf32>,
    %c0_114 = arith.constant 0 : index
    %c0_115 = arith.constant 0 : index
    %128 = tpu.strided_load %arg16[%c0_114, %c0_115] {strides = array<i32: 2, 1>} : memref<30x32xf32, #tpu.memory_space<vmem>>, vector<15x32xf32>
    %c1_116 = arith.constant 1 : index
    %c0_117 = arith.constant 0 : index
    %129 = tpu.strided_load %arg16[%c1_116, %c0_117] {strides = array<i32: 2, 1>} : memref<30x32xf32, #tpu.memory_space<vmem>>, vector<15x32xf32>
    %130 = arith.maximumf %128, %129 : vector<15x32xf32>
    %131 = vector.broadcast %123 : vector<1x32xf32> to vector<15x32xf32>
    %132 = arith.addf %130, %131 : vector<15x32xf32>
    %cst_118 = arith.constant 0.000000e+00 : f32
    %133 = vector.broadcast %cst_118 : f32 to vector<15x32xf32>
    %134 = arith.maximumf %132, %133 : vector<15x32xf32>
    %c105 = arith.constant 105 : index
    %c0_119 = arith.constant 0 : index
    %135 = vector.load %arg13[%c105, %c0_119] : memref<225x32xf32, #tpu.memory_space<vmem>>, vector<15x32xf32>
    tpu.vector_store %arg13[%c105, %c0_119], %134 {strides = array<i32>} : memref<225x32xf32, #tpu.memory_space<vmem>>, vector<15x32xf32>,
    %c0_120 = arith.constant 0 : index
    %c480 = arith.constant 480 : index
    %c0_121 = arith.constant 0 : index
    %136 = vector.load %arg1[%c0_120, %c480, %c0_121] : memref<1x900x27xbf16, #tpu.memory_space<vmem>>, vector<1x60x27xbf16>
    %137 = vector.shape_cast %136 : vector<1x60x27xbf16> to vector<60x27xbf16>
    %c0_122 = arith.constant 0 : index
    %c0_123 = arith.constant 0 : index
    %138 = vector.load %arg2[%c0_122, %c0_123] : memref<27x32xbf16, #tpu.memory_space<vmem>>, vector<27x32xbf16>
    %cst_124 = arith.constant dense<0.000000e+00> : vector<60x32xf32>
    %139 = tpu.matmul %137, %138, %cst_124 {dimension_numbers = #tpu.dot_dimension_numbers<[1], [0], [0], [1], [0, 0, 1, 1], [], []>} : vector<60x27xbf16>, vector<27x32xbf16>, vector<60x32xf32> -> vector<60x32xf32>
    %c0_125 = arith.constant 0 : index
    %c0_126 = arith.constant 0 : index
    %140 = vector.load %arg3[%c0_125, %c0_126] : memref<1x32xf32, #tpu.memory_space<vmem>>, vector<1x32xf32>
    %141 = vector.extract_strided_slice %139 {offsets = [0, 0], sizes = [30, 32], strides = [1, 1]} : vector<60x32xf32> to vector<30x32xf32>
    %142 = vector.extract_strided_slice %139 {offsets = [30, 0], sizes = [30, 32], strides = [1, 1]} : vector<60x32xf32> to vector<30x32xf32>
    %143 = arith.maximumf %141, %142 : vector<30x32xf32>
    %c0_127 = arith.constant 0 : index
    %c0_128 = arith.constant 0 : index
    %144 = vector.load %arg16[%c0_127, %c0_128] : memref<30x32xf32, #tpu.memory_space<vmem>>, vector<30x32xf32>
    tpu.vector_store %arg16[%c0_127, %c0_128], %143 {strides = array<i32>} : memref<30x32xf32, #tpu.memory_space<vmem>>, vector<30x32xf32>,
    %c0_129 = arith.constant 0 : index
    %c0_130 = arith.constant 0 : index
    %145 = tpu.strided_load %arg16[%c0_129, %c0_130] {strides = array<i32: 2, 1>} : memref<30x32xf32, #tpu.memory_space<vmem>>, vector<15x32xf32>
    %c1_131 = arith.constant 1 : index
    %c0_132 = arith.constant 0 : index
    %146 = tpu.strided_load %arg16[%c1_131, %c0_132] {strides = array<i32: 2, 1>} : memref<30x32xf32, #tpu.memory_space<vmem>>, vector<15x32xf32>
    %147 = arith.maximumf %145, %146 : vector<15x32xf32>
    %148 = vector.broadcast %140 : vector<1x32xf32> to vector<15x32xf32>
    %149 = arith.addf %147, %148 : vector<15x32xf32>
    %cst_133 = arith.constant 0.000000e+00 : f32
    %150 = vector.broadcast %cst_133 : f32 to vector<15x32xf32>
    %151 = arith.maximumf %149, %150 : vector<15x32xf32>
    %c120_134 = arith.constant 120 : index
    %c0_135 = arith.constant 0 : index
    %152 = vector.load %arg13[%c120_134, %c0_135] : memref<225x32xf32, #tpu.memory_space<vmem>>, vector<15x32xf32>
    tpu.vector_store %arg13[%c120_134, %c0_135], %151 {strides = array<i32>} : memref<225x32xf32, #tpu.memory_space<vmem>>, vector<15x32xf32>,
    %c0_136 = arith.constant 0 : index
    %c540 = arith.constant 540 : index
    %c0_137 = arith.constant 0 : index
    %153 = vector.load %arg1[%c0_136, %c540, %c0_137] : memref<1x900x27xbf16, #tpu.memory_space<vmem>>, vector<1x60x27xbf16>
    %154 = vector.shape_cast %153 : vector<1x60x27xbf16> to vector<60x27xbf16>
    %c0_138 = arith.constant 0 : index
    %c0_139 = arith.constant 0 : index
    %155 = vector.load %arg2[%c0_138, %c0_139] : memref<27x32xbf16, #tpu.memory_space<vmem>>, vector<27x32xbf16>
    %cst_140 = arith.constant dense<0.000000e+00> : vector<60x32xf32>
    %156 = tpu.matmul %154, %155, %cst_140 {dimension_numbers = #tpu.dot_dimension_numbers<[1], [0], [0], [1], [0, 0, 1, 1], [], []>} : vector<60x27xbf16>, vector<27x32xbf16>, vector<60x32xf32> -> vector<60x32xf32>
    %c0_141 = arith.constant 0 : index
    %c0_142 = arith.constant 0 : index
    %157 = vector.load %arg3[%c0_141, %c0_142] : memref<1x32xf32, #tpu.memory_space<vmem>>, vector<1x32xf32>
    %158 = vector.extract_strided_slice %156 {offsets = [0, 0], sizes = [30, 32], strides = [1, 1]} : vector<60x32xf32> to vector<30x32xf32>
    %159 = vector.extract_strided_slice %156 {offsets = [30, 0], sizes = [30, 32], strides = [1, 1]} : vector<60x32xf32> to vector<30x32xf32>
    %160 = arith.maximumf %158, %159 : vector<30x32xf32>
    %c0_143 = arith.constant 0 : index
    %c0_144 = arith.constant 0 : index
    %161 = vector.load %arg16[%c0_143, %c0_144] : memref<30x32xf32, #tpu.memory_space<vmem>>, vector<30x32xf32>
    tpu.vector_store %arg16[%c0_143, %c0_144], %160 {strides = array<i32>} : memref<30x32xf32, #tpu.memory_space<vmem>>, vector<30x32xf32>,
    %c0_145 = arith.constant 0 : index
    %c0_146 = arith.constant 0 : index
    %162 = tpu.strided_load %arg16[%c0_145, %c0_146] {strides = array<i32: 2, 1>} : memref<30x32xf32, #tpu.memory_space<vmem>>, vector<15x32xf32>
    %c1_147 = arith.constant 1 : index
    %c0_148 = arith.constant 0 : index
    %163 = tpu.strided_load %arg16[%c1_147, %c0_148] {strides = array<i32: 2, 1>} : memref<30x32xf32, #tpu.memory_space<vmem>>, vector<15x32xf32>
    %164 = arith.maximumf %162, %163 : vector<15x32xf32>
    %165 = vector.broadcast %157 : vector<1x32xf32> to vector<15x32xf32>
    %166 = arith.addf %164, %165 : vector<15x32xf32>
    %cst_149 = arith.constant 0.000000e+00 : f32
    %167 = vector.broadcast %cst_149 : f32 to vector<15x32xf32>
    %168 = arith.maximumf %166, %167 : vector<15x32xf32>
    %c135 = arith.constant 135 : index
    %c0_150 = arith.constant 0 : index
    %169 = vector.load %arg13[%c135, %c0_150] : memref<225x32xf32, #tpu.memory_space<vmem>>, vector<15x32xf32>
    tpu.vector_store %arg13[%c135, %c0_150], %168 {strides = array<i32>} : memref<225x32xf32, #tpu.memory_space<vmem>>, vector<15x32xf32>,
    %c0_151 = arith.constant 0 : index
    %c600 = arith.constant 600 : index
    %c0_152 = arith.constant 0 : index
    %170 = vector.load %arg1[%c0_151, %c600, %c0_152] : memref<1x900x27xbf16, #tpu.memory_space<vmem>>, vector<1x60x27xbf16>
    %171 = vector.shape_cast %170 : vector<1x60x27xbf16> to vector<60x27xbf16>
    %c0_153 = arith.constant 0 : index
    %c0_154 = arith.constant 0 : index
    %172 = vector.load %arg2[%c0_153, %c0_154] : memref<27x32xbf16, #tpu.memory_space<vmem>>, vector<27x32xbf16>
    %cst_155 = arith.constant dense<0.000000e+00> : vector<60x32xf32>
    %173 = tpu.matmul %171, %172, %cst_155 {dimension_numbers = #tpu.dot_dimension_numbers<[1], [0], [0], [1], [0, 0, 1, 1], [], []>} : vector<60x27xbf16>, vector<27x32xbf16>, vector<60x32xf32> -> vector<60x32xf32>
    %c0_156 = arith.constant 0 : index
    %c0_157 = arith.constant 0 : index
    %174 = vector.load %arg3[%c0_156, %c0_157] : memref<1x32xf32, #tpu.memory_space<vmem>>, vector<1x32xf32>
    %175 = vector.extract_strided_slice %173 {offsets = [0, 0], sizes = [30, 32], strides = [1, 1]} : vector<60x32xf32> to vector<30x32xf32>
    %176 = vector.extract_strided_slice %173 {offsets = [30, 0], sizes = [30, 32], strides = [1, 1]} : vector<60x32xf32> to vector<30x32xf32>
    %177 = arith.maximumf %175, %176 : vector<30x32xf32>
    %c0_158 = arith.constant 0 : index
    %c0_159 = arith.constant 0 : index
    %178 = vector.load %arg16[%c0_158, %c0_159] : memref<30x32xf32, #tpu.memory_space<vmem>>, vector<30x32xf32>
    tpu.vector_store %arg16[%c0_158, %c0_159], %177 {strides = array<i32>} : memref<30x32xf32, #tpu.memory_space<vmem>>, vector<30x32xf32>,
    %c0_160 = arith.constant 0 : index
    %c0_161 = arith.constant 0 : index
    %179 = tpu.strided_load %arg16[%c0_160, %c0_161] {strides = array<i32: 2, 1>} : memref<30x32xf32, #tpu.memory_space<vmem>>, vector<15x32xf32>
    %c1_162 = arith.constant 1 : index
    %c0_163 = arith.constant 0 : index
    %180 = tpu.strided_load %arg16[%c1_162, %c0_163] {strides = array<i32: 2, 1>} : memref<30x32xf32, #tpu.memory_space<vmem>>, vector<15x32xf32>
    %181 = arith.maximumf %179, %180 : vector<15x32xf32>
    %182 = vector.broadcast %174 : vector<1x32xf32> to vector<15x32xf32>
    %183 = arith.addf %181, %182 : vector<15x32xf32>
    %cst_164 = arith.constant 0.000000e+00 : f32
    %184 = vector.broadcast %cst_164 : f32 to vector<15x32xf32>
    %185 = arith.maximumf %183, %184 : vector<15x32xf32>
    %c150 = arith.constant 150 : index
    %c0_165 = arith.constant 0 : index
    %186 = vector.load %arg13[%c150, %c0_165] : memref<225x32xf32, #tpu.memory_space<vmem>>, vector<15x32xf32>
    tpu.vector_store %arg13[%c150, %c0_165], %185 {strides = array<i32>} : memref<225x32xf32, #tpu.memory_space<vmem>>, vector<15x32xf32>,
    %c0_166 = arith.constant 0 : index
    %c660 = arith.constant 660 : index
    %c0_167 = arith.constant 0 : index
    %187 = vector.load %arg1[%c0_166, %c660, %c0_167] : memref<1x900x27xbf16, #tpu.memory_space<vmem>>, vector<1x60x27xbf16>
    %188 = vector.shape_cast %187 : vector<1x60x27xbf16> to vector<60x27xbf16>
    %c0_168 = arith.constant 0 : index
    %c0_169 = arith.constant 0 : index
    %189 = vector.load %arg2[%c0_168, %c0_169] : memref<27x32xbf16, #tpu.memory_space<vmem>>, vector<27x32xbf16>
    %cst_170 = arith.constant dense<0.000000e+00> : vector<60x32xf32>
    %190 = tpu.matmul %188, %189, %cst_170 {dimension_numbers = #tpu.dot_dimension_numbers<[1], [0], [0], [1], [0, 0, 1, 1], [], []>} : vector<60x27xbf16>, vector<27x32xbf16>, vector<60x32xf32> -> vector<60x32xf32>
    %c0_171 = arith.constant 0 : index
    %c0_172 = arith.constant 0 : index
    %191 = vector.load %arg3[%c0_171, %c0_172] : memref<1x32xf32, #tpu.memory_space<vmem>>, vector<1x32xf32>
    %192 = vector.extract_strided_slice %190 {offsets = [0, 0], sizes = [30, 32], strides = [1, 1]} : vector<60x32xf32> to vector<30x32xf32>
    %193 = vector.extract_strided_slice %190 {offsets = [30, 0], sizes = [30, 32], strides = [1, 1]} : vector<60x32xf32> to vector<30x32xf32>
    %194 = arith.maximumf %192, %193 : vector<30x32xf32>
    %c0_173 = arith.constant 0 : index
    %c0_174 = arith.constant 0 : index
    %195 = vector.load %arg16[%c0_173, %c0_174] : memref<30x32xf32, #tpu.memory_space<vmem>>, vector<30x32xf32>
    tpu.vector_store %arg16[%c0_173, %c0_174], %194 {strides = array<i32>} : memref<30x32xf32, #tpu.memory_space<vmem>>, vector<30x32xf32>,
    %c0_175 = arith.constant 0 : index
    %c0_176 = arith.constant 0 : index
    %196 = tpu.strided_load %arg16[%c0_175, %c0_176] {strides = array<i32: 2, 1>} : memref<30x32xf32, #tpu.memory_space<vmem>>, vector<15x32xf32>
    %c1_177 = arith.constant 1 : index
    %c0_178 = arith.constant 0 : index
    %197 = tpu.strided_load %arg16[%c1_177, %c0_178] {strides = array<i32: 2, 1>} : memref<30x32xf32, #tpu.memory_space<vmem>>, vector<15x32xf32>
    %198 = arith.maximumf %196, %197 : vector<15x32xf32>
    %199 = vector.broadcast %191 : vector<1x32xf32> to vector<15x32xf32>
    %200 = arith.addf %198, %199 : vector<15x32xf32>
    %cst_179 = arith.constant 0.000000e+00 : f32
    %201 = vector.broadcast %cst_179 : f32 to vector<15x32xf32>
    %202 = arith.maximumf %200, %201 : vector<15x32xf32>
    %c165 = arith.constant 165 : index
    %c0_180 = arith.constant 0 : index
    %203 = vector.load %arg13[%c165, %c0_180] : memref<225x32xf32, #tpu.memory_space<vmem>>, vector<15x32xf32>
    tpu.vector_store %arg13[%c165, %c0_180], %202 {strides = array<i32>} : memref<225x32xf32, #tpu.memory_space<vmem>>, vector<15x32xf32>,
    %c0_181 = arith.constant 0 : index
    %c720 = arith.constant 720 : index
    %c0_182 = arith.constant 0 : index
    %204 = vector.load %arg1[%c0_181, %c720, %c0_182] : memref<1x900x27xbf16, #tpu.memory_space<vmem>>, vector<1x60x27xbf16>
    %205 = vector.shape_cast %204 : vector<1x60x27xbf16> to vector<60x27xbf16>
    %c0_183 = arith.constant 0 : index
    %c0_184 = arith.constant 0 : index
    %206 = vector.load %arg2[%c0_183, %c0_184] : memref<27x32xbf16, #tpu.memory_space<vmem>>, vector<27x32xbf16>
    %cst_185 = arith.constant dense<0.000000e+00> : vector<60x32xf32>
    %207 = tpu.matmul %205, %206, %cst_185 {dimension_numbers = #tpu.dot_dimension_numbers<[1], [0], [0], [1], [0, 0, 1, 1], [], []>} : vector<60x27xbf16>, vector<27x32xbf16>, vector<60x32xf32> -> vector<60x32xf32>
    %c0_186 = arith.constant 0 : index
    %c0_187 = arith.constant 0 : index
    %208 = vector.load %arg3[%c0_186, %c0_187] : memref<1x32xf32, #tpu.memory_space<vmem>>, vector<1x32xf32>
    %209 = vector.extract_strided_slice %207 {offsets = [0, 0], sizes = [30, 32], strides = [1, 1]} : vector<60x32xf32> to vector<30x32xf32>
    %210 = vector.extract_strided_slice %207 {offsets = [30, 0], sizes = [30, 32], strides = [1, 1]} : vector<60x32xf32> to vector<30x32xf32>
    %211 = arith.maximumf %209, %210 : vector<30x32xf32>
    %c0_188 = arith.constant 0 : index
    %c0_189 = arith.constant 0 : index
    %212 = vector.load %arg16[%c0_188, %c0_189] : memref<30x32xf32, #tpu.memory_space<vmem>>, vector<30x32xf32>
    tpu.vector_store %arg16[%c0_188, %c0_189], %211 {strides = array<i32>} : memref<30x32xf32, #tpu.memory_space<vmem>>, vector<30x32xf32>,
    %c0_190 = arith.constant 0 : index
    %c0_191 = arith.constant 0 : index
    %213 = tpu.strided_load %arg16[%c0_190, %c0_191] {strides = array<i32: 2, 1>} : memref<30x32xf32, #tpu.memory_space<vmem>>, vector<15x32xf32>
    %c1_192 = arith.constant 1 : index
    %c0_193 = arith.constant 0 : index
    %214 = tpu.strided_load %arg16[%c1_192, %c0_193] {strides = array<i32: 2, 1>} : memref<30x32xf32, #tpu.memory_space<vmem>>, vector<15x32xf32>
    %215 = arith.maximumf %213, %214 : vector<15x32xf32>
    %216 = vector.broadcast %208 : vector<1x32xf32> to vector<15x32xf32>
    %217 = arith.addf %215, %216 : vector<15x32xf32>
    %cst_194 = arith.constant 0.000000e+00 : f32
    %218 = vector.broadcast %cst_194 : f32 to vector<15x32xf32>
    %219 = arith.maximumf %217, %218 : vector<15x32xf32>
    %c180_195 = arith.constant 180 : index
    %c0_196 = arith.constant 0 : index
    %220 = vector.load %arg13[%c180_195, %c0_196] : memref<225x32xf32, #tpu.memory_space<vmem>>, vector<15x32xf32>
    tpu.vector_store %arg13[%c180_195, %c0_196], %219 {strides = array<i32>} : memref<225x32xf32, #tpu.memory_space<vmem>>, vector<15x32xf32>,
    %c0_197 = arith.constant 0 : index
    %c780 = arith.constant 780 : index
    %c0_198 = arith.constant 0 : index
    %221 = vector.load %arg1[%c0_197, %c780, %c0_198] : memref<1x900x27xbf16, #tpu.memory_space<vmem>>, vector<1x60x27xbf16>
    %222 = vector.shape_cast %221 : vector<1x60x27xbf16> to vector<60x27xbf16>
    %c0_199 = arith.constant 0 : index
    %c0_200 = arith.constant 0 : index
    %223 = vector.load %arg2[%c0_199, %c0_200] : memref<27x32xbf16, #tpu.memory_space<vmem>>, vector<27x32xbf16>
    %cst_201 = arith.constant dense<0.000000e+00> : vector<60x32xf32>
    %224 = tpu.matmul %222, %223, %cst_201 {dimension_numbers = #tpu.dot_dimension_numbers<[1], [0], [0], [1], [0, 0, 1, 1], [], []>} : vector<60x27xbf16>, vector<27x32xbf16>, vector<60x32xf32> -> vector<60x32xf32>
    %c0_202 = arith.constant 0 : index
    %c0_203 = arith.constant 0 : index
    %225 = vector.load %arg3[%c0_202, %c0_203] : memref<1x32xf32, #tpu.memory_space<vmem>>, vector<1x32xf32>
    %226 = vector.extract_strided_slice %224 {offsets = [0, 0], sizes = [30, 32], strides = [1, 1]} : vector<60x32xf32> to vector<30x32xf32>
    %227 = vector.extract_strided_slice %224 {offsets = [30, 0], sizes = [30, 32], strides = [1, 1]} : vector<60x32xf32> to vector<30x32xf32>
    %228 = arith.maximumf %226, %227 : vector<30x32xf32>
    %c0_204 = arith.constant 0 : index
    %c0_205 = arith.constant 0 : index
    %229 = vector.load %arg16[%c0_204, %c0_205] : memref<30x32xf32, #tpu.memory_space<vmem>>, vector<30x32xf32>
    tpu.vector_store %arg16[%c0_204, %c0_205], %228 {strides = array<i32>} : memref<30x32xf32, #tpu.memory_space<vmem>>, vector<30x32xf32>,
    %c0_206 = arith.constant 0 : index
    %c0_207 = arith.constant 0 : index
    %230 = tpu.strided_load %arg16[%c0_206, %c0_207] {strides = array<i32: 2, 1>} : memref<30x32xf32, #tpu.memory_space<vmem>>, vector<15x32xf32>
    %c1_208 = arith.constant 1 : index
    %c0_209 = arith.constant 0 : index
    %231 = tpu.strided_load %arg16[%c1_208, %c0_209] {strides = array<i32: 2, 1>} : memref<30x32xf32, #tpu.memory_space<vmem>>, vector<15x32xf32>
    %232 = arith.maximumf %230, %231 : vector<15x32xf32>
    %233 = vector.broadcast %225 : vector<1x32xf32> to vector<15x32xf32>
    %234 = arith.addf %232, %233 : vector<15x32xf32>
    %cst_210 = arith.constant 0.000000e+00 : f32
    %235 = vector.broadcast %cst_210 : f32 to vector<15x32xf32>
    %236 = arith.maximumf %234, %235 : vector<15x32xf32>
    %c195 = arith.constant 195 : index
    %c0_211 = arith.constant 0 : index
    %237 = vector.load %arg13[%c195, %c0_211] : memref<225x32xf32, #tpu.memory_space<vmem>>, vector<15x32xf32>
    tpu.vector_store %arg13[%c195, %c0_211], %236 {strides = array<i32>} : memref<225x32xf32, #tpu.memory_space<vmem>>, vector<15x32xf32>,
    %c0_212 = arith.constant 0 : index
    %c840 = arith.constant 840 : index
    %c0_213 = arith.constant 0 : index
    %238 = vector.load %arg1[%c0_212, %c840, %c0_213] : memref<1x900x27xbf16, #tpu.memory_space<vmem>>, vector<1x60x27xbf16>
    %239 = vector.shape_cast %238 : vector<1x60x27xbf16> to vector<60x27xbf16>
    %c0_214 = arith.constant 0 : index
    %c0_215 = arith.constant 0 : index
    %240 = vector.load %arg2[%c0_214, %c0_215] : memref<27x32xbf16, #tpu.memory_space<vmem>>, vector<27x32xbf16>
    %cst_216 = arith.constant dense<0.000000e+00> : vector<60x32xf32>
    %241 = tpu.matmul %239, %240, %cst_216 {dimension_numbers = #tpu.dot_dimension_numbers<[1], [0], [0], [1], [0, 0, 1, 1], [], []>} : vector<60x27xbf16>, vector<27x32xbf16>, vector<60x32xf32> -> vector<60x32xf32>
    %c0_217 = arith.constant 0 : index
    %c0_218 = arith.constant 0 : index
    %242 = vector.load %arg3[%c0_217, %c0_218] : memref<1x32xf32, #tpu.memory_space<vmem>>, vector<1x32xf32>
    %243 = vector.extract_strided_slice %241 {offsets = [0, 0], sizes = [30, 32], strides = [1, 1]} : vector<60x32xf32> to vector<30x32xf32>
    %244 = vector.extract_strided_slice %241 {offsets = [30, 0], sizes = [30, 32], strides = [1, 1]} : vector<60x32xf32> to vector<30x32xf32>
    %245 = arith.maximumf %243, %244 : vector<30x32xf32>
    %c0_219 = arith.constant 0 : index
    %c0_220 = arith.constant 0 : index
    %246 = vector.load %arg16[%c0_219, %c0_220] : memref<30x32xf32, #tpu.memory_space<vmem>>, vector<30x32xf32>
    tpu.vector_store %arg16[%c0_219, %c0_220], %245 {strides = array<i32>} : memref<30x32xf32, #tpu.memory_space<vmem>>, vector<30x32xf32>,
    %c0_221 = arith.constant 0 : index
    %c0_222 = arith.constant 0 : index
    %247 = tpu.strided_load %arg16[%c0_221, %c0_222] {strides = array<i32: 2, 1>} : memref<30x32xf32, #tpu.memory_space<vmem>>, vector<15x32xf32>
    %c1_223 = arith.constant 1 : index
    %c0_224 = arith.constant 0 : index
    %248 = tpu.strided_load %arg16[%c1_223, %c0_224] {strides = array<i32: 2, 1>} : memref<30x32xf32, #tpu.memory_space<vmem>>, vector<15x32xf32>
    %249 = arith.maximumf %247, %248 : vector<15x32xf32>
    %250 = vector.broadcast %242 : vector<1x32xf32> to vector<15x32xf32>
    %251 = arith.addf %249, %250 : vector<15x32xf32>
    %cst_225 = arith.constant 0.000000e+00 : f32
    %252 = vector.broadcast %cst_225 : f32 to vector<15x32xf32>
    %253 = arith.maximumf %251, %252 : vector<15x32xf32>
    %c210 = arith.constant 210 : index
    %c0_226 = arith.constant 0 : index
    %254 = vector.load %arg13[%c210, %c0_226] : memref<225x32xf32, #tpu.memory_space<vmem>>, vector<15x32xf32>
    tpu.vector_store %arg13[%c210, %c0_226], %253 {strides = array<i32>} : memref<225x32xf32, #tpu.memory_space<vmem>>, vector<15x32xf32>,
    %c0_227 = arith.constant 0 : index
    %c0_228 = arith.constant 0 : index
    %255 = vector.load %arg13[%c0_227, %c0_228] : memref<225x32xf32, #tpu.memory_space<vmem>>, vector<15x32xf32>
    %c15_229 = arith.constant 15 : index
    %c0_230 = arith.constant 0 : index
    %256 = vector.load %arg13[%c15_229, %c0_230] : memref<225x32xf32, #tpu.memory_space<vmem>>, vector<15x32xf32>
    %c30_231 = arith.constant 30 : index
    %c0_232 = arith.constant 0 : index
    %257 = vector.load %arg13[%c30_231, %c0_232] : memref<225x32xf32, #tpu.memory_space<vmem>>, vector<15x32xf32>
    %c45_233 = arith.constant 45 : index
    %c0_234 = arith.constant 0 : index
    %258 = vector.load %arg13[%c45_233, %c0_234] : memref<225x32xf32, #tpu.memory_space<vmem>>, vector<15x32xf32>
    %259 = vector.extract_strided_slice %255 {offsets = [0, 0], sizes = [12, 32], strides = [1, 1]} : vector<15x32xf32> to vector<12x32xf32>
    %260 = vector.extract_strided_slice %256 {offsets = [0, 0], sizes = [12, 32], strides = [1, 1]} : vector<15x32xf32> to vector<12x32xf32>
    %261 = tpu.concatenate %259, %260 in 0 : vector<12x32xf32>, vector<12x32xf32> -> vector<24x32xf32>
    %262 = arith.truncf %261 : vector<24x32xf32> to vector<24x32xbf16>
    %263 = vector.extract_strided_slice %255 {offsets = [1, 0], sizes = [12, 32], strides = [1, 1]} : vector<15x32xf32> to vector<12x32xf32>
    %264 = vector.extract_strided_slice %256 {offsets = [1, 0], sizes = [12, 32], strides = [1, 1]} : vector<15x32xf32> to vector<12x32xf32>
    %265 = tpu.concatenate %263, %264 in 0 : vector<12x32xf32>, vector<12x32xf32> -> vector<24x32xf32>
    %266 = arith.truncf %265 : vector<24x32xf32> to vector<24x32xbf16>
    %267 = vector.extract_strided_slice %255 {offsets = [2, 0], sizes = [12, 32], strides = [1, 1]} : vector<15x32xf32> to vector<12x32xf32>
    %268 = vector.extract_strided_slice %256 {offsets = [2, 0], sizes = [12, 32], strides = [1, 1]} : vector<15x32xf32> to vector<12x32xf32>
    %269 = tpu.concatenate %267, %268 in 0 : vector<12x32xf32>, vector<12x32xf32> -> vector<24x32xf32>
    %270 = arith.truncf %269 : vector<24x32xf32> to vector<24x32xbf16>
    %271 = vector.extract_strided_slice %256 {offsets = [0, 0], sizes = [12, 32], strides = [1, 1]} : vector<15x32xf32> to vector<12x32xf32>
    %272 = vector.extract_strided_slice %257 {offsets = [0, 0], sizes = [12, 32], strides = [1, 1]} : vector<15x32xf32> to vector<12x32xf32>
    %273 = tpu.concatenate %271, %272 in 0 : vector<12x32xf32>, vector<12x32xf32> -> vector<24x32xf32>
    %274 = arith.truncf %273 : vector<24x32xf32> to vector<24x32xbf16>
    %275 = vector.extract_strided_slice %256 {offsets = [1, 0], sizes = [12, 32], strides = [1, 1]} : vector<15x32xf32> to vector<12x32xf32>
    %276 = vector.extract_strided_slice %257 {offsets = [1, 0], sizes = [12, 32], strides = [1, 1]} : vector<15x32xf32> to vector<12x32xf32>
    %277 = tpu.concatenate %275, %276 in 0 : vector<12x32xf32>, vector<12x32xf32> -> vector<24x32xf32>
    %278 = arith.truncf %277 : vector<24x32xf32> to vector<24x32xbf16>
    %279 = vector.extract_strided_slice %256 {offsets = [2, 0], sizes = [12, 32], strides = [1, 1]} : vector<15x32xf32> to vector<12x32xf32>
    %280 = vector.extract_strided_slice %257 {offsets = [2, 0], sizes = [12, 32], strides = [1, 1]} : vector<15x32xf32> to vector<12x32xf32>
    %281 = tpu.concatenate %279, %280 in 0 : vector<12x32xf32>, vector<12x32xf32> -> vector<24x32xf32>
    %282 = arith.truncf %281 : vector<24x32xf32> to vector<24x32xbf16>
    %283 = vector.extract_strided_slice %257 {offsets = [0, 0], sizes = [12, 32], strides = [1, 1]} : vector<15x32xf32> to vector<12x32xf32>
    %284 = vector.extract_strided_slice %258 {offsets = [0, 0], sizes = [12, 32], strides = [1, 1]} : vector<15x32xf32> to vector<12x32xf32>
    %285 = tpu.concatenate %283, %284 in 0 : vector<12x32xf32>, vector<12x32xf32> -> vector<24x32xf32>
    %286 = arith.truncf %285 : vector<24x32xf32> to vector<24x32xbf16>
    %287 = vector.extract_strided_slice %257 {offsets = [1, 0], sizes = [12, 32], strides = [1, 1]} : vector<15x32xf32> to vector<12x32xf32>
    %288 = vector.extract_strided_slice %258 {offsets = [1, 0], sizes = [12, 32], strides = [1, 1]} : vector<15x32xf32> to vector<12x32xf32>
    %289 = tpu.concatenate %287, %288 in 0 : vector<12x32xf32>, vector<12x32xf32> -> vector<24x32xf32>
    %290 = arith.truncf %289 : vector<24x32xf32> to vector<24x32xbf16>
    %291 = vector.extract_strided_slice %257 {offsets = [2, 0], sizes = [12, 32], strides = [1, 1]} : vector<15x32xf32> to vector<12x32xf32>
    %292 = vector.extract_strided_slice %258 {offsets = [2, 0], sizes = [12, 32], strides = [1, 1]} : vector<15x32xf32> to vector<12x32xf32>
    %293 = tpu.concatenate %291, %292 in 0 : vector<12x32xf32>, vector<12x32xf32> -> vector<24x32xf32>
    %294 = arith.truncf %293 : vector<24x32xf32> to vector<24x32xbf16>
    %295 = tpu.concatenate %262, %266, %270, %274, %278, %282, %286, %290, %294 in 1 : vector<24x32xbf16>, vector<24x32xbf16>, vector<24x32xbf16>, vector<24x32xbf16>, vector<24x32xbf16>, vector<24x32xbf16>, vector<24x32xbf16>, vector<24x32xbf16>, vector<24x32xbf16> -> vector<24x288xbf16>
    %c0_235 = arith.constant 0 : index
    %c0_236 = arith.constant 0 : index
    %296 = vector.load %arg4[%c0_235, %c0_236] : memref<288x64xbf16, #tpu.memory_space<vmem>>, vector<288x64xbf16>
    %cst_237 = arith.constant dense<0.000000e+00> : vector<24x64xf32>
    %297 = tpu.matmul %295, %296, %cst_237 {dimension_numbers = #tpu.dot_dimension_numbers<[1], [0], [0], [1], [0, 0, 1, 1], [], []>} : vector<24x288xbf16>, vector<288x64xbf16>, vector<24x64xf32> -> vector<24x64xf32>
    %c0_238 = arith.constant 0 : index
    %c0_239 = arith.constant 0 : index
    %298 = vector.load %arg5[%c0_238, %c0_239] : memref<1x64xf32, #tpu.memory_space<vmem>>, vector<1x64xf32>
    %299 = vector.extract_strided_slice %297 {offsets = [0, 0], sizes = [12, 64], strides = [1, 1]} : vector<24x64xf32> to vector<12x64xf32>
    %300 = vector.extract_strided_slice %297 {offsets = [12, 0], sizes = [12, 64], strides = [1, 1]} : vector<24x64xf32> to vector<12x64xf32>
    %301 = arith.maximumf %299, %300 : vector<12x64xf32>
    %c0_240 = arith.constant 0 : index
    %c0_241 = arith.constant 0 : index
    %302 = vector.load %arg17[%c0_240, %c0_241] : memref<12x64xf32, #tpu.memory_space<vmem>>, vector<12x64xf32>
    tpu.vector_store %arg17[%c0_240, %c0_241], %301 {strides = array<i32>} : memref<12x64xf32, #tpu.memory_space<vmem>>, vector<12x64xf32>,
    %c0_242 = arith.constant 0 : index
    %c0_243 = arith.constant 0 : index
    %303 = tpu.strided_load %arg17[%c0_242, %c0_243] {strides = array<i32: 2, 1>} : memref<12x64xf32, #tpu.memory_space<vmem>>, vector<6x64xf32>
    %c1_244 = arith.constant 1 : index
    %c0_245 = arith.constant 0 : index
    %304 = tpu.strided_load %arg17[%c1_244, %c0_245] {strides = array<i32: 2, 1>} : memref<12x64xf32, #tpu.memory_space<vmem>>, vector<6x64xf32>
    %305 = arith.maximumf %303, %304 : vector<6x64xf32>
    %306 = vector.broadcast %298 : vector<1x64xf32> to vector<6x64xf32>
    %307 = arith.addf %305, %306 : vector<6x64xf32>
    %cst_246 = arith.constant 0.000000e+00 : f32
    %308 = vector.broadcast %cst_246 : f32 to vector<6x64xf32>
    %309 = arith.maximumf %307, %308 : vector<6x64xf32>
    %c0_247 = arith.constant 0 : index
    %c0_248 = arith.constant 0 : index
    %310 = vector.load %arg14[%c0_247, %c0_248] : memref<36x64xf32, #tpu.memory_space<vmem>>, vector<6x64xf32>
    tpu.vector_store %arg14[%c0_247, %c0_248], %309 {strides = array<i32>} : memref<36x64xf32, #tpu.memory_space<vmem>>, vector<6x64xf32>,
    %c30_249 = arith.constant 30 : index
    %c0_250 = arith.constant 0 : index
    %311 = vector.load %arg13[%c30_249, %c0_250] : memref<225x32xf32, #tpu.memory_space<vmem>>, vector<15x32xf32>
    %c45_251 = arith.constant 45 : index
    %c0_252 = arith.constant 0 : index
    %312 = vector.load %arg13[%c45_251, %c0_252] : memref<225x32xf32, #tpu.memory_space<vmem>>, vector<15x32xf32>
    %c60_253 = arith.constant 60 : index
    %c0_254 = arith.constant 0 : index
    %313 = vector.load %arg13[%c60_253, %c0_254] : memref<225x32xf32, #tpu.memory_space<vmem>>, vector<15x32xf32>
    %c75_255 = arith.constant 75 : index
    %c0_256 = arith.constant 0 : index
    %314 = vector.load %arg13[%c75_255, %c0_256] : memref<225x32xf32, #tpu.memory_space<vmem>>, vector<15x32xf32>
    %315 = vector.extract_strided_slice %311 {offsets = [0, 0], sizes = [12, 32], strides = [1, 1]} : vector<15x32xf32> to vector<12x32xf32>
    %316 = vector.extract_strided_slice %312 {offsets = [0, 0], sizes = [12, 32], strides = [1, 1]} : vector<15x32xf32> to vector<12x32xf32>
    %317 = tpu.concatenate %315, %316 in 0 : vector<12x32xf32>, vector<12x32xf32> -> vector<24x32xf32>
    %318 = arith.truncf %317 : vector<24x32xf32> to vector<24x32xbf16>
    %319 = vector.extract_strided_slice %311 {offsets = [1, 0], sizes = [12, 32], strides = [1, 1]} : vector<15x32xf32> to vector<12x32xf32>
    %320 = vector.extract_strided_slice %312 {offsets = [1, 0], sizes = [12, 32], strides = [1, 1]} : vector<15x32xf32> to vector<12x32xf32>
    %321 = tpu.concatenate %319, %320 in 0 : vector<12x32xf32>, vector<12x32xf32> -> vector<24x32xf32>
    %322 = arith.truncf %321 : vector<24x32xf32> to vector<24x32xbf16>
    %323 = vector.extract_strided_slice %311 {offsets = [2, 0], sizes = [12, 32], strides = [1, 1]} : vector<15x32xf32> to vector<12x32xf32>
    %324 = vector.extract_strided_slice %312 {offsets = [2, 0], sizes = [12, 32], strides = [1, 1]} : vector<15x32xf32> to vector<12x32xf32>
    %325 = tpu.concatenate %323, %324 in 0 : vector<12x32xf32>, vector<12x32xf32> -> vector<24x32xf32>
    %326 = arith.truncf %325 : vector<24x32xf32> to vector<24x32xbf16>
    %327 = vector.extract_strided_slice %312 {offsets = [0, 0], sizes = [12, 32], strides = [1, 1]} : vector<15x32xf32> to vector<12x32xf32>
    %328 = vector.extract_strided_slice %313 {offsets = [0, 0], sizes = [12, 32], strides = [1, 1]} : vector<15x32xf32> to vector<12x32xf32>
    %329 = tpu.concatenate %327, %328 in 0 : vector<12x32xf32>, vector<12x32xf32> -> vector<24x32xf32>
    %330 = arith.truncf %329 : vector<24x32xf32> to vector<24x32xbf16>
    %331 = vector.extract_strided_slice %312 {offsets = [1, 0], sizes = [12, 32], strides = [1, 1]} : vector<15x32xf32> to vector<12x32xf32>
    %332 = vector.extract_strided_slice %313 {offsets = [1, 0], sizes = [12, 32], strides = [1, 1]} : vector<15x32xf32> to vector<12x32xf32>
    %333 = tpu.concatenate %331, %332 in 0 : vector<12x32xf32>, vector<12x32xf32> -> vector<24x32xf32>
    %334 = arith.truncf %333 : vector<24x32xf32> to vector<24x32xbf16>
    %335 = vector.extract_strided_slice %312 {offsets = [2, 0], sizes = [12, 32], strides = [1, 1]} : vector<15x32xf32> to vector<12x32xf32>
    %336 = vector.extract_strided_slice %313 {offsets = [2, 0], sizes = [12, 32], strides = [1, 1]} : vector<15x32xf32> to vector<12x32xf32>
    %337 = tpu.concatenate %335, %336 in 0 : vector<12x32xf32>, vector<12x32xf32> -> vector<24x32xf32>
    %338 = arith.truncf %337 : vector<24x32xf32> to vector<24x32xbf16>
    %339 = vector.extract_strided_slice %313 {offsets = [0, 0], sizes = [12, 32], strides = [1, 1]} : vector<15x32xf32> to vector<12x32xf32>
    %340 = vector.extract_strided_slice %314 {offsets = [0, 0], sizes = [12, 32], strides = [1, 1]} : vector<15x32xf32> to vector<12x32xf32>
    %341 = tpu.concatenate %339, %340 in 0 : vector<12x32xf32>, vector<12x32xf32> -> vector<24x32xf32>
    %342 = arith.truncf %341 : vector<24x32xf32> to vector<24x32xbf16>
    %343 = vector.extract_strided_slice %313 {offsets = [1, 0], sizes = [12, 32], strides = [1, 1]} : vector<15x32xf32> to vector<12x32xf32>
    %344 = vector.extract_strided_slice %314 {offsets = [1, 0], sizes = [12, 32], strides = [1, 1]} : vector<15x32xf32> to vector<12x32xf32>
    %345 = tpu.concatenate %343, %344 in 0 : vector<12x32xf32>, vector<12x32xf32> -> vector<24x32xf32>
    %346 = arith.truncf %345 : vector<24x32xf32> to vector<24x32xbf16>
    %347 = vector.extract_strided_slice %313 {offsets = [2, 0], sizes = [12, 32], strides = [1, 1]} : vector<15x32xf32> to vector<12x32xf32>
    %348 = vector.extract_strided_slice %314 {offsets = [2, 0], sizes = [12, 32], strides = [1, 1]} : vector<15x32xf32> to vector<12x32xf32>
    %349 = tpu.concatenate %347, %348 in 0 : vector<12x32xf32>, vector<12x32xf32> -> vector<24x32xf32>
    %350 = arith.truncf %349 : vector<24x32xf32> to vector<24x32xbf16>
    %351 = tpu.concatenate %318, %322, %326, %330, %334, %338, %342, %346, %350 in 1 : vector<24x32xbf16>, vector<24x32xbf16>, vector<24x32xbf16>, vector<24x32xbf16>, vector<24x32xbf16>, vector<24x32xbf16>, vector<24x32xbf16>, vector<24x32xbf16>, vector<24x32xbf16> -> vector<24x288xbf16>
    %c0_257 = arith.constant 0 : index
    %c0_258 = arith.constant 0 : index
    %352 = vector.load %arg4[%c0_257, %c0_258] : memref<288x64xbf16, #tpu.memory_space<vmem>>, vector<288x64xbf16>
    %cst_259 = arith.constant dense<0.000000e+00> : vector<24x64xf32>
    %353 = tpu.matmul %351, %352, %cst_259 {dimension_numbers = #tpu.dot_dimension_numbers<[1], [0], [0], [1], [0, 0, 1, 1], [], []>} : vector<24x288xbf16>, vector<288x64xbf16>, vector<24x64xf32> -> vector<24x64xf32>
    %c0_260 = arith.constant 0 : index
    %c0_261 = arith.constant 0 : index
    %354 = vector.load %arg5[%c0_260, %c0_261] : memref<1x64xf32, #tpu.memory_space<vmem>>, vector<1x64xf32>
    %355 = vector.extract_strided_slice %353 {offsets = [0, 0], sizes = [12, 64], strides = [1, 1]} : vector<24x64xf32> to vector<12x64xf32>
    %356 = vector.extract_strided_slice %353 {offsets = [12, 0], sizes = [12, 64], strides = [1, 1]} : vector<24x64xf32> to vector<12x64xf32>
    %357 = arith.maximumf %355, %356 : vector<12x64xf32>
    %c0_262 = arith.constant 0 : index
    %c0_263 = arith.constant 0 : index
    %358 = vector.load %arg17[%c0_262, %c0_263] : memref<12x64xf32, #tpu.memory_space<vmem>>, vector<12x64xf32>
    tpu.vector_store %arg17[%c0_262, %c0_263], %357 {strides = array<i32>} : memref<12x64xf32, #tpu.memory_space<vmem>>, vector<12x64xf32>,
    %c0_264 = arith.constant 0 : index
    %c0_265 = arith.constant 0 : index
    %359 = tpu.strided_load %arg17[%c0_264, %c0_265] {strides = array<i32: 2, 1>} : memref<12x64xf32, #tpu.memory_space<vmem>>, vector<6x64xf32>
    %c1_266 = arith.constant 1 : index
    %c0_267 = arith.constant 0 : index
    %360 = tpu.strided_load %arg17[%c1_266, %c0_267] {strides = array<i32: 2, 1>} : memref<12x64xf32, #tpu.memory_space<vmem>>, vector<6x64xf32>
    %361 = arith.maximumf %359, %360 : vector<6x64xf32>
    %362 = vector.broadcast %354 : vector<1x64xf32> to vector<6x64xf32>
    %363 = arith.addf %361, %362 : vector<6x64xf32>
    %cst_268 = arith.constant 0.000000e+00 : f32
    %364 = vector.broadcast %cst_268 : f32 to vector<6x64xf32>
    %365 = arith.maximumf %363, %364 : vector<6x64xf32>
    %c6 = arith.constant 6 : index
    %c0_269 = arith.constant 0 : index
    %366 = vector.load %arg14[%c6, %c0_269] : memref<36x64xf32, #tpu.memory_space<vmem>>, vector<6x64xf32>
    tpu.vector_store %arg14[%c6, %c0_269], %365 {strides = array<i32>} : memref<36x64xf32, #tpu.memory_space<vmem>>, vector<6x64xf32>,
    %c60_270 = arith.constant 60 : index
    %c0_271 = arith.constant 0 : index
    %367 = vector.load %arg13[%c60_270, %c0_271] : memref<225x32xf32, #tpu.memory_space<vmem>>, vector<15x32xf32>
    %c75_272 = arith.constant 75 : index
    %c0_273 = arith.constant 0 : index
    %368 = vector.load %arg13[%c75_272, %c0_273] : memref<225x32xf32, #tpu.memory_space<vmem>>, vector<15x32xf32>
    %c90_274 = arith.constant 90 : index
    %c0_275 = arith.constant 0 : index
    %369 = vector.load %arg13[%c90_274, %c0_275] : memref<225x32xf32, #tpu.memory_space<vmem>>, vector<15x32xf32>
    %c105_276 = arith.constant 105 : index
    %c0_277 = arith.constant 0 : index
    %370 = vector.load %arg13[%c105_276, %c0_277] : memref<225x32xf32, #tpu.memory_space<vmem>>, vector<15x32xf32>
    %371 = vector.extract_strided_slice %367 {offsets = [0, 0], sizes = [12, 32], strides = [1, 1]} : vector<15x32xf32> to vector<12x32xf32>
    %372 = vector.extract_strided_slice %368 {offsets = [0, 0], sizes = [12, 32], strides = [1, 1]} : vector<15x32xf32> to vector<12x32xf32>
    %373 = tpu.concatenate %371, %372 in 0 : vector<12x32xf32>, vector<12x32xf32> -> vector<24x32xf32>
    %374 = arith.truncf %373 : vector<24x32xf32> to vector<24x32xbf16>
    %375 = vector.extract_strided_slice %367 {offsets = [1, 0], sizes = [12, 32], strides = [1, 1]} : vector<15x32xf32> to vector<12x32xf32>
    %376 = vector.extract_strided_slice %368 {offsets = [1, 0], sizes = [12, 32], strides = [1, 1]} : vector<15x32xf32> to vector<12x32xf32>
    %377 = tpu.concatenate %375, %376 in 0 : vector<12x32xf32>, vector<12x32xf32> -> vector<24x32xf32>
    %378 = arith.truncf %377 : vector<24x32xf32> to vector<24x32xbf16>
    %379 = vector.extract_strided_slice %367 {offsets = [2, 0], sizes = [12, 32], strides = [1, 1]} : vector<15x32xf32> to vector<12x32xf32>
    %380 = vector.extract_strided_slice %368 {offsets = [2, 0], sizes = [12, 32], strides = [1, 1]} : vector<15x32xf32> to vector<12x32xf32>
    %381 = tpu.concatenate %379, %380 in 0 : vector<12x32xf32>, vector<12x32xf32> -> vector<24x32xf32>
    %382 = arith.truncf %381 : vector<24x32xf32> to vector<24x32xbf16>
    %383 = vector.extract_strided_slice %368 {offsets = [0, 0], sizes = [12, 32], strides = [1, 1]} : vector<15x32xf32> to vector<12x32xf32>
    %384 = vector.extract_strided_slice %369 {offsets = [0, 0], sizes = [12, 32], strides = [1, 1]} : vector<15x32xf32> to vector<12x32xf32>
    %385 = tpu.concatenate %383, %384 in 0 : vector<12x32xf32>, vector<12x32xf32> -> vector<24x32xf32>
    %386 = arith.truncf %385 : vector<24x32xf32> to vector<24x32xbf16>
    %387 = vector.extract_strided_slice %368 {offsets = [1, 0], sizes = [12, 32], strides = [1, 1]} : vector<15x32xf32> to vector<12x32xf32>
    %388 = vector.extract_strided_slice %369 {offsets = [1, 0], sizes = [12, 32], strides = [1, 1]} : vector<15x32xf32> to vector<12x32xf32>
    %389 = tpu.concatenate %387, %388 in 0 : vector<12x32xf32>, vector<12x32xf32> -> vector<24x32xf32>
    %390 = arith.truncf %389 : vector<24x32xf32> to vector<24x32xbf16>
    %391 = vector.extract_strided_slice %368 {offsets = [2, 0], sizes = [12, 32], strides = [1, 1]} : vector<15x32xf32> to vector<12x32xf32>
    %392 = vector.extract_strided_slice %369 {offsets = [2, 0], sizes = [12, 32], strides = [1, 1]} : vector<15x32xf32> to vector<12x32xf32>
    %393 = tpu.concatenate %391, %392 in 0 : vector<12x32xf32>, vector<12x32xf32> -> vector<24x32xf32>
    %394 = arith.truncf %393 : vector<24x32xf32> to vector<24x32xbf16>
    %395 = vector.extract_strided_slice %369 {offsets = [0, 0], sizes = [12, 32], strides = [1, 1]} : vector<15x32xf32> to vector<12x32xf32>
    %396 = vector.extract_strided_slice %370 {offsets = [0, 0], sizes = [12, 32], strides = [1, 1]} : vector<15x32xf32> to vector<12x32xf32>
    %397 = tpu.concatenate %395, %396 in 0 : vector<12x32xf32>, vector<12x32xf32> -> vector<24x32xf32>
    %398 = arith.truncf %397 : vector<24x32xf32> to vector<24x32xbf16>
    %399 = vector.extract_strided_slice %369 {offsets = [1, 0], sizes = [12, 32], strides = [1, 1]} : vector<15x32xf32> to vector<12x32xf32>
    %400 = vector.extract_strided_slice %370 {offsets = [1, 0], sizes = [12, 32], strides = [1, 1]} : vector<15x32xf32> to vector<12x32xf32>
    %401 = tpu.concatenate %399, %400 in 0 : vector<12x32xf32>, vector<12x32xf32> -> vector<24x32xf32>
    %402 = arith.truncf %401 : vector<24x32xf32> to vector<24x32xbf16>
    %403 = vector.extract_strided_slice %369 {offsets = [2, 0], sizes = [12, 32], strides = [1, 1]} : vector<15x32xf32> to vector<12x32xf32>
    %404 = vector.extract_strided_slice %370 {offsets = [2, 0], sizes = [12, 32], strides = [1, 1]} : vector<15x32xf32> to vector<12x32xf32>
    %405 = tpu.concatenate %403, %404 in 0 : vector<12x32xf32>, vector<12x32xf32> -> vector<24x32xf32>
    %406 = arith.truncf %405 : vector<24x32xf32> to vector<24x32xbf16>
    %407 = tpu.concatenate %374, %378, %382, %386, %390, %394, %398, %402, %406 in 1 : vector<24x32xbf16>, vector<24x32xbf16>, vector<24x32xbf16>, vector<24x32xbf16>, vector<24x32xbf16>, vector<24x32xbf16>, vector<24x32xbf16>, vector<24x32xbf16>, vector<24x32xbf16> -> vector<24x288xbf16>
    %c0_278 = arith.constant 0 : index
    %c0_279 = arith.constant 0 : index
    %408 = vector.load %arg4[%c0_278, %c0_279] : memref<288x64xbf16, #tpu.memory_space<vmem>>, vector<288x64xbf16>
    %cst_280 = arith.constant dense<0.000000e+00> : vector<24x64xf32>
    %409 = tpu.matmul %407, %408, %cst_280 {dimension_numbers = #tpu.dot_dimension_numbers<[1], [0], [0], [1], [0, 0, 1, 1], [], []>} : vector<24x288xbf16>, vector<288x64xbf16>, vector<24x64xf32> -> vector<24x64xf32>
    %c0_281 = arith.constant 0 : index
    %c0_282 = arith.constant 0 : index
    %410 = vector.load %arg5[%c0_281, %c0_282] : memref<1x64xf32, #tpu.memory_space<vmem>>, vector<1x64xf32>
    %411 = vector.extract_strided_slice %409 {offsets = [0, 0], sizes = [12, 64], strides = [1, 1]} : vector<24x64xf32> to vector<12x64xf32>
    %412 = vector.extract_strided_slice %409 {offsets = [12, 0], sizes = [12, 64], strides = [1, 1]} : vector<24x64xf32> to vector<12x64xf32>
    %413 = arith.maximumf %411, %412 : vector<12x64xf32>
    %c0_283 = arith.constant 0 : index
    %c0_284 = arith.constant 0 : index
    %414 = vector.load %arg17[%c0_283, %c0_284] : memref<12x64xf32, #tpu.memory_space<vmem>>, vector<12x64xf32>
    tpu.vector_store %arg17[%c0_283, %c0_284], %413 {strides = array<i32>} : memref<12x64xf32, #tpu.memory_space<vmem>>, vector<12x64xf32>,
    %c0_285 = arith.constant 0 : index
    %c0_286 = arith.constant 0 : index
    %415 = tpu.strided_load %arg17[%c0_285, %c0_286] {strides = array<i32: 2, 1>} : memref<12x64xf32, #tpu.memory_space<vmem>>, vector<6x64xf32>
    %c1_287 = arith.constant 1 : index
    %c0_288 = arith.constant 0 : index
    %416 = tpu.strided_load %arg17[%c1_287, %c0_288] {strides = array<i32: 2, 1>} : memref<12x64xf32, #tpu.memory_space<vmem>>, vector<6x64xf32>
    %417 = arith.maximumf %415, %416 : vector<6x64xf32>
    %418 = vector.broadcast %410 : vector<1x64xf32> to vector<6x64xf32>
    %419 = arith.addf %417, %418 : vector<6x64xf32>
    %cst_289 = arith.constant 0.000000e+00 : f32
    %420 = vector.broadcast %cst_289 : f32 to vector<6x64xf32>
    %421 = arith.maximumf %419, %420 : vector<6x64xf32>
    %c12 = arith.constant 12 : index
    %c0_290 = arith.constant 0 : index
    %422 = vector.load %arg14[%c12, %c0_290] : memref<36x64xf32, #tpu.memory_space<vmem>>, vector<6x64xf32>
    tpu.vector_store %arg14[%c12, %c0_290], %421 {strides = array<i32>} : memref<36x64xf32, #tpu.memory_space<vmem>>, vector<6x64xf32>,
    %c90_291 = arith.constant 90 : index
    %c0_292 = arith.constant 0 : index
    %423 = vector.load %arg13[%c90_291, %c0_292] : memref<225x32xf32, #tpu.memory_space<vmem>>, vector<15x32xf32>
    %c105_293 = arith.constant 105 : index
    %c0_294 = arith.constant 0 : index
    %424 = vector.load %arg13[%c105_293, %c0_294] : memref<225x32xf32, #tpu.memory_space<vmem>>, vector<15x32xf32>
    %c120_295 = arith.constant 120 : index
    %c0_296 = arith.constant 0 : index
    %425 = vector.load %arg13[%c120_295, %c0_296] : memref<225x32xf32, #tpu.memory_space<vmem>>, vector<15x32xf32>
    %c135_297 = arith.constant 135 : index
    %c0_298 = arith.constant 0 : index
    %426 = vector.load %arg13[%c135_297, %c0_298] : memref<225x32xf32, #tpu.memory_space<vmem>>, vector<15x32xf32>
    %427 = vector.extract_strided_slice %423 {offsets = [0, 0], sizes = [12, 32], strides = [1, 1]} : vector<15x32xf32> to vector<12x32xf32>
    %428 = vector.extract_strided_slice %424 {offsets = [0, 0], sizes = [12, 32], strides = [1, 1]} : vector<15x32xf32> to vector<12x32xf32>
    %429 = tpu.concatenate %427, %428 in 0 : vector<12x32xf32>, vector<12x32xf32> -> vector<24x32xf32>
    %430 = arith.truncf %429 : vector<24x32xf32> to vector<24x32xbf16>
    %431 = vector.extract_strided_slice %423 {offsets = [1, 0], sizes = [12, 32], strides = [1, 1]} : vector<15x32xf32> to vector<12x32xf32>
    %432 = vector.extract_strided_slice %424 {offsets = [1, 0], sizes = [12, 32], strides = [1, 1]} : vector<15x32xf32> to vector<12x32xf32>
    %433 = tpu.concatenate %431, %432 in 0 : vector<12x32xf32>, vector<12x32xf32> -> vector<24x32xf32>
    %434 = arith.truncf %433 : vector<24x32xf32> to vector<24x32xbf16>
    %435 = vector.extract_strided_slice %423 {offsets = [2, 0], sizes = [12, 32], strides = [1, 1]} : vector<15x32xf32> to vector<12x32xf32>
    %436 = vector.extract_strided_slice %424 {offsets = [2, 0], sizes = [12, 32], strides = [1, 1]} : vector<15x32xf32> to vector<12x32xf32>
    %437 = tpu.concatenate %435, %436 in 0 : vector<12x32xf32>, vector<12x32xf32> -> vector<24x32xf32>
    %438 = arith.truncf %437 : vector<24x32xf32> to vector<24x32xbf16>
    %439 = vector.extract_strided_slice %424 {offsets = [0, 0], sizes = [12, 32], strides = [1, 1]} : vector<15x32xf32> to vector<12x32xf32>
    %440 = vector.extract_strided_slice %425 {offsets = [0, 0], sizes = [12, 32], strides = [1, 1]} : vector<15x32xf32> to vector<12x32xf32>
    %441 = tpu.concatenate %439, %440 in 0 : vector<12x32xf32>, vector<12x32xf32> -> vector<24x32xf32>
    %442 = arith.truncf %441 : vector<24x32xf32> to vector<24x32xbf16>
    %443 = vector.extract_strided_slice %424 {offsets = [1, 0], sizes = [12, 32], strides = [1, 1]} : vector<15x32xf32> to vector<12x32xf32>
    %444 = vector.extract_strided_slice %425 {offsets = [1, 0], sizes = [12, 32], strides = [1, 1]} : vector<15x32xf32> to vector<12x32xf32>
    %445 = tpu.concatenate %443, %444 in 0 : vector<12x32xf32>, vector<12x32xf32> -> vector<24x32xf32>
    %446 = arith.truncf %445 : vector<24x32xf32> to vector<24x32xbf16>
    %447 = vector.extract_strided_slice %424 {offsets = [2, 0], sizes = [12, 32], strides = [1, 1]} : vector<15x32xf32> to vector<12x32xf32>
    %448 = vector.extract_strided_slice %425 {offsets = [2, 0], sizes = [12, 32], strides = [1, 1]} : vector<15x32xf32> to vector<12x32xf32>
    %449 = tpu.concatenate %447, %448 in 0 : vector<12x32xf32>, vector<12x32xf32> -> vector<24x32xf32>
    %450 = arith.truncf %449 : vector<24x32xf32> to vector<24x32xbf16>
    %451 = vector.extract_strided_slice %425 {offsets = [0, 0], sizes = [12, 32], strides = [1, 1]} : vector<15x32xf32> to vector<12x32xf32>
    %452 = vector.extract_strided_slice %426 {offsets = [0, 0], sizes = [12, 32], strides = [1, 1]} : vector<15x32xf32> to vector<12x32xf32>
    %453 = tpu.concatenate %451, %452 in 0 : vector<12x32xf32>, vector<12x32xf32> -> vector<24x32xf32>
    %454 = arith.truncf %453 : vector<24x32xf32> to vector<24x32xbf16>
    %455 = vector.extract_strided_slice %425 {offsets = [1, 0], sizes = [12, 32], strides = [1, 1]} : vector<15x32xf32> to vector<12x32xf32>
    %456 = vector.extract_strided_slice %426 {offsets = [1, 0], sizes = [12, 32], strides = [1, 1]} : vector<15x32xf32> to vector<12x32xf32>
    %457 = tpu.concatenate %455, %456 in 0 : vector<12x32xf32>, vector<12x32xf32> -> vector<24x32xf32>
    %458 = arith.truncf %457 : vector<24x32xf32> to vector<24x32xbf16>
    %459 = vector.extract_strided_slice %425 {offsets = [2, 0], sizes = [12, 32], strides = [1, 1]} : vector<15x32xf32> to vector<12x32xf32>
    %460 = vector.extract_strided_slice %426 {offsets = [2, 0], sizes = [12, 32], strides = [1, 1]} : vector<15x32xf32> to vector<12x32xf32>
    %461 = tpu.concatenate %459, %460 in 0 : vector<12x32xf32>, vector<12x32xf32> -> vector<24x32xf32>
    %462 = arith.truncf %461 : vector<24x32xf32> to vector<24x32xbf16>
    %463 = tpu.concatenate %430, %434, %438, %442, %446, %450, %454, %458, %462 in 1 : vector<24x32xbf16>, vector<24x32xbf16>, vector<24x32xbf16>, vector<24x32xbf16>, vector<24x32xbf16>, vector<24x32xbf16>, vector<24x32xbf16>, vector<24x32xbf16>, vector<24x32xbf16> -> vector<24x288xbf16>
    %c0_299 = arith.constant 0 : index
    %c0_300 = arith.constant 0 : index
    %464 = vector.load %arg4[%c0_299, %c0_300] : memref<288x64xbf16, #tpu.memory_space<vmem>>, vector<288x64xbf16>
    %cst_301 = arith.constant dense<0.000000e+00> : vector<24x64xf32>
    %465 = tpu.matmul %463, %464, %cst_301 {dimension_numbers = #tpu.dot_dimension_numbers<[1], [0], [0], [1], [0, 0, 1, 1], [], []>} : vector<24x288xbf16>, vector<288x64xbf16>, vector<24x64xf32> -> vector<24x64xf32>
    %c0_302 = arith.constant 0 : index
    %c0_303 = arith.constant 0 : index
    %466 = vector.load %arg5[%c0_302, %c0_303] : memref<1x64xf32, #tpu.memory_space<vmem>>, vector<1x64xf32>
    %467 = vector.extract_strided_slice %465 {offsets = [0, 0], sizes = [12, 64], strides = [1, 1]} : vector<24x64xf32> to vector<12x64xf32>
    %468 = vector.extract_strided_slice %465 {offsets = [12, 0], sizes = [12, 64], strides = [1, 1]} : vector<24x64xf32> to vector<12x64xf32>
    %469 = arith.maximumf %467, %468 : vector<12x64xf32>
    %c0_304 = arith.constant 0 : index
    %c0_305 = arith.constant 0 : index
    %470 = vector.load %arg17[%c0_304, %c0_305] : memref<12x64xf32, #tpu.memory_space<vmem>>, vector<12x64xf32>
    tpu.vector_store %arg17[%c0_304, %c0_305], %469 {strides = array<i32>} : memref<12x64xf32, #tpu.memory_space<vmem>>, vector<12x64xf32>,
    %c0_306 = arith.constant 0 : index
    %c0_307 = arith.constant 0 : index
    %471 = tpu.strided_load %arg17[%c0_306, %c0_307] {strides = array<i32: 2, 1>} : memref<12x64xf32, #tpu.memory_space<vmem>>, vector<6x64xf32>
    %c1_308 = arith.constant 1 : index
    %c0_309 = arith.constant 0 : index
    %472 = tpu.strided_load %arg17[%c1_308, %c0_309] {strides = array<i32: 2, 1>} : memref<12x64xf32, #tpu.memory_space<vmem>>, vector<6x64xf32>
    %473 = arith.maximumf %471, %472 : vector<6x64xf32>
    %474 = vector.broadcast %466 : vector<1x64xf32> to vector<6x64xf32>
    %475 = arith.addf %473, %474 : vector<6x64xf32>
    %cst_310 = arith.constant 0.000000e+00 : f32
    %476 = vector.broadcast %cst_310 : f32 to vector<6x64xf32>
    %477 = arith.maximumf %475, %476 : vector<6x64xf32>
    %c18 = arith.constant 18 : index
    %c0_311 = arith.constant 0 : index
    %478 = vector.load %arg14[%c18, %c0_311] : memref<36x64xf32, #tpu.memory_space<vmem>>, vector<6x64xf32>
    tpu.vector_store %arg14[%c18, %c0_311], %477 {strides = array<i32>} : memref<36x64xf32, #tpu.memory_space<vmem>>, vector<6x64xf32>,
    %c120_312 = arith.constant 120 : index
    %c0_313 = arith.constant 0 : index
    %479 = vector.load %arg13[%c120_312, %c0_313] : memref<225x32xf32, #tpu.memory_space<vmem>>, vector<15x32xf32>
    %c135_314 = arith.constant 135 : index
    %c0_315 = arith.constant 0 : index
    %480 = vector.load %arg13[%c135_314, %c0_315] : memref<225x32xf32, #tpu.memory_space<vmem>>, vector<15x32xf32>
    %c150_316 = arith.constant 150 : index
    %c0_317 = arith.constant 0 : index
    %481 = vector.load %arg13[%c150_316, %c0_317] : memref<225x32xf32, #tpu.memory_space<vmem>>, vector<15x32xf32>
    %c165_318 = arith.constant 165 : index
    %c0_319 = arith.constant 0 : index
    %482 = vector.load %arg13[%c165_318, %c0_319] : memref<225x32xf32, #tpu.memory_space<vmem>>, vector<15x32xf32>
    %483 = vector.extract_strided_slice %479 {offsets = [0, 0], sizes = [12, 32], strides = [1, 1]} : vector<15x32xf32> to vector<12x32xf32>
    %484 = vector.extract_strided_slice %480 {offsets = [0, 0], sizes = [12, 32], strides = [1, 1]} : vector<15x32xf32> to vector<12x32xf32>
    %485 = tpu.concatenate %483, %484 in 0 : vector<12x32xf32>, vector<12x32xf32> -> vector<24x32xf32>
    %486 = arith.truncf %485 : vector<24x32xf32> to vector<24x32xbf16>
    %487 = vector.extract_strided_slice %479 {offsets = [1, 0], sizes = [12, 32], strides = [1, 1]} : vector<15x32xf32> to vector<12x32xf32>
    %488 = vector.extract_strided_slice %480 {offsets = [1, 0], sizes = [12, 32], strides = [1, 1]} : vector<15x32xf32> to vector<12x32xf32>
    %489 = tpu.concatenate %487, %488 in 0 : vector<12x32xf32>, vector<12x32xf32> -> vector<24x32xf32>
    %490 = arith.truncf %489 : vector<24x32xf32> to vector<24x32xbf16>
    %491 = vector.extract_strided_slice %479 {offsets = [2, 0], sizes = [12, 32], strides = [1, 1]} : vector<15x32xf32> to vector<12x32xf32>
    %492 = vector.extract_strided_slice %480 {offsets = [2, 0], sizes = [12, 32], strides = [1, 1]} : vector<15x32xf32> to vector<12x32xf32>
    %493 = tpu.concatenate %491, %492 in 0 : vector<12x32xf32>, vector<12x32xf32> -> vector<24x32xf32>
    %494 = arith.truncf %493 : vector<24x32xf32> to vector<24x32xbf16>
    %495 = vector.extract_strided_slice %480 {offsets = [0, 0], sizes = [12, 32], strides = [1, 1]} : vector<15x32xf32> to vector<12x32xf32>
    %496 = vector.extract_strided_slice %481 {offsets = [0, 0], sizes = [12, 32], strides = [1, 1]} : vector<15x32xf32> to vector<12x32xf32>
    %497 = tpu.concatenate %495, %496 in 0 : vector<12x32xf32>, vector<12x32xf32> -> vector<24x32xf32>
    %498 = arith.truncf %497 : vector<24x32xf32> to vector<24x32xbf16>
    %499 = vector.extract_strided_slice %480 {offsets = [1, 0], sizes = [12, 32], strides = [1, 1]} : vector<15x32xf32> to vector<12x32xf32>
    %500 = vector.extract_strided_slice %481 {offsets = [1, 0], sizes = [12, 32], strides = [1, 1]} : vector<15x32xf32> to vector<12x32xf32>
    %501 = tpu.concatenate %499, %500 in 0 : vector<12x32xf32>, vector<12x32xf32> -> vector<24x32xf32>
    %502 = arith.truncf %501 : vector<24x32xf32> to vector<24x32xbf16>
    %503 = vector.extract_strided_slice %480 {offsets = [2, 0], sizes = [12, 32], strides = [1, 1]} : vector<15x32xf32> to vector<12x32xf32>
    %504 = vector.extract_strided_slice %481 {offsets = [2, 0], sizes = [12, 32], strides = [1, 1]} : vector<15x32xf32> to vector<12x32xf32>
    %505 = tpu.concatenate %503, %504 in 0 : vector<12x32xf32>, vector<12x32xf32> -> vector<24x32xf32>
    %506 = arith.truncf %505 : vector<24x32xf32> to vector<24x32xbf16>
    %507 = vector.extract_strided_slice %481 {offsets = [0, 0], sizes = [12, 32], strides = [1, 1]} : vector<15x32xf32> to vector<12x32xf32>
    %508 = vector.extract_strided_slice %482 {offsets = [0, 0], sizes = [12, 32], strides = [1, 1]} : vector<15x32xf32> to vector<12x32xf32>
    %509 = tpu.concatenate %507, %508 in 0 : vector<12x32xf32>, vector<12x32xf32> -> vector<24x32xf32>
    %510 = arith.truncf %509 : vector<24x32xf32> to vector<24x32xbf16>
    %511 = vector.extract_strided_slice %481 {offsets = [1, 0], sizes = [12, 32], strides = [1, 1]} : vector<15x32xf32> to vector<12x32xf32>
    %512 = vector.extract_strided_slice %482 {offsets = [1, 0], sizes = [12, 32], strides = [1, 1]} : vector<15x32xf32> to vector<12x32xf32>
    %513 = tpu.concatenate %511, %512 in 0 : vector<12x32xf32>, vector<12x32xf32> -> vector<24x32xf32>
    %514 = arith.truncf %513 : vector<24x32xf32> to vector<24x32xbf16>
    %515 = vector.extract_strided_slice %481 {offsets = [2, 0], sizes = [12, 32], strides = [1, 1]} : vector<15x32xf32> to vector<12x32xf32>
    %516 = vector.extract_strided_slice %482 {offsets = [2, 0], sizes = [12, 32], strides = [1, 1]} : vector<15x32xf32> to vector<12x32xf32>
    %517 = tpu.concatenate %515, %516 in 0 : vector<12x32xf32>, vector<12x32xf32> -> vector<24x32xf32>
    %518 = arith.truncf %517 : vector<24x32xf32> to vector<24x32xbf16>
    %519 = tpu.concatenate %486, %490, %494, %498, %502, %506, %510, %514, %518 in 1 : vector<24x32xbf16>, vector<24x32xbf16>, vector<24x32xbf16>, vector<24x32xbf16>, vector<24x32xbf16>, vector<24x32xbf16>, vector<24x32xbf16>, vector<24x32xbf16>, vector<24x32xbf16> -> vector<24x288xbf16>
    %c0_320 = arith.constant 0 : index
    %c0_321 = arith.constant 0 : index
    %520 = vector.load %arg4[%c0_320, %c0_321] : memref<288x64xbf16, #tpu.memory_space<vmem>>, vector<288x64xbf16>
    %cst_322 = arith.constant dense<0.000000e+00> : vector<24x64xf32>
    %521 = tpu.matmul %519, %520, %cst_322 {dimension_numbers = #tpu.dot_dimension_numbers<[1], [0], [0], [1], [0, 0, 1, 1], [], []>} : vector<24x288xbf16>, vector<288x64xbf16>, vector<24x64xf32> -> vector<24x64xf32>
    %c0_323 = arith.constant 0 : index
    %c0_324 = arith.constant 0 : index
    %522 = vector.load %arg5[%c0_323, %c0_324] : memref<1x64xf32, #tpu.memory_space<vmem>>, vector<1x64xf32>
    %523 = vector.extract_strided_slice %521 {offsets = [0, 0], sizes = [12, 64], strides = [1, 1]} : vector<24x64xf32> to vector<12x64xf32>
    %524 = vector.extract_strided_slice %521 {offsets = [12, 0], sizes = [12, 64], strides = [1, 1]} : vector<24x64xf32> to vector<12x64xf32>
    %525 = arith.maximumf %523, %524 : vector<12x64xf32>
    %c0_325 = arith.constant 0 : index
    %c0_326 = arith.constant 0 : index
    %526 = vector.load %arg17[%c0_325, %c0_326] : memref<12x64xf32, #tpu.memory_space<vmem>>, vector<12x64xf32>
    tpu.vector_store %arg17[%c0_325, %c0_326], %525 {strides = array<i32>} : memref<12x64xf32, #tpu.memory_space<vmem>>, vector<12x64xf32>,
    %c0_327 = arith.constant 0 : index
    %c0_328 = arith.constant 0 : index
    %527 = tpu.strided_load %arg17[%c0_327, %c0_328] {strides = array<i32: 2, 1>} : memref<12x64xf32, #tpu.memory_space<vmem>>, vector<6x64xf32>
    %c1_329 = arith.constant 1 : index
    %c0_330 = arith.constant 0 : index
    %528 = tpu.strided_load %arg17[%c1_329, %c0_330] {strides = array<i32: 2, 1>} : memref<12x64xf32, #tpu.memory_space<vmem>>, vector<6x64xf32>
    %529 = arith.maximumf %527, %528 : vector<6x64xf32>
    %530 = vector.broadcast %522 : vector<1x64xf32> to vector<6x64xf32>
    %531 = arith.addf %529, %530 : vector<6x64xf32>
    %cst_331 = arith.constant 0.000000e+00 : f32
    %532 = vector.broadcast %cst_331 : f32 to vector<6x64xf32>
    %533 = arith.maximumf %531, %532 : vector<6x64xf32>
    %c24 = arith.constant 24 : index
    %c0_332 = arith.constant 0 : index
    %534 = vector.load %arg14[%c24, %c0_332] : memref<36x64xf32, #tpu.memory_space<vmem>>, vector<6x64xf32>
    tpu.vector_store %arg14[%c24, %c0_332], %533 {strides = array<i32>} : memref<36x64xf32, #tpu.memory_space<vmem>>, vector<6x64xf32>,
    %c150_333 = arith.constant 150 : index
    %c0_334 = arith.constant 0 : index
    %535 = vector.load %arg13[%c150_333, %c0_334] : memref<225x32xf32, #tpu.memory_space<vmem>>, vector<15x32xf32>
    %c165_335 = arith.constant 165 : index
    %c0_336 = arith.constant 0 : index
    %536 = vector.load %arg13[%c165_335, %c0_336] : memref<225x32xf32, #tpu.memory_space<vmem>>, vector<15x32xf32>
    %c180_337 = arith.constant 180 : index
    %c0_338 = arith.constant 0 : index
    %537 = vector.load %arg13[%c180_337, %c0_338] : memref<225x32xf32, #tpu.memory_space<vmem>>, vector<15x32xf32>
    %c195_339 = arith.constant 195 : index
    %c0_340 = arith.constant 0 : index
    %538 = vector.load %arg13[%c195_339, %c0_340] : memref<225x32xf32, #tpu.memory_space<vmem>>, vector<15x32xf32>
    %539 = vector.extract_strided_slice %535 {offsets = [0, 0], sizes = [12, 32], strides = [1, 1]} : vector<15x32xf32> to vector<12x32xf32>
    %540 = vector.extract_strided_slice %536 {offsets = [0, 0], sizes = [12, 32], strides = [1, 1]} : vector<15x32xf32> to vector<12x32xf32>
    %541 = tpu.concatenate %539, %540 in 0 : vector<12x32xf32>, vector<12x32xf32> -> vector<24x32xf32>
    %542 = arith.truncf %541 : vector<24x32xf32> to vector<24x32xbf16>
    %543 = vector.extract_strided_slice %535 {offsets = [1, 0], sizes = [12, 32], strides = [1, 1]} : vector<15x32xf32> to vector<12x32xf32>
    %544 = vector.extract_strided_slice %536 {offsets = [1, 0], sizes = [12, 32], strides = [1, 1]} : vector<15x32xf32> to vector<12x32xf32>
    %545 = tpu.concatenate %543, %544 in 0 : vector<12x32xf32>, vector<12x32xf32> -> vector<24x32xf32>
    %546 = arith.truncf %545 : vector<24x32xf32> to vector<24x32xbf16>
    %547 = vector.extract_strided_slice %535 {offsets = [2, 0], sizes = [12, 32], strides = [1, 1]} : vector<15x32xf32> to vector<12x32xf32>
    %548 = vector.extract_strided_slice %536 {offsets = [2, 0], sizes = [12, 32], strides = [1, 1]} : vector<15x32xf32> to vector<12x32xf32>
    %549 = tpu.concatenate %547, %548 in 0 : vector<12x32xf32>, vector<12x32xf32> -> vector<24x32xf32>
    %550 = arith.truncf %549 : vector<24x32xf32> to vector<24x32xbf16>
    %551 = vector.extract_strided_slice %536 {offsets = [0, 0], sizes = [12, 32], strides = [1, 1]} : vector<15x32xf32> to vector<12x32xf32>
    %552 = vector.extract_strided_slice %537 {offsets = [0, 0], sizes = [12, 32], strides = [1, 1]} : vector<15x32xf32> to vector<12x32xf32>
    %553 = tpu.concatenate %551, %552 in 0 : vector<12x32xf32>, vector<12x32xf32> -> vector<24x32xf32>
    %554 = arith.truncf %553 : vector<24x32xf32> to vector<24x32xbf16>
    %555 = vector.extract_strided_slice %536 {offsets = [1, 0], sizes = [12, 32], strides = [1, 1]} : vector<15x32xf32> to vector<12x32xf32>
    %556 = vector.extract_strided_slice %537 {offsets = [1, 0], sizes = [12, 32], strides = [1, 1]} : vector<15x32xf32> to vector<12x32xf32>
    %557 = tpu.concatenate %555, %556 in 0 : vector<12x32xf32>, vector<12x32xf32> -> vector<24x32xf32>
    %558 = arith.truncf %557 : vector<24x32xf32> to vector<24x32xbf16>
    %559 = vector.extract_strided_slice %536 {offsets = [2, 0], sizes = [12, 32], strides = [1, 1]} : vector<15x32xf32> to vector<12x32xf32>
    %560 = vector.extract_strided_slice %537 {offsets = [2, 0], sizes = [12, 32], strides = [1, 1]} : vector<15x32xf32> to vector<12x32xf32>
    %561 = tpu.concatenate %559, %560 in 0 : vector<12x32xf32>, vector<12x32xf32> -> vector<24x32xf32>
    %562 = arith.truncf %561 : vector<24x32xf32> to vector<24x32xbf16>
    %563 = vector.extract_strided_slice %537 {offsets = [0, 0], sizes = [12, 32], strides = [1, 1]} : vector<15x32xf32> to vector<12x32xf32>
    %564 = vector.extract_strided_slice %538 {offsets = [0, 0], sizes = [12, 32], strides = [1, 1]} : vector<15x32xf32> to vector<12x32xf32>
    %565 = tpu.concatenate %563, %564 in 0 : vector<12x32xf32>, vector<12x32xf32> -> vector<24x32xf32>
    %566 = arith.truncf %565 : vector<24x32xf32> to vector<24x32xbf16>
    %567 = vector.extract_strided_slice %537 {offsets = [1, 0], sizes = [12, 32], strides = [1, 1]} : vector<15x32xf32> to vector<12x32xf32>
    %568 = vector.extract_strided_slice %538 {offsets = [1, 0], sizes = [12, 32], strides = [1, 1]} : vector<15x32xf32> to vector<12x32xf32>
    %569 = tpu.concatenate %567, %568 in 0 : vector<12x32xf32>, vector<12x32xf32> -> vector<24x32xf32>
    %570 = arith.truncf %569 : vector<24x32xf32> to vector<24x32xbf16>
    %571 = vector.extract_strided_slice %537 {offsets = [2, 0], sizes = [12, 32], strides = [1, 1]} : vector<15x32xf32> to vector<12x32xf32>
    %572 = vector.extract_strided_slice %538 {offsets = [2, 0], sizes = [12, 32], strides = [1, 1]} : vector<15x32xf32> to vector<12x32xf32>
    %573 = tpu.concatenate %571, %572 in 0 : vector<12x32xf32>, vector<12x32xf32> -> vector<24x32xf32>
    %574 = arith.truncf %573 : vector<24x32xf32> to vector<24x32xbf16>
    %575 = tpu.concatenate %542, %546, %550, %554, %558, %562, %566, %570, %574 in 1 : vector<24x32xbf16>, vector<24x32xbf16>, vector<24x32xbf16>, vector<24x32xbf16>, vector<24x32xbf16>, vector<24x32xbf16>, vector<24x32xbf16>, vector<24x32xbf16>, vector<24x32xbf16> -> vector<24x288xbf16>
    %c0_341 = arith.constant 0 : index
    %c0_342 = arith.constant 0 : index
    %576 = vector.load %arg4[%c0_341, %c0_342] : memref<288x64xbf16, #tpu.memory_space<vmem>>, vector<288x64xbf16>
    %cst_343 = arith.constant dense<0.000000e+00> : vector<24x64xf32>
    %577 = tpu.matmul %575, %576, %cst_343 {dimension_numbers = #tpu.dot_dimension_numbers<[1], [0], [0], [1], [0, 0, 1, 1], [], []>} : vector<24x288xbf16>, vector<288x64xbf16>, vector<24x64xf32> -> vector<24x64xf32>
    %c0_344 = arith.constant 0 : index
    %c0_345 = arith.constant 0 : index
    %578 = vector.load %arg5[%c0_344, %c0_345] : memref<1x64xf32, #tpu.memory_space<vmem>>, vector<1x64xf32>
    %579 = vector.extract_strided_slice %577 {offsets = [0, 0], sizes = [12, 64], strides = [1, 1]} : vector<24x64xf32> to vector<12x64xf32>
    %580 = vector.extract_strided_slice %577 {offsets = [12, 0], sizes = [12, 64], strides = [1, 1]} : vector<24x64xf32> to vector<12x64xf32>
    %581 = arith.maximumf %579, %580 : vector<12x64xf32>
    %c0_346 = arith.constant 0 : index
    %c0_347 = arith.constant 0 : index
    %582 = vector.load %arg17[%c0_346, %c0_347] : memref<12x64xf32, #tpu.memory_space<vmem>>, vector<12x64xf32>
    tpu.vector_store %arg17[%c0_346, %c0_347], %581 {strides = array<i32>} : memref<12x64xf32, #tpu.memory_space<vmem>>, vector<12x64xf32>,
    %c0_348 = arith.constant 0 : index
    %c0_349 = arith.constant 0 : index
    %583 = tpu.strided_load %arg17[%c0_348, %c0_349] {strides = array<i32: 2, 1>} : memref<12x64xf32, #tpu.memory_space<vmem>>, vector<6x64xf32>
    %c1_350 = arith.constant 1 : index
    %c0_351 = arith.constant 0 : index
    %584 = tpu.strided_load %arg17[%c1_350, %c0_351] {strides = array<i32: 2, 1>} : memref<12x64xf32, #tpu.memory_space<vmem>>, vector<6x64xf32>
    %585 = arith.maximumf %583, %584 : vector<6x64xf32>
    %586 = vector.broadcast %578 : vector<1x64xf32> to vector<6x64xf32>
    %587 = arith.addf %585, %586 : vector<6x64xf32>
    %cst_352 = arith.constant 0.000000e+00 : f32
    %588 = vector.broadcast %cst_352 : f32 to vector<6x64xf32>
    %589 = arith.maximumf %587, %588 : vector<6x64xf32>
    %c30_353 = arith.constant 30 : index
    %c0_354 = arith.constant 0 : index
    %590 = vector.load %arg14[%c30_353, %c0_354] : memref<36x64xf32, #tpu.memory_space<vmem>>, vector<6x64xf32>
    tpu.vector_store %arg14[%c30_353, %c0_354], %589 {strides = array<i32>} : memref<36x64xf32, #tpu.memory_space<vmem>>, vector<6x64xf32>,
    %c0_355 = arith.constant 0 : index
    %c0_356 = arith.constant 0 : index
    %591 = vector.load %arg14[%c0_355, %c0_356] : memref<36x64xf32, #tpu.memory_space<vmem>>, vector<6x64xf32>
    %c6_357 = arith.constant 6 : index
    %c0_358 = arith.constant 0 : index
    %592 = vector.load %arg14[%c6_357, %c0_358] : memref<36x64xf32, #tpu.memory_space<vmem>>, vector<6x64xf32>
    %c12_359 = arith.constant 12 : index
    %c0_360 = arith.constant 0 : index
    %593 = vector.load %arg14[%c12_359, %c0_360] : memref<36x64xf32, #tpu.memory_space<vmem>>, vector<6x64xf32>
    %c18_361 = arith.constant 18 : index
    %c0_362 = arith.constant 0 : index
    %594 = vector.load %arg14[%c18_361, %c0_362] : memref<36x64xf32, #tpu.memory_space<vmem>>, vector<6x64xf32>
    %595 = vector.extract_strided_slice %591 {offsets = [0, 0], sizes = [4, 64], strides = [1, 1]} : vector<6x64xf32> to vector<4x64xf32>
    %596 = vector.extract_strided_slice %592 {offsets = [0, 0], sizes = [4, 64], strides = [1, 1]} : vector<6x64xf32> to vector<4x64xf32>
    %597 = tpu.concatenate %595, %596 in 0 : vector<4x64xf32>, vector<4x64xf32> -> vector<8x64xf32>
    %598 = arith.truncf %597 : vector<8x64xf32> to vector<8x64xbf16>
    %599 = vector.extract_strided_slice %591 {offsets = [1, 0], sizes = [4, 64], strides = [1, 1]} : vector<6x64xf32> to vector<4x64xf32>
    %600 = vector.extract_strided_slice %592 {offsets = [1, 0], sizes = [4, 64], strides = [1, 1]} : vector<6x64xf32> to vector<4x64xf32>
    %601 = tpu.concatenate %599, %600 in 0 : vector<4x64xf32>, vector<4x64xf32> -> vector<8x64xf32>
    %602 = arith.truncf %601 : vector<8x64xf32> to vector<8x64xbf16>
    %603 = vector.extract_strided_slice %591 {offsets = [2, 0], sizes = [4, 64], strides = [1, 1]} : vector<6x64xf32> to vector<4x64xf32>
    %604 = vector.extract_strided_slice %592 {offsets = [2, 0], sizes = [4, 64], strides = [1, 1]} : vector<6x64xf32> to vector<4x64xf32>
    %605 = tpu.concatenate %603, %604 in 0 : vector<4x64xf32>, vector<4x64xf32> -> vector<8x64xf32>
    %606 = arith.truncf %605 : vector<8x64xf32> to vector<8x64xbf16>
    %607 = vector.extract_strided_slice %592 {offsets = [0, 0], sizes = [4, 64], strides = [1, 1]} : vector<6x64xf32> to vector<4x64xf32>
    %608 = vector.extract_strided_slice %593 {offsets = [0, 0], sizes = [4, 64], strides = [1, 1]} : vector<6x64xf32> to vector<4x64xf32>
    %609 = tpu.concatenate %607, %608 in 0 : vector<4x64xf32>, vector<4x64xf32> -> vector<8x64xf32>
    %610 = arith.truncf %609 : vector<8x64xf32> to vector<8x64xbf16>
    %611 = vector.extract_strided_slice %592 {offsets = [1, 0], sizes = [4, 64], strides = [1, 1]} : vector<6x64xf32> to vector<4x64xf32>
    %612 = vector.extract_strided_slice %593 {offsets = [1, 0], sizes = [4, 64], strides = [1, 1]} : vector<6x64xf32> to vector<4x64xf32>
    %613 = tpu.concatenate %611, %612 in 0 : vector<4x64xf32>, vector<4x64xf32> -> vector<8x64xf32>
    %614 = arith.truncf %613 : vector<8x64xf32> to vector<8x64xbf16>
    %615 = vector.extract_strided_slice %592 {offsets = [2, 0], sizes = [4, 64], strides = [1, 1]} : vector<6x64xf32> to vector<4x64xf32>
    %616 = vector.extract_strided_slice %593 {offsets = [2, 0], sizes = [4, 64], strides = [1, 1]} : vector<6x64xf32> to vector<4x64xf32>
    %617 = tpu.concatenate %615, %616 in 0 : vector<4x64xf32>, vector<4x64xf32> -> vector<8x64xf32>
    %618 = arith.truncf %617 : vector<8x64xf32> to vector<8x64xbf16>
    %619 = vector.extract_strided_slice %593 {offsets = [0, 0], sizes = [4, 64], strides = [1, 1]} : vector<6x64xf32> to vector<4x64xf32>
    %620 = vector.extract_strided_slice %594 {offsets = [0, 0], sizes = [4, 64], strides = [1, 1]} : vector<6x64xf32> to vector<4x64xf32>
    %621 = tpu.concatenate %619, %620 in 0 : vector<4x64xf32>, vector<4x64xf32> -> vector<8x64xf32>
    %622 = arith.truncf %621 : vector<8x64xf32> to vector<8x64xbf16>
    %623 = vector.extract_strided_slice %593 {offsets = [1, 0], sizes = [4, 64], strides = [1, 1]} : vector<6x64xf32> to vector<4x64xf32>
    %624 = vector.extract_strided_slice %594 {offsets = [1, 0], sizes = [4, 64], strides = [1, 1]} : vector<6x64xf32> to vector<4x64xf32>
    %625 = tpu.concatenate %623, %624 in 0 : vector<4x64xf32>, vector<4x64xf32> -> vector<8x64xf32>
    %626 = arith.truncf %625 : vector<8x64xf32> to vector<8x64xbf16>
    %627 = vector.extract_strided_slice %593 {offsets = [2, 0], sizes = [4, 64], strides = [1, 1]} : vector<6x64xf32> to vector<4x64xf32>
    %628 = vector.extract_strided_slice %594 {offsets = [2, 0], sizes = [4, 64], strides = [1, 1]} : vector<6x64xf32> to vector<4x64xf32>
    %629 = tpu.concatenate %627, %628 in 0 : vector<4x64xf32>, vector<4x64xf32> -> vector<8x64xf32>
    %630 = arith.truncf %629 : vector<8x64xf32> to vector<8x64xbf16>
    %631 = tpu.concatenate %598, %602, %606, %610, %614, %618, %622, %626, %630 in 1 : vector<8x64xbf16>, vector<8x64xbf16>, vector<8x64xbf16>, vector<8x64xbf16>, vector<8x64xbf16>, vector<8x64xbf16>, vector<8x64xbf16>, vector<8x64xbf16>, vector<8x64xbf16> -> vector<8x576xbf16>
    %c0_363 = arith.constant 0 : index
    %c0_364 = arith.constant 0 : index
    %632 = vector.load %arg6[%c0_363, %c0_364] : memref<576x128xbf16, #tpu.memory_space<vmem>>, vector<576x128xbf16>
    %cst_365 = arith.constant dense<0.000000e+00> : vector<8x128xf32>
    %633 = tpu.matmul %631, %632, %cst_365 {dimension_numbers = #tpu.dot_dimension_numbers<[1], [0], [0], [1], [0, 0, 1, 1], [], []>} : vector<8x576xbf16>, vector<576x128xbf16>, vector<8x128xf32> -> vector<8x128xf32>
    %c0_366 = arith.constant 0 : index
    %c0_367 = arith.constant 0 : index
    %634 = vector.load %arg7[%c0_366, %c0_367] : memref<1x128xf32, #tpu.memory_space<vmem>>, vector<1x128xf32>
    %635 = vector.extract_strided_slice %633 {offsets = [0, 0], sizes = [4, 128], strides = [1, 1]} : vector<8x128xf32> to vector<4x128xf32>
    %636 = vector.extract_strided_slice %633 {offsets = [4, 0], sizes = [4, 128], strides = [1, 1]} : vector<8x128xf32> to vector<4x128xf32>
    %637 = arith.maximumf %635, %636 : vector<4x128xf32>
    %c0_368 = arith.constant 0 : index
    %c0_369 = arith.constant 0 : index
    %638 = vector.load %arg18[%c0_368, %c0_369] : memref<4x128xf32, #tpu.memory_space<vmem>>, vector<4x128xf32>
    tpu.vector_store %arg18[%c0_368, %c0_369], %637 {strides = array<i32>} : memref<4x128xf32, #tpu.memory_space<vmem>>, vector<4x128xf32>,
    %c0_370 = arith.constant 0 : index
    %c0_371 = arith.constant 0 : index
    %639 = tpu.strided_load %arg18[%c0_370, %c0_371] {strides = array<i32: 2, 1>} : memref<4x128xf32, #tpu.memory_space<vmem>>, vector<2x128xf32>
    %c1_372 = arith.constant 1 : index
    %c0_373 = arith.constant 0 : index
    %640 = tpu.strided_load %arg18[%c1_372, %c0_373] {strides = array<i32: 2, 1>} : memref<4x128xf32, #tpu.memory_space<vmem>>, vector<2x128xf32>
    %641 = arith.maximumf %639, %640 : vector<2x128xf32>
    %642 = vector.broadcast %634 : vector<1x128xf32> to vector<2x128xf32>
    %643 = arith.addf %641, %642 : vector<2x128xf32>
    %cst_374 = arith.constant 0.000000e+00 : f32
    %644 = vector.broadcast %cst_374 : f32 to vector<2x128xf32>
    %645 = arith.maximumf %643, %644 : vector<2x128xf32>
    %c0_375 = arith.constant 0 : index
    %c0_376 = arith.constant 0 : index
    %646 = vector.load %arg15[%c0_375, %c0_376] : memref<4x128xf32, #tpu.memory_space<vmem>>, vector<2x128xf32>
    tpu.vector_store %arg15[%c0_375, %c0_376], %645 {strides = array<i32>} : memref<4x128xf32, #tpu.memory_space<vmem>>, vector<2x128xf32>,
    %c12_377 = arith.constant 12 : index
    %c0_378 = arith.constant 0 : index
    %647 = vector.load %arg14[%c12_377, %c0_378] : memref<36x64xf32, #tpu.memory_space<vmem>>, vector<6x64xf32>
    %c18_379 = arith.constant 18 : index
    %c0_380 = arith.constant 0 : index
    %648 = vector.load %arg14[%c18_379, %c0_380] : memref<36x64xf32, #tpu.memory_space<vmem>>, vector<6x64xf32>
    %c24_381 = arith.constant 24 : index
    %c0_382 = arith.constant 0 : index
    %649 = vector.load %arg14[%c24_381, %c0_382] : memref<36x64xf32, #tpu.memory_space<vmem>>, vector<6x64xf32>
    %c30_383 = arith.constant 30 : index
    %c0_384 = arith.constant 0 : index
    %650 = vector.load %arg14[%c30_383, %c0_384] : memref<36x64xf32, #tpu.memory_space<vmem>>, vector<6x64xf32>
    %651 = vector.extract_strided_slice %647 {offsets = [0, 0], sizes = [4, 64], strides = [1, 1]} : vector<6x64xf32> to vector<4x64xf32>
    %652 = vector.extract_strided_slice %648 {offsets = [0, 0], sizes = [4, 64], strides = [1, 1]} : vector<6x64xf32> to vector<4x64xf32>
    %653 = tpu.concatenate %651, %652 in 0 : vector<4x64xf32>, vector<4x64xf32> -> vector<8x64xf32>
    %654 = arith.truncf %653 : vector<8x64xf32> to vector<8x64xbf16>
    %655 = vector.extract_strided_slice %647 {offsets = [1, 0], sizes = [4, 64], strides = [1, 1]} : vector<6x64xf32> to vector<4x64xf32>
    %656 = vector.extract_strided_slice %648 {offsets = [1, 0], sizes = [4, 64], strides = [1, 1]} : vector<6x64xf32> to vector<4x64xf32>
    %657 = tpu.concatenate %655, %656 in 0 : vector<4x64xf32>, vector<4x64xf32> -> vector<8x64xf32>
    %658 = arith.truncf %657 : vector<8x64xf32> to vector<8x64xbf16>
    %659 = vector.extract_strided_slice %647 {offsets = [2, 0], sizes = [4, 64], strides = [1, 1]} : vector<6x64xf32> to vector<4x64xf32>
    %660 = vector.extract_strided_slice %648 {offsets = [2, 0], sizes = [4, 64], strides = [1, 1]} : vector<6x64xf32> to vector<4x64xf32>
    %661 = tpu.concatenate %659, %660 in 0 : vector<4x64xf32>, vector<4x64xf32> -> vector<8x64xf32>
    %662 = arith.truncf %661 : vector<8x64xf32> to vector<8x64xbf16>
    %663 = vector.extract_strided_slice %648 {offsets = [0, 0], sizes = [4, 64], strides = [1, 1]} : vector<6x64xf32> to vector<4x64xf32>
    %664 = vector.extract_strided_slice %649 {offsets = [0, 0], sizes = [4, 64], strides = [1, 1]} : vector<6x64xf32> to vector<4x64xf32>
    %665 = tpu.concatenate %663, %664 in 0 : vector<4x64xf32>, vector<4x64xf32> -> vector<8x64xf32>
    %666 = arith.truncf %665 : vector<8x64xf32> to vector<8x64xbf16>
    %667 = vector.extract_strided_slice %648 {offsets = [1, 0], sizes = [4, 64], strides = [1, 1]} : vector<6x64xf32> to vector<4x64xf32>
    %668 = vector.extract_strided_slice %649 {offsets = [1, 0], sizes = [4, 64], strides = [1, 1]} : vector<6x64xf32> to vector<4x64xf32>
    %669 = tpu.concatenate %667, %668 in 0 : vector<4x64xf32>, vector<4x64xf32> -> vector<8x64xf32>
    %670 = arith.truncf %669 : vector<8x64xf32> to vector<8x64xbf16>
    %671 = vector.extract_strided_slice %648 {offsets = [2, 0], sizes = [4, 64], strides = [1, 1]} : vector<6x64xf32> to vector<4x64xf32>
    %672 = vector.extract_strided_slice %649 {offsets = [2, 0], sizes = [4, 64], strides = [1, 1]} : vector<6x64xf32> to vector<4x64xf32>
    %673 = tpu.concatenate %671, %672 in 0 : vector<4x64xf32>, vector<4x64xf32> -> vector<8x64xf32>
    %674 = arith.truncf %673 : vector<8x64xf32> to vector<8x64xbf16>
    %675 = vector.extract_strided_slice %649 {offsets = [0, 0], sizes = [4, 64], strides = [1, 1]} : vector<6x64xf32> to vector<4x64xf32>
    %676 = vector.extract_strided_slice %650 {offsets = [0, 0], sizes = [4, 64], strides = [1, 1]} : vector<6x64xf32> to vector<4x64xf32>
    %677 = tpu.concatenate %675, %676 in 0 : vector<4x64xf32>, vector<4x64xf32> -> vector<8x64xf32>
    %678 = arith.truncf %677 : vector<8x64xf32> to vector<8x64xbf16>
    %679 = vector.extract_strided_slice %649 {offsets = [1, 0], sizes = [4, 64], strides = [1, 1]} : vector<6x64xf32> to vector<4x64xf32>
    %680 = vector.extract_strided_slice %650 {offsets = [1, 0], sizes = [4, 64], strides = [1, 1]} : vector<6x64xf32> to vector<4x64xf32>
    %681 = tpu.concatenate %679, %680 in 0 : vector<4x64xf32>, vector<4x64xf32> -> vector<8x64xf32>
    %682 = arith.truncf %681 : vector<8x64xf32> to vector<8x64xbf16>
    %683 = vector.extract_strided_slice %649 {offsets = [2, 0], sizes = [4, 64], strides = [1, 1]} : vector<6x64xf32> to vector<4x64xf32>
    %684 = vector.extract_strided_slice %650 {offsets = [2, 0], sizes = [4, 64], strides = [1, 1]} : vector<6x64xf32> to vector<4x64xf32>
    %685 = tpu.concatenate %683, %684 in 0 : vector<4x64xf32>, vector<4x64xf32> -> vector<8x64xf32>
    %686 = arith.truncf %685 : vector<8x64xf32> to vector<8x64xbf16>
    %687 = tpu.concatenate %654, %658, %662, %666, %670, %674, %678, %682, %686 in 1 : vector<8x64xbf16>, vector<8x64xbf16>, vector<8x64xbf16>, vector<8x64xbf16>, vector<8x64xbf16>, vector<8x64xbf16>, vector<8x64xbf16>, vector<8x64xbf16>, vector<8x64xbf16> -> vector<8x576xbf16>
    %c0_385 = arith.constant 0 : index
    %c0_386 = arith.constant 0 : index
    %688 = vector.load %arg6[%c0_385, %c0_386] : memref<576x128xbf16, #tpu.memory_space<vmem>>, vector<576x128xbf16>
    %cst_387 = arith.constant dense<0.000000e+00> : vector<8x128xf32>
    %689 = tpu.matmul %687, %688, %cst_387 {dimension_numbers = #tpu.dot_dimension_numbers<[1], [0], [0], [1], [0, 0, 1, 1], [], []>} : vector<8x576xbf16>, vector<576x128xbf16>, vector<8x128xf32> -> vector<8x128xf32>
    %c0_388 = arith.constant 0 : index
    %c0_389 = arith.constant 0 : index
    %690 = vector.load %arg7[%c0_388, %c0_389] : memref<1x128xf32, #tpu.memory_space<vmem>>, vector<1x128xf32>
    %691 = vector.extract_strided_slice %689 {offsets = [0, 0], sizes = [4, 128], strides = [1, 1]} : vector<8x128xf32> to vector<4x128xf32>
    %692 = vector.extract_strided_slice %689 {offsets = [4, 0], sizes = [4, 128], strides = [1, 1]} : vector<8x128xf32> to vector<4x128xf32>
    %693 = arith.maximumf %691, %692 : vector<4x128xf32>
    %c0_390 = arith.constant 0 : index
    %c0_391 = arith.constant 0 : index
    %694 = vector.load %arg18[%c0_390, %c0_391] : memref<4x128xf32, #tpu.memory_space<vmem>>, vector<4x128xf32>
    tpu.vector_store %arg18[%c0_390, %c0_391], %693 {strides = array<i32>} : memref<4x128xf32, #tpu.memory_space<vmem>>, vector<4x128xf32>,
    %c0_392 = arith.constant 0 : index
    %c0_393 = arith.constant 0 : index
    %695 = tpu.strided_load %arg18[%c0_392, %c0_393] {strides = array<i32: 2, 1>} : memref<4x128xf32, #tpu.memory_space<vmem>>, vector<2x128xf32>
    %c1_394 = arith.constant 1 : index
    %c0_395 = arith.constant 0 : index
    %696 = tpu.strided_load %arg18[%c1_394, %c0_395] {strides = array<i32: 2, 1>} : memref<4x128xf32, #tpu.memory_space<vmem>>, vector<2x128xf32>
    %697 = arith.maximumf %695, %696 : vector<2x128xf32>
    %698 = vector.broadcast %690 : vector<1x128xf32> to vector<2x128xf32>
    %699 = arith.addf %697, %698 : vector<2x128xf32>
    %cst_396 = arith.constant 0.000000e+00 : f32
    %700 = vector.broadcast %cst_396 : f32 to vector<2x128xf32>
    %701 = arith.maximumf %699, %700 : vector<2x128xf32>
    %c2 = arith.constant 2 : index
    %c0_397 = arith.constant 0 : index
    %702 = vector.load %arg15[%c2, %c0_397] : memref<4x128xf32, #tpu.memory_space<vmem>>, vector<2x128xf32>
    tpu.vector_store %arg15[%c2, %c0_397], %701 {strides = array<i32>} : memref<4x128xf32, #tpu.memory_space<vmem>>, vector<2x128xf32>,
    %c0_398 = arith.constant 0 : index
    %c0_399 = arith.constant 0 : index
    %703 = vector.load %arg15[%c0_398, %c0_399] : memref<4x128xf32, #tpu.memory_space<vmem>>, vector<4x128xf32>
    %704 = arith.truncf %703 : vector<4x128xf32> to vector<4x128xbf16>
    %705 = vector.extract_strided_slice %704 {offsets = [0, 0], sizes = [1, 128], strides = [1, 1]} : vector<4x128xbf16> to vector<1x128xbf16>
    %706 = vector.extract_strided_slice %704 {offsets = [1, 0], sizes = [1, 128], strides = [1, 1]} : vector<4x128xbf16> to vector<1x128xbf16>
    %707 = vector.extract_strided_slice %704 {offsets = [2, 0], sizes = [1, 128], strides = [1, 1]} : vector<4x128xbf16> to vector<1x128xbf16>
    %708 = vector.extract_strided_slice %704 {offsets = [3, 0], sizes = [1, 128], strides = [1, 1]} : vector<4x128xbf16> to vector<1x128xbf16>
    %709 = tpu.concatenate %705, %706, %707, %708 in 1 : vector<1x128xbf16>, vector<1x128xbf16>, vector<1x128xbf16>, vector<1x128xbf16> -> vector<1x512xbf16>
    %c0_400 = arith.constant 0 : index
    %c0_401 = arith.constant 0 : index
    %710 = vector.load %arg8[%c0_400, %c0_401] : memref<512x128xbf16, #tpu.memory_space<vmem>>, vector<512x128xbf16>
    %cst_402 = arith.constant dense<0.000000e+00> : vector<1x128xf32>
    %711 = tpu.matmul %709, %710, %cst_402 {dimension_numbers = #tpu.dot_dimension_numbers<[1], [0], [0], [1], [0, 0, 1, 1], [], []>} : vector<1x512xbf16>, vector<512x128xbf16>, vector<1x128xf32> -> vector<1x128xf32>
    %c0_403 = arith.constant 0 : index
    %c0_404 = arith.constant 0 : index
    %712 = vector.load %arg9[%c0_403, %c0_404] : memref<1x128xf32, #tpu.memory_space<vmem>>, vector<1x128xf32>
    %713 = arith.addf %711, %712 : vector<1x128xf32>
    %cst_405 = arith.constant 0.000000e+00 : f32
    %714 = vector.broadcast %cst_405 : f32 to vector<1x128xf32>
    %715 = arith.maximumf %713, %714 : vector<1x128xf32>
    %c0_406 = arith.constant 0 : index
    %c0_407 = arith.constant 0 : index
    %716 = vector.load %arg10[%c0_406, %c0_407] : memref<1x128xf32, #tpu.memory_space<vmem>>, vector<1x128xf32>
    %717 = arith.mulf %715, %716 : vector<1x128xf32>
    %cst_408 = arith.constant dense<0.000000e+00> : vector<1xf32>
    %718 = vector.multi_reduction <add>, %717, %cst_408 [1] : vector<1x128xf32> to vector<1xf32>
    %719 = vector.shape_cast %718 : vector<1xf32> to vector<1x1xf32>
    %c0_409 = arith.constant 0 : index
    %c0_410 = arith.constant 0 : index
    %720 = vector.load %arg11[%c0_409, %c0_410] : memref<1x1xf32, #tpu.memory_space<vmem>>, vector<1x1xf32>
    %721 = arith.addf %719, %720 : vector<1x1xf32>
    %cst_411 = arith.constant 0.000000e+00 : f32
    %722 = vector.broadcast %cst_411 : f32 to vector<1x1xf32>
    %723 = arith.subf %722, %721 : vector<1x1xf32>
    %724 = math.exp %723 : vector<1x1xf32>
    %cst_412 = arith.constant 1.000000e+00 : f32
    %725 = vector.broadcast %cst_412 : f32 to vector<1x1xf32>
    %726 = arith.addf %725, %724 : vector<1x1xf32>
    %cst_413 = arith.constant 1.000000e+00 : f32
    %727 = vector.broadcast %cst_413 : f32 to vector<1x1xf32>
    %728 = arith.divf %727, %726 : vector<1x1xf32>
    %c0_414 = arith.constant 0 : index
    %c0_415 = arith.constant 0 : index
    %c0_416 = arith.constant 0 : index
    %729 = vector.load %arg12[%c0_414, %c0_415, %c0_416] : memref<1x1x1xf32, #tpu.memory_space<vmem>>, vector<1x1x1xf32>
    %730 = vector.shape_cast %729 : vector<1x1x1xf32> to vector<1x1xf32>
    %731 = vector.shape_cast %728 : vector<1x1xf32> to vector<1x1x1xf32>
    tpu.vector_store %arg12[%c0_414, %c0_415, %c0_416], %731 {strides = array<i32>} : memref<1x1x1xf32, #tpu.memory_space<vmem>>, vector<1x1x1xf32>,
    return
  }
  func.func @transform_0(%arg0: i32) -> (i32, i32, i32) {
    %c0_i32 = arith.constant 0 : i32
    %c0_i32_0 = arith.constant 0 : i32
    %c0_i32_1 = arith.constant 0 : i32
    return %arg0, %c0_i32, %c0_i32_0 : i32, i32, i32
  }
  func.func @transform_1(%arg0: i32) -> (i32, i32) {
    %c0_i32 = arith.constant 0 : i32
    %c0_i32_0 = arith.constant 0 : i32
    %c0_i32_1 = arith.constant 0 : i32
    return %c0_i32, %c0_i32_0 : i32, i32
  }
  func.func @transform_2(%arg0: i32) -> (i32, i32) {
    %c0_i32 = arith.constant 0 : i32
    %c0_i32_0 = arith.constant 0 : i32
    %c0_i32_1 = arith.constant 0 : i32
    return %c0_i32, %c0_i32_0 : i32, i32
  }
  func.func @transform_3(%arg0: i32) -> (i32, i32) {
    %c0_i32 = arith.constant 0 : i32
    %c0_i32_0 = arith.constant 0 : i32
    %c0_i32_1 = arith.constant 0 : i32
    return %c0_i32, %c0_i32_0 : i32, i32
  }
  func.func @transform_4(%arg0: i32) -> (i32, i32) {
    %c0_i32 = arith.constant 0 : i32
    %c0_i32_0 = arith.constant 0 : i32
    %c0_i32_1 = arith.constant 0 : i32
    return %c0_i32, %c0_i32_0 : i32, i32
  }
  func.func @transform_5(%arg0: i32) -> (i32, i32) {
    %c0_i32 = arith.constant 0 : i32
    %c0_i32_0 = arith.constant 0 : i32
    %c0_i32_1 = arith.constant 0 : i32
    return %c0_i32, %c0_i32_0 : i32, i32
  }
  func.func @transform_6(%arg0: i32) -> (i32, i32) {
    %c0_i32 = arith.constant 0 : i32
    %c0_i32_0 = arith.constant 0 : i32
    %c0_i32_1 = arith.constant 0 : i32
    return %c0_i32, %c0_i32_0 : i32, i32
  }
  func.func @transform_7(%arg0: i32) -> (i32, i32) {
    %c0_i32 = arith.constant 0 : i32
    %c0_i32_0 = arith.constant 0 : i32
    %c0_i32_1 = arith.constant 0 : i32
    return %c0_i32, %c0_i32_0 : i32, i32
  }
  func.func @transform_8(%arg0: i32) -> (i32, i32) {
    %c0_i32 = arith.constant 0 : i32
    %c0_i32_0 = arith.constant 0 : i32
    %c0_i32_1 = arith.constant 0 : i32
    return %c0_i32, %c0_i32_0 : i32, i32
  }
  func.func @transform_9(%arg0: i32) -> (i32, i32) {
    %c0_i32 = arith.constant 0 : i32
    %c0_i32_0 = arith.constant 0 : i32
    %c0_i32_1 = arith.constant 0 : i32
    return %c0_i32, %c0_i32_0 : i32, i32
  }
  func.func @transform_10(%arg0: i32) -> (i32, i32) {
    %c0_i32 = arith.constant 0 : i32
    %c0_i32_0 = arith.constant 0 : i32
    %c0_i32_1 = arith.constant 0 : i32
    return %c0_i32, %c0_i32_0 : i32, i32
  }
  func.func @transform_11(%arg0: i32) -> (i32, i32, i32) {
    %c0_i32 = arith.constant 0 : i32
    %c0_i32_0 = arith.constant 0 : i32
    %c0_i32_1 = arith.constant 0 : i32
    return %arg0, %c0_i32, %c0_i32_0 : i32, i32, i32
  }
}

</mosaic_0001>

<bundles_post_ra>
// kernel: cnn_forward.1
= control target key start
LH: loop header
LB: loop body
LE: loop exit
PB: predicated region body
PF: predicated region fallthrough
CT: control target
= control target key end

     0   :  { %s8658_s19 = smov 0   ;;  %s11443_s0 = inlined_call_operand.vmem [shape: bf16[2,900,27], index: 0, kind: input, shape index: {}]   ;;  %s11444_s1 = inlined_call_operand.vmem [shape: bf16[27,32], index: 1, kind: input, shape index: {}]   ;;  %s11445_s2 = inlined_call_operand.vmem [shape: f32[1,32], index: 2, kind: input, shape index: {}]   ;;  %s11446_s3 = inlined_call_operand.vmem [shape: bf16[288,64], index: 3, kind: input, shape index: {}]   ;;  %s11447_s4 = inlined_call_operand.vmem [shape: f32[1,64], index: 4, kind: input, shape index: {}]   ;;  %s11448_s5 = inlined_call_operand.vmem [shape: bf16[576,128], index: 5, kind: input, shape index: {}]   ;;  %s11449_s6 = inlined_call_operand.vmem [shape: f32[1,128], index: 6, kind: input, shape index: {}]   ;;  %s11450_s7 = inlined_call_operand.vmem [shape: bf16[512,128], index: 7, kind: input, shape index: {}]   ;;  %s11451_s8 = inlined_call_operand.vmem [shape: f32[1,128], index: 8, kind: input, shape index: {}]   ;;  %s11452_s9 = inlined_call_operand.vmem [shape: f32[1,128], index: 9, kind: input, shape index: {}]   ;;  %s11453_s10 = inlined_call_operand.<no memory space> [shape: f32[1,1], index: 10, kind: input, shape index: {}]   ;;  %s11454_s11 = inlined_call_operand.vmem [shape: f32[2,1,1], index: 11, kind: output, shape index: {}]  }
   0x1   :  { %v16_v0 = vstv %s11453_s10 }
   0x2   :  { %17 = vst [vmem:[#allocation8] sm:$0x1] %v16_v0 }
   0x3 LB: > { %s7151_s20 = sadd.s32 4294967295, %s8587_s19   ;;  %p7155_p0 = scmp.ge.s32.totalorder %s8587_s19, 1  ;;  %s8587_s19 = sphi %s8658_s19, %s23_s19  }
   0x4   : > { %p339_p1 = scmp.lt.s32.totalorder %s8587_s19, 3 }
   0x6   : > { %p340_p2 = pnand %p7155_p0, %p339_p1 }
   0x8   : > { %343 = sbr.rel (%p340_p2) target bundleno = 1580 (0x62c), region = 64 }
   0xf   : > { %v8253_v1 = vld [vmem:[%s11444_s1] sm:$0xff]   ;;  %vm442_vm0 = vcmask 1044480   ;;  %v8254_v2 = vld [vmem:[%s11444_s1 + $0x8] sm:$0x3f]   ;;  %vm443_vm1 = vcmask 1045504   ;;  %p377_p3 = scmp.lt.s32.totalorder %s7151_s20, 1 }
  0x10   : > { %7982 = vmatprep.subr.bf16.mxu0 %v8253_v1  ;;  %8234 = vmatprep.subr.bf16.mxu1 %v8253_v1  ;;  %v8589_v3 = vmov 65535   ;;  %v8259_v6 = vld [vmem:[%s11444_s1] sm:$0xff]   ;;  %vm429_vm2 = vcmask 220160   ;;  %v8261_v9 = vld [vmem:[%s11444_s1 + $0x8] sm:$0x3f]   ;;  %vm520_vm3 = vcmask 1041408  }
  0x11   : > { %7983 = vmatpush3.bf16.msra.mxu0 %v8253_v1  ;;  %8236 = vmatpush3.bf16.msra.mxu1 %v8253_v1  ;;  %v444_v4 = vsel %vm442_vm0, 4294967295, %v8589_v3  ;;  %s11504_s20 = smov (!%p377_p3, %s7151_s20), 1  ;;  %v8260_v8 = vld [vmem:[%s11444_s1] sm:$0xff]   ;;  %v8262_v10 = vld [vmem:[%s11444_s1 + $0x8] sm:$0x3f]   ;;  %vm538_vm4 = vcmask 261120  }
  0x12   : > { %v8673_v5 = vsel %vm443_vm1, %v444_v4, 0  ;;  %s8238_s28 = smul.u32 452, %s11504_s20  ;;  %v8268_v19 = vld [vmem:[%s11444_s1] sm:$0xff]   ;;  %v8273_v33 = vld [vmem:[%s11444_s1 + $0x8] sm:$0x3f]   ;;  %vm542_vm5 = vcmask 259072   ;;  %s384_s12 = scalar_lea.vmem %s11454_s11, %s11504_s20 }
  0x13   : > { %v447_v7 = vand.u32 %v8254_v2, %v8673_v5  ;;  %v798_v14 = vand.u32 %v8262_v10, %v8673_v5  ;;  %v630_v16 = vand.u32 %v8261_v9, %v8673_v5  ;;  %v8272_v20 = vld [vmem:[%s11444_s1] sm:$0xff]   ;;  %v8274_v36 = vld [vmem:[%s11444_s1 + $0x8] sm:$0x3f]   ;;  %v973_v37 = vand.u32 %v8273_v33, %v8673_v5  ;;  %s8591_s18 = smov 32   ;;  %s8592_s13 = smov 96  }
  0x14   : > { %s8694_s16 = scalar_lea.vmem %s11443_s0, %s8238_s28  ;;  %v1141_v39 = vand.u32 %v8274_v36, %v8673_v5  ;;  %v8280_v45 = vld [vmem:[%s11444_s1] sm:$0xff]   ;;  %v8284_v51 = vld [vmem:[%s11444_s1 + $0x8] sm:$0x3f]   ;;  %vm564_vm6 = vcmask 260096   ;;  %vm2978_vm7 = vcmask 1043456   ;;  %vm2989_vm8 = vcmask 1046528  }
  0x15   : > { %7984 = vmatprep.subr.bf16.mxu0 %v447_v7  ;;  %8235 = vmatprep.subr.bf16.mxu1 %v447_v7  ;;  %v8255_v11 = vld [vmem:[%s8694_s16] sm:$0xff]   ;;  %v8256_v12 = vld [vmem:[%s8694_s16 + $0x10] sm:$0xff]   ;;  %v8257_v13 = vld [vmem:[%s8694_s16 + $0x8] sm:$0xff]   ;;  %v1316_v56 = vand.u32 %v8284_v51, %v8673_v5  ;;  %vm2995_vm9 = vcmask 1042432   ;;  %vm3131_vm10 = vcmask 523264   ;;  %vm3136_vm11 = vcmask 785408  }
  0x16   : > { %7985 = vmatpush3.bf16.msra.mxu0 %v447_v7  ;;  %8237 = vmatpush3.bf16.msra.mxu1 %v447_v7  ;;  %v8258_v15 = vld [vmem:[%s8694_s16 + $0x18] sm:$0x3f]   ;;  %v8263_v17 = vld [vmem:[%s8694_s16 + $0x1c] sm:$0xfc]   ;;  %v8264_v18 = vld [vmem:[%s8694_s16 + $0x24] sm:$0xff]   ;;  %vm3416_vm12 = vcmask 519168  }
  0x17   : > { %7994 = vmatprep.subr.bf16.mxu1 %v8259_v6  ;;  %8006 = vmatprep.subr.bf16.mxu0 %v8260_v8  ;;  %v8265_v21 = vld [vmem:[%s8694_s16 + $0x3c] sm:$0xff]   ;;  %v599_v22 = vrot.slane %v8263_v17, 2  ;;  %v600_v23 = vrot.slane %v8264_v18, 2  ;;  %v8266_v24 = vld [vmem:[%s8694_s16 + $0x2c] sm:$0xff]   ;;  %v8267_v26 = vld [vmem:[%s8694_s16 + $0x44] sm:$0xff]   ;;  %vm3430_vm13 = vcmask 521216  }
  0x18   : > { %7986 = vmatprep.mubr.msk.bf16.mxu0 %vm429_vm2, %v8255_v11  ;;  %7990 = vmatprep.mubr.msk.bf16.mxu1 %vm429_vm2, %v8256_v12  ;;  %v602_v27 = vrot.slane %v8266_v24, 2  ;;  %v8269_v28 = vld [vmem:[%s8694_s16 + $0x34] sm:$0xff]   ;;  %v8270_v29 = vld [vmem:[%s8694_s16 + $0x4c] sm:$0xff]   ;;  %v8276_v32 = vld [vmem:[%s8694_s16 + $0x60] sm:$0xff]   ;;  %vm8594_vm14 = vmmov 0   ;;  %vm7090_vm15 = vcmask 1040384  }
  0x19   : > { %7987 = vmatmul.mubr.msk.bf16.vlgmr.msra.gmra.mrb[0].mxu0 %vm429_vm2, %v8257_v13  ;;  %7991 = vmatmul.mubr.msk.bf16.vlgmr.msra.gmra.mrb[0].mxu1 %vm429_vm2, %v8258_v15  ;;  %v601_v25 = vsel %vm443_vm1, %v599_v22, %v600_v23  ;;  %v604_v31 = vrot.slane %v8269_v28, 2  ;;  %v8271_v35 = vld [vmem:[%s8694_s16 + $0x54] sm:$0x3f]   ;;  %v8275_v38 = vld [vmem:[%s8694_s16 + $0x58] sm:$0xfc]   ;;  %v943_v40 = vrot.slane %v8276_v32, 2 }
  0x1a   : > { %8007 = vmatpush3.bf16.msra.mxu0 %v8260_v8  ;;  %7995 = vmatpush3.bf16.msra.mxu1 %v8259_v6  ;;  %v603_v30 = vsel %vm443_vm1, %v600_v23, %v602_v27  ;;  %v942_v41 = vrot.slane %v8275_v38, 2  ;;  %v8277_v42 = vld [vmem:[%s8694_s16 + $0x78] sm:$0xff]   ;;  %v8278_v43 = vld [vmem:[%s8694_s16 + $0x68] sm:$0xff]   ;;  %v8281_v46 = vld [vmem:[%s8694_s16 + $0x70] sm:$0xff]   ;;  %vm7102_vm0 = vcmask 0  }
  0x1b   : > { %8008 = vmatprep.subr.bf16.mxu0 %v798_v14  ;;  %7996 = vmatprep.subr.bf16.mxu1 %v630_v16  ;;  %v605_v34 = vsel %vm443_vm1, %v602_v27, %v604_v31  ;;  %v945_v47 = vrot.slane %v8278_v43, 2  ;;  %v8279_v48 = vld [vmem:[%s8694_s16 + $0x80] sm:$0xff]   ;;  %v947_v49 = vrot.slane %v8281_v46, 2  ;;  %v8282_v50 = vld [vmem:[%s8694_s16 + $0x88] sm:$0xff]   ;;  %v8285_v57 = vld [vmem:[%s8694_s16 + $0x94] sm:$0xfc]  }
  0x1c   : > { %8010 = vmatprep.mubr.msk.bf16.mxu0 %vm429_vm2, %v8265_v21  ;;  %7998 = vmatprep.mubr.msk.bf16.mxu1 %vm429_vm2, %v601_v25  ;;  %v944_v44 = vsel %vm443_vm1, %v942_v41, %v943_v40  ;;  %v8286_v52 = vld [vmem:[%s8694_s16 + $0x9c] sm:$0xff]   ;;  %v8289_v58 = vld [vmem:[%s11444_s1 + $0x8] sm:$0x3f]   ;;  %v8283_v59 = vld [vmem:[%s8694_s16 + $0x90] sm:$0x3f]   ;;  %v1285_v62 = vrot.slane %v8285_v57, 2 }
  0x1d   : > { %v946_v53 = vsel %vm443_vm1, %v943_v40, %v945_v47  ;;  %v8287_v54 = vld [vmem:[%s11444_s1] sm:$0xff]   ;;  %v948_v55 = vsel %vm443_vm1, %v945_v47, %v947_v49  ;;  %v1286_v60 = vrot.slane %v8286_v52, 2  ;;  %v1484_v61 = vand.u32 %v8289_v58, %v8673_v5  ;;  %v8290_v1 = vld [vmem:[%s8694_s16 + $0xb4] sm:$0xff]   ;;  %v8291_v3 = vld [vmem:[%s8694_s16 + $0xac] sm:$0xff]  }
  0x1e   : > { %8009 = vmatpush3.bf16.msra.mxu0 %v798_v14  ;;  %7997 = vmatpush3.bf16.msra.mxu1 %v630_v16  ;;  %v8288_v63 = vld [vmem:[%s8694_s16 + $0xa4] sm:$0xff]   ;;  %v8292_v6 = vld [vmem:[%s8694_s16 + $0xbc] sm:$0xff]   ;;  %v1290_v8 = vrot.slane %v8291_v3, 2  ;;  %v8297_v13 = vld [vmem:[%s8694_s16 + $0xd0] sm:$0xfc]  }
  0x1f   : > { %8018 = vmatprep.subr.bf16.mxu1 %v8268_v19  ;;  %8030 = vmatprep.subr.bf16.mxu0 %v8272_v20  ;;  %v8293_v0 = vld [vmem:[%s11444_s1] sm:$0xff]   ;;  %v1287_v2 = vsel %vm443_vm1, %v1285_v62, %v1286_v60  ;;  %v1288_v4 = vrot.slane %v8288_v63, 2  ;;  %v8294_v7 = vld [vmem:[%s11444_s1 + $0x8] sm:$0x3f]   ;;  %v8298_v16 = vld [vmem:[%s8694_s16 + $0xd8] sm:$0xff]  }
  0x20   : > { %v8295_v9 = vld [vmem:[%s8694_s16 + $0xc4] sm:$0xff]   ;;  %v1659_v15 = vand.u32 %v8294_v7, %v8673_v5  ;;  %v8296_v18 = vld [vmem:[%s8694_s16 + $0xcc] sm:$0x3f]   ;;  %v8311_v41 = vld [vmem:[%s8694_s16 + $0x11c] sm:$0xff]  }
  0x21   : > { %8011 = vmatmul.mubr.msk.bf16.vlgmr.msra.gmra.mrb[4].mxu0 %vm429_vm2, %v8267_v26  ;;  %7999 = vmatmul.mubr.msk.bf16.vlgmr.msra.gmra.mrb[4].mxu1 %vm429_vm2, %v603_v30  ;;  %v8300_v10 = vld [vmem:[%s11444_s1] sm:$0xff]   ;;  %v8301_v11 = vld [vmem:[%s11444_s1 + $0x8] sm:$0x3f]   ;;  %v1289_v12 = vsel %vm443_vm1, %v1286_v60, %v1288_v4  ;;  %v1291_v14 = vsel %vm443_vm1, %v1288_v4, %v1290_v8  ;;  %v8303_v24 = vld [vmem:[%s8694_s16 + $0xf0] sm:$0xff]  }
  0x22   : > { %8014 = vmatprep.mubr.msk.bf16.mxu0 %vm429_vm2, %v8270_v29  ;;  %8019 = vmatpush3.bf16.msra.mxu1 %v8268_v19  ;;  %v1827_v17 = vand.u32 %v8301_v11, %v8673_v5  ;;  %v1628_v19 = vrot.slane %v8297_v13, 2  ;;  %v8299_v21 = vld [vmem:[%s8694_s16 + $0xe0] sm:$0xff]   ;;  %v8302_v23 = vld [vmem:[%s8694_s16 + $0xe8] sm:$0xff]   ;;  %v8304_v29 = vld [vmem:[%s8694_s16 + $0xf8] sm:$0xff]  }
  0x23   : > { %8031 = vmatpush3.bf16.msra.mxu0 %v8272_v20  ;;  %8002 = vmatprep.mubr.msk.bf16.mxu1 %vm429_vm2, %v605_v34  ;;  %v1629_v20 = vrot.slane %v8298_v16, 2  ;;  %v8305_v22 = vld [vmem:[%s11444_s1] sm:$0xff]   ;;  %v1631_v27 = vrot.slane %v8299_v21, 2  ;;  %v1633_v28 = vrot.slane %v8302_v23, 2  ;;  %v8306_v30 = vld [vmem:[%s11444_s1 + $0x8] sm:$0x3f]  }
  0x24   : > { %8020 = vmatprep.subr.bf16.mxu1 %v973_v37  ;;  %8032 = vmatprep.subr.bf16.mxu0 %v1141_v39  ;;  %v8312_v26 = vld [vmem:[%s11444_s1] sm:$0xff]   ;;  %v8308_v34 = vld [vmem:[%s8694_s16 + $0x10c] sm:$0xfc]   ;;  %v2002_v36 = vand.u32 %v8306_v30, %v8673_v5  ;;  %v8310_v40 = vld [vmem:[%s8694_s16 + $0x108] sm:$0x3f]  }
  0x25   : > { %v1630_v25 = vsel %vm443_vm1, %v1628_v19, %v1629_v20  ;;  %v8307_v32 = vld [vmem:[%s8694_s16 + $0x100] sm:$0xff]   ;;  %v1632_v33 = vsel %vm443_vm1, %v1629_v20, %v1631_v27  ;;  %v8321_v51 = vld [vmem:[%s8694_s16 + $0x148] sm:$0xfc]   ;;  %v8341_v30 = vld [vmem:[%s8694_s16 + $0x1b4] sm:$0xff]  }
  0x26   : > { %8021 = vmatpush3.bf16.msra.mxu1 %v973_v37  ;;  %v8309_v37 = vld [vmem:[%s8694_s16 + $0x114] sm:$0xff]   ;;  %v8317_v43 = vld [vmem:[%s11444_s1] sm:$0xff]   ;;  %v8327_v4 = vld [vmem:[%s8694_s16 + $0x168] sm:$0xff]  }
  0x27   : > { %8033 = vmatpush3.bf16.msra.mxu0 %v1141_v39  ;;  %8042 = vmatprep.subr.bf16.mxu1 %v8280_v45  ;;  %v1971_v39 = vrot.slane %v8308_v34, 2  ;;  %v8314_v47 = vld [vmem:[%s8694_s16 + $0x124] sm:$0xff]   ;;  %v8334_v11 = vld [vmem:[%s8694_s16 + $0x18c] sm:$0xff]  }
  0x28   : > { %8054 = vmatprep.subr.bf16.mxu0 %v8287_v54  ;;  %v1976_v52 = vrot.slane %v8314_v47, 2  ;;  %v8325_v58 = vld [vmem:[%s8694_s16 + $0x160] sm:$0xff]   ;;  %v8332_v7 = vld [vmem:[%s11444_s1 + $0x8] sm:$0x3f]  }
  0x29   : > { %8015 = vmatmul.mubr.msk.bf16.gmra.mrb[8].mxu0 %vm429_vm2, %v8271_v35  ;;  %8003 = vmatmul.mubr.msk.bf16.gmra.mrb[8].mxu1 %vm429_vm2, %v604_v31  ;;  %v8313_v31 = vld [vmem:[%s11444_s1 + $0x8] sm:$0x3f]   ;;  %v1634_v35 = vsel %vm443_vm1, %v1631_v27, %v1633_v28  ;;  %v8329_v3 = vld [vmem:[%s11444_s1] sm:$0xff]   ;;  %v2688_v16 = vand.u32 %v8332_v7, %v8673_v5 }
  0x2a   : > { %8034 = vmatprep.mubr.msk.bf16.mxu0 %vm429_vm2, %v8277_v42  ;;  %8022 = vmatprep.mubr.msk.bf16.mxu1 %vm429_vm2, %v944_v44  ;;  %v2170_v38 = vand.u32 %v8313_v31, %v8673_v5  ;;  %v1972_v42 = vrot.slane %v8309_v37, 2  ;;  %v8324_v44 = vld [vmem:[%s11444_s1] sm:$0xff]  }
  0x2b   : > { %v8331_v19 = vld [vmem:[%s8694_s16 + $0x180] sm:$0x3f]  }
  0x2c   : > { %v1973_v46 = vsel %vm443_vm1, %v1971_v39, %v1972_v42  ;;  %v8342_v31 = vld [vmem:[%s8694_s16 + $0x1bc] sm:$0x3f]  }
  0x31   : > { %8035 = vmatmul.mubr.msk.bf16.vlgmr.msra.gmra.mrb[12].mxu0 %vm429_vm2, %v8279_v48  ;;  %8023 = vmatmul.mubr.msk.bf16.vlgmr.msra.gmra.mrb[12].mxu1 %vm429_vm2, %v946_v53  ;;  %v1974_v48 = vrot.slane %v8311_v41, 2  ;;  %v8318_v53 = vld [vmem:[%s8694_s16 + $0x13c] sm:$0xff]  }
  0x32   : > { %8038 = vmatprep.mubr.msk.bf16.mxu0 %vm429_vm2, %v8282_v50  ;;  %8043 = vmatpush3.bf16.msra.mxu1 %v8280_v45  ;;  %v8315_v45 = vld [vmem:[%s8694_s16 + $0x12c] sm:$0xff]   ;;  %v8316_v50 = vld [vmem:[%s8694_s16 + $0x134] sm:$0xff]  }
  0x33   : > { %8026 = vmatprep.mubr.msk.bf16.mxu1 %vm429_vm2, %v948_v55  ;;  %8044 = vmatprep.subr.bf16.mxu1 %v1316_v56  ;;  %v8326_v55 = vld [vmem:[%s11444_s1 + $0x8] sm:$0x3f]   ;;  %v1975_v57 = vsel %vm443_vm1, %v1972_v42, %v1974_v48 }
  0x34   : > { %8055 = vmatpush3.bf16.msra.mxu0 %v8287_v54  ;;  %v8322_v54 = vld [vmem:[%s8694_s16 + $0x150] sm:$0xff]   ;;  %v2513_v62 = vand.u32 %v8326_v55, %v8673_v5 }
  0x35   : > { %8056 = vmatprep.subr.bf16.mxu0 %v1484_v61  ;;  %v2315_v63 = vrot.slane %v8322_v54, 2 }
  0x36   : > { %8045 = vmatpush3.bf16.msra.mxu1 %v1316_v56  ;;  %v8323_v56 = vld [vmem:[%s8694_s16 + $0x158] sm:$0xff]  }
  0x37   : > { %8066 = vmatprep.subr.bf16.mxu1 %v8293_v0 }
  0x38   : > { %8057 = vmatpush3.bf16.msra.mxu0 %v1484_v61  ;;  %v2314_v61 = vrot.slane %v8321_v51, 2 }
  0x39   : > { %8039 = vmatmul.mubr.msk.bf16.gmra.mrb[16].mxu0 %vm429_vm2, %v8283_v59  ;;  %8027 = vmatmul.mubr.msk.bf16.gmra.mrb[16].mxu1 %vm429_vm2, %v947_v49  ;;  %v8320_v49 = vld [vmem:[%s11444_s1 + $0x8] sm:$0x3f]   ;;  %v1977_v59 = vsel %vm443_vm1, %v1974_v48, %v1976_v52 }
  0x3a   : > { %8058 = vmatprep.mubr.msk.bf16.mxu0 %vm429_vm2, %v8290_v1  ;;  %8046 = vmatprep.mubr.msk.bf16.mxu1 %vm429_vm2, %v1287_v2  ;;  %v2345_v60 = vand.u32 %v8320_v49, %v8673_v5  ;;  %v8319_v1 = vld [vmem:[%s8694_s16 + $0x144] sm:$0x3f]   ;;  %v2319_v2 = vrot.slane %v8325_v58, 2 }
  0x3b   : > { %8078 = vmatprep.subr.bf16.mxu0 %v8300_v10 }
  0x41   : > { %8059 = vmatmul.mubr.msk.bf16.vlgmr.msra.gmra.mrb[20].mxu0 %vm429_vm2, %v8292_v6  ;;  %8047 = vmatmul.mubr.msk.bf16.vlgmr.msra.gmra.mrb[20].mxu1 %vm429_vm2, %v1289_v12  ;;  %v2316_v6 = vsel %vm443_vm1, %v2314_v61, %v2315_v63  ;;  %v8335_v12 = vld [vmem:[%s8694_s16 + $0x194] sm:$0xff]  }
  0x42   : > { %8062 = vmatprep.mubr.msk.bf16.mxu0 %vm429_vm2, %v8295_v9  ;;  %8050 = vmatprep.mubr.msk.bf16.mxu1 %vm429_vm2, %v1291_v14  ;;  %v8330_v9 = vld [vmem:[%s8694_s16 + $0x178] sm:$0xff]   ;;  %v2660_v20 = vrot.slane %v8335_v12, 2 }
  0x43   : > { %8067 = vmatpush3.bf16.msra.mxu1 %v8293_v0  ;;  %8079 = vmatpush3.bf16.msra.mxu0 %v8300_v10  ;;  %v2317_v0 = vrot.slane %v8323_v56, 2  ;;  %v8333_v10 = vld [vmem:[%s8694_s16 + $0x184] sm:$0xfc]   ;;  %v8336_v14 = vld [vmem:[%s8694_s16 + $0x19c] sm:$0xff]  }
  0x44   : > { %8068 = vmatprep.subr.bf16.mxu1 %v1659_v15  ;;  %8080 = vmatprep.subr.bf16.mxu0 %v1827_v17  ;;  %v2662_v21 = vrot.slane %v8336_v14, 2 }
  0x45   : > { %v2318_v13 = vsel %vm443_vm1, %v2315_v63, %v2317_v0 }
  0x47   : > { %8069 = vmatpush3.bf16.msra.mxu1 %v1659_v15  ;;  %8081 = vmatpush3.bf16.msra.mxu0 %v1827_v17  ;;  %v2320_v15 = vsel %vm443_vm1, %v2317_v0, %v2319_v2  ;;  %v2657_v17 = vrot.slane %v8333_v10, 2  ;;  %v8951_v0 = vld [vmem:[%s11445_s2] ss:$0 sm:$0xff] }
  0x48   : > { %8090 = vmatprep.subr.bf16.mxu1 %v8305_v22  ;;  %8102 = vmatprep.subr.bf16.mxu0 %v8312_v26 }
  0x49   : > { %8063 = vmatmul.mubr.msk.bf16.gmra.mrb[24].mxu0 %vm429_vm2, %v8296_v18  ;;  %8051 = vmatmul.mubr.msk.bf16.gmra.mrb[24].mxu1 %vm429_vm2, %v1290_v8  ;;  %v8328_v8 = vld [vmem:[%s8694_s16 + $0x170] sm:$0xff]   ;;  %v2658_v18 = vrot.slane %v8334_v11, 2 }
  0x4a   : > { %8082 = vmatprep.mubr.msk.bf16.mxu0 %vm429_vm2, %v8303_v24  ;;  %8070 = vmatprep.mubr.msk.bf16.mxu1 %vm429_vm2, %v1630_v25  ;;  %v2663_v24 = vsel %vm443_vm1, %v2660_v20, %v2662_v21  ;;  %v8337_v25 = vld [vmem:[%s11444_s1] sm:$0xff]  }
  0x4b   : > { %v2661_v23 = vsel %vm443_vm1, %v2658_v18, %v2660_v20 }
  0x51   : > { %8083 = vmatmul.mubr.msk.bf16.vlgmr.msra.gmra.mrb[28].mxu0 %vm429_vm2, %v8304_v29  ;;  %8071 = vmatmul.mubr.msk.bf16.vlgmr.msra.gmra.mrb[28].mxu1 %vm429_vm2, %v1632_v33  ;;  %v8340_v29 = vld [vmem:[%s8694_s16 + $0x1ac] sm:$0xff]  }
  0x52   : > { %8086 = vmatprep.mubr.msk.bf16.mxu0 %vm429_vm2, %v8307_v32  ;;  %8074 = vmatprep.mubr.msk.bf16.mxu1 %vm429_vm2, %v1634_v35  ;;  %v8343_v32 = vld [vmem:[%s11446_s3 + $0x80] sm:$0xff]   ;;  %v8344_v33 = vld [vmem:[%s11446_s3 + $0x88] sm:$0xff]  }
  0x53   : > { %8091 = vmatpush3.bf16.msra.mxu1 %v8305_v22  ;;  %8103 = vmatpush3.bf16.msra.mxu0 %v8312_v26  ;;  %v2659_v22 = vsel %vm443_vm1, %v2657_v17, %v2658_v18  ;;  %v8338_v26 = vld [vmem:[%s11444_s1 + $0x8] sm:$0x3f]  }
  0x54   : > { %8092 = vmatprep.subr.bf16.mxu1 %v2002_v36  ;;  %8104 = vmatprep.subr.bf16.mxu0 %v2170_v38  ;;  %v2856_v27 = vand.u32 %v8338_v26, %v8673_v5 }
  0x57   : > { %8093 = vmatpush3.bf16.msra.mxu1 %v2002_v36  ;;  %8105 = vmatpush3.bf16.msra.mxu0 %v2170_v38 }
  0x58   : > { %8114 = vmatprep.subr.bf16.mxu1 %v8317_v43  ;;  %8126 = vmatprep.subr.bf16.mxu0 %v8324_v44 }
  0x59   : > { %8087 = vmatmul.mubr.msk.bf16.gmra.mrb[32].mxu0 %vm429_vm2, %v8310_v40  ;;  %8075 = vmatmul.mubr.msk.bf16.gmra.mrb[32].mxu1 %vm429_vm2, %v1633_v28  ;;  %v8339_v28 = vld [vmem:[%s8694_s16 + $0x1a4] sm:$0xff]   ;;  %s8590_s16 = smov 64  }
  0x5a   : > { %8106 = vmatprep.mubr.msk.bf16.mxu0 %vm429_vm2, %v8315_v45  ;;  %8094 = vmatprep.mubr.msk.bf16.mxu1 %vm429_vm2, %v1973_v46 }
  0x61   : > { %8107 = vmatmul.mubr.msk.bf16.vlgmr.msra.gmra.mrb[36].mxu0 %vm429_vm2, %v8316_v50  ;;  %8095 = vmatmul.mubr.msk.bf16.vlgmr.msra.gmra.mrb[36].mxu1 %vm429_vm2, %v1975_v57 }
  0x62   : > { %8110 = vmatprep.mubr.msk.bf16.mxu0 %vm429_vm2, %v8318_v53  ;;  %8098 = vmatprep.mubr.msk.bf16.mxu1 %vm429_vm2, %v1977_v59 }
  0x63   : > { %8115 = vmatpush3.bf16.msra.mxu1 %v8317_v43  ;;  %8127 = vmatpush3.bf16.msra.mxu0 %v8324_v44 }
  0x64   : > { %8116 = vmatprep.subr.bf16.mxu1 %v2345_v60  ;;  %8128 = vmatprep.subr.bf16.mxu0 %v2513_v62 }
  0x67   : > { %8117 = vmatpush3.bf16.msra.mxu1 %v2345_v60  ;;  %8129 = vmatpush3.bf16.msra.mxu0 %v2513_v62 }
  0x68   : > { %8138 = vmatprep.subr.bf16.mxu1 %v8329_v3  ;;  %8150 = vmatprep.subr.bf16.mxu0 %v8337_v25 }
  0x69   : > { %8111 = vmatmul.mubr.msk.bf16.gmra.mrb[40].mxu0 %vm429_vm2, %v8319_v1  ;;  %8099 = vmatmul.mubr.msk.bf16.gmra.mrb[40].mxu1 %vm429_vm2, %v1976_v52 }
  0x6a   : > { %8130 = vmatprep.mubr.msk.bf16.mxu0 %vm429_vm2, %v8327_v4  ;;  %8118 = vmatprep.mubr.msk.bf16.mxu1 %vm429_vm2, %v2316_v6 }
  0x71   : > { %8131 = vmatmul.mubr.msk.bf16.vlgmr.msra.gmra.mrb[44].mxu0 %vm429_vm2, %v8328_v8  ;;  %8119 = vmatmul.mubr.msk.bf16.vlgmr.msra.gmra.mrb[44].mxu1 %vm429_vm2, %v2318_v13 }
  0x72   : > { %8134 = vmatprep.mubr.msk.bf16.mxu0 %vm429_vm2, %v8330_v9  ;;  %8122 = vmatprep.mubr.msk.bf16.mxu1 %vm429_vm2, %v2320_v15 }
  0x73   : > { %8139 = vmatpush3.bf16.msra.mxu1 %v8329_v3  ;;  %8151 = vmatpush3.bf16.msra.mxu0 %v8337_v25 }
  0x74   : > { %8140 = vmatprep.subr.bf16.mxu1 %v2688_v16  ;;  %8152 = vmatprep.subr.bf16.mxu0 %v2856_v27 }
  0x77   : > { %8141 = vmatpush3.bf16.msra.mxu1 %v2688_v16  ;;  %8153 = vmatpush3.bf16.msra.mxu0 %v2856_v27 }
  0x78   : > { %8162 = vmatprep.subr.bf16.mxu0 %v8343_v32 }
  0x79   : > { %8135 = vmatmul.mubr.msk.bf16.gmra.mrb[48].mxu0 %vm429_vm2, %v8331_v19  ;;  %8123 = vmatmul.mubr.msk.bf16.gmra.mrb[48].mxu1 %vm429_vm2, %v2319_v2 }
  0x7a   : > { %8142 = vmatprep.mubr.msk.bf16.mxu1 %vm429_vm2, %v2659_v22  ;;  %8154 = vmatprep.mubr.msk.bf16.mxu0 %vm429_vm2, %v8339_v28 }
  0x81   : > { %8143 = vmatmul.mubr.msk.bf16.vlgmr.msra.gmra.mrb[52].mxu1 %vm429_vm2, %v2661_v23  ;;  %8155 = vmatmul.mubr.msk.bf16.vlgmr.msra.gmra.mrb[52].mxu0 %vm429_vm2, %v8340_v29 }
  0x82   : > { %8146 = vmatprep.mubr.msk.bf16.mxu1 %vm429_vm2, %v2663_v24  ;;  %8158 = vmatprep.mubr.msk.bf16.mxu0 %vm429_vm2, %v8341_v30 }
  0x83   : > { %8163 = vmatpush3.bf16.msra.mxu0 %v8343_v32 }
  0x84   : > { %8164 = vmatprep.subr.bf16.mxu0 %v8344_v33 }
  0x87   : > { %8165 = vmatpush3.bf16.msra.mxu0 %v8344_v33 }
  0x89   : > { %8147 = vmatmul.mubr.msk.bf16.gmra.mrb[56].mxu1 %vm429_vm2, %v2662_v21  ;;  %8159 = vmatmul.mubr.msk.bf16.gmra.mrb[56].mxu0 %vm429_vm2, %v8342_v31 }
  0xec   : > { %v7988_v5 = vpop.f32.mrb[0].mxu0  ;;  %v7992_v34 = vpop.f32.mrb[0].mxu1 }
  0xed   : > { %v483_v35 = vpop.f32.mrb[1].mxu0  ;;  %v526_v36 = vrot.slane %v7992_v34, 6  ;;  %v499_v37 = vpop.f32.mrb[1].mxu1 }
  0xee   : > { %v7989_v38 = vpop.f32.mrb[2].mxu0  ;;  %v522_v39 = vrot.slane %v499_v37, 6  ;;  %v7993_v41 = vpop.f32.mrb[2].mxu1 }
  0xef   : > { %v521_v40 = vrot.slane %v7989_v38, 6  ;;  %v486_v42 = vpop.f32.mrb[3].mxu0  ;;  %v528_v43 = vrot.slane %v7993_v41, 6  ;;  %v502_v44 = vpop.f32.mrb[3].mxu1 }
  0xf0   : > { %v524_v46 = vrot.slane %v502_v44, 6 }
  0xf1   : > { %v523_v45 = vsel %vm520_vm3, %v521_v40, %v522_v39  ;;  %v529_v48 = vsel %vm520_vm3, %v526_v36, %v528_v43 }
  0xf2   : > { %v534_v47 = vmax.f32 %v483_v35, %v523_v45  ;;  %v537_v49 = vmax.f32 %v7989_v38, %v529_v48  ;;  %v527_v50 = vsel %vm520_vm3, %v524_v46, %v526_v36  ;;  %v525_v51 = vsel %vm520_vm3, %v522_v39, %v524_v46 }
  0xf3   : > { %v536_v52 = vmax.f32 %v7988_v5, %v527_v50  ;;  %v535_v53 = vmax.f32 %v486_v42, %v525_v51 }
  0xf4   : > { %539 = vst.msk [vmem:[#allocation5] sm:$0xff] %vm538_vm4, %v534_v47  ;;  %v8934_v54 = vpop.f32.mrb[4].mxu0  ;;  %v8937_v55 = vpop.f32.mrb[4].mxu1 }
  0xf5   : > { %543 = vst.msk [vmem:[#allocation5 + $0x18] sm:$0x3f] %vm542_vm5, %v537_v49  ;;  %v8939_v56 = vpop.f32.mrb[5].mxu0  ;;  %v666_v57 = vpop.f32.mrb[5].mxu1 }
  0xf6   : > { %541 = vst.msk [vmem:[#allocation5 + $0x10] sm:$0xff] %vm538_vm4, %v536_v52  ;;  %540 = vst.msk [vmem:[#allocation5 + $0x8] sm:$0xff] %vm538_vm4, %v535_v53  ;;  %v8943_v58 = vpop.f32.mrb[6].mxu0  ;;  %v8001_v59 = vpop.f32.mrb[6].mxu1 }
  0xf7   : > { %v8945_v60 = vpop.f32.mrb[7].mxu0  ;;  %v669_v61 = vpop.f32.mrb[7].mxu1  ;;  %v871_v62 = vrot.slane %v8943_v58, 6  ;;  %v703_v6 = vrot.slane %v8001_v59, 6 }
  0xfc   : > { %v8016_v63 = vpop.f32.mrb[8].mxu0  ;;  %v8004_v7 = vpop.f32.mrb[8].mxu1 }
  0xfd   : > { %v546_v1 = vld [vmem:[#allocation5 + $0x10] ss:$2 sm:$0x7f]  ;;  %v550_v2 = vld [vmem:[#allocation5 + $0x11] ss:$2 sm:$0x7f] }
  0xfe   : > { %v544_v3 = vld [vmem:[#allocation5] ss:$2 sm:$0xff]  ;;  %v548_v4 = vld [vmem:[#allocation5 + $0x1] ss:$2 sm:$0xff]  ;;  %v552_v8 = vmax.f32 %v546_v1, %v550_v2  ;;  %v708_v9 = vrot.slane %v8004_v7, 6  ;;  %v876_v10 = vrot.slane %v8016_v63, 6 }
  0xff   : > { %v682_v11 = vpop.f32.mrb[9].mxu1  ;;  %v850_v12 = vpop.f32.mrb[9].mxu0  ;;  %v551_v13 = vmax.f32 %v544_v3, %v548_v4 }
 0x100   : > { %v704_v14 = vrot.slane %v682_v11, 6  ;;  %v872_v15 = vrot.slane %v850_v12, 6  ;;  %v8005_v16 = vpop.f32.mrb[10].mxu1  ;;  %v8017_v17 = vpop.f32.mrb[10].mxu0  ;;  %v560_v23 = vadd.f32 %v8951_v0, %v552_v8 }
 0x101   : > { %v710_v18 = vrot.slane %v8005_v16, 6  ;;  %v878_v19 = vrot.slane %v8017_v17, 6  ;;  %v685_v20 = vpop.f32.mrb[11].mxu1  ;;  %v853_v21 = vpop.f32.mrb[11].mxu0  ;;  %v559_v22 = vadd.f32 %v8951_v0, %v551_v13 }
 0x102   : > { %v705_v24 = vsel %vm520_vm3, %v703_v6, %v704_v14  ;;  %v873_v25 = vsel %vm520_vm3, %v871_v62, %v872_v15  ;;  %v706_v26 = vrot.slane %v685_v20, 6  ;;  %v874_v27 = vrot.slane %v853_v21, 6 }
 0x103   : > { %v716_v28 = vmax.f32 %v666_v57, %v705_v24  ;;  %v884_v29 = vmax.f32 %v8939_v56, %v873_v25  ;;  %v711_v30 = vsel %vm520_vm3, %v708_v9, %v710_v18  ;;  %v879_v31 = vsel %vm520_vm3, %v876_v10, %v878_v19 }
 0x104   : > { %v719_v32 = vmax.f32 %v8001_v59, %v711_v30  ;;  %v887_v33 = vmax.f32 %v8943_v58, %v879_v31  ;;  %v707_v5 = vsel %vm520_vm3, %v704_v14, %v706_v26  ;;  %v709_v34 = vsel %vm520_vm3, %v706_v26, %v708_v9  ;;  %v8963_v35 = vpop.f32.mrb[12].mxu0  ;;  %v8969_v40 = vpop.f32.mrb[12].mxu1 }
 0x105   : > { %720 = vst.msk [vmem:[#allocation5] sm:$0xff] %vm538_vm4, %v716_v28  ;;  %v717_v36 = vmax.f32 %v669_v61, %v707_v5  ;;  %v718_v37 = vmax.f32 %v8937_v55, %v709_v34  ;;  %v875_v38 = vsel %vm520_vm3, %v872_v15, %v874_v27  ;;  %v877_v39 = vsel %vm520_vm3, %v874_v27, %v876_v10  ;;  %v8971_v41 = vpop.f32.mrb[13].mxu0  ;;  %v8976_v44 = vpop.f32.mrb[13].mxu1 }
 0x106   : > { %723 = vst.msk [vmem:[#allocation5 + $0x18] sm:$0x3f] %vm542_vm5, %v719_v32  ;;  %v885_v42 = vmax.f32 %v8945_v60, %v875_v38  ;;  %v886_v43 = vmax.f32 %v8934_v54, %v877_v39  ;;  %v8978_v45 = vpop.f32.mrb[14].mxu0  ;;  %v561_v46 = vmax.f32 %v559_v22, 0.0  ;;  %v562_v47 = vmax.f32 %v560_v23, 0.0  ;;  %v8982_v48 = vpop.f32.mrb[14].mxu1 }
 0x107   : > { %721 = vst.msk [vmem:[#allocation5 + $0x8] sm:$0xff] %vm538_vm4, %v717_v36  ;;  %722 = vst.msk [vmem:[#allocation5 + $0x10] sm:$0xff] %vm538_vm4, %v718_v37  ;;  %v8984_v49 = vpop.f32.mrb[15].mxu0  ;;  %v8986_v50 = vpop.f32.mrb[15].mxu1  ;;  %v1214_v52 = vrot.slane %v8978_v45, 6  ;;  %v1046_v62 = vrot.slane %v8982_v48, 6 }
 0x108   : > { %563 = vst.msk [vmem:[#allocation2] sm:$0xff] %vm538_vm4, %v561_v46 }
 0x109   : > { %565 = vst.msk [vmem:[#allocation2 + $0x8] sm:$0x7f] %vm564_vm6, %v562_v47 }
 0x10c   : > { %v8040_v51 = vpop.f32.mrb[16].mxu0  ;;  %v8028_v53 = vpop.f32.mrb[16].mxu1 }
 0x10d   : > { %v1219_v54 = vrot.slane %v8040_v51, 6  ;;  %v1193_v55 = vpop.f32.mrb[17].mxu0  ;;  %v1051_v58 = vrot.slane %v8028_v53, 6  ;;  %v1025_v61 = vpop.f32.mrb[17].mxu1  ;;  %v8346_v53 = vld [vmem:[%s11446_s3] sm:$0xff]  }
 0x10e   : > { %v724_v56 = vld [vmem:[#allocation5] ss:$2 sm:$0xff]  ;;  %v725_v57 = vld [vmem:[#allocation5 + $0x10] ss:$2 sm:$0x7f]  ;;  %v1047_v63 = vrot.slane %v1025_v61, 6 }
 0x10f   : > { %v726_v59 = vld [vmem:[#allocation5 + $0x1] ss:$2 sm:$0xff]  ;;  %v727_v60 = vld [vmem:[#allocation5 + $0x11] ss:$2 sm:$0x7f]  ;;  %v1215_v1 = vrot.slane %v1193_v55, 6 }
 0x110   : > { %888 = vst.msk [vmem:[#allocation5] sm:$0xff] %vm538_vm4, %v884_v29  ;;  %889 = vst.msk [vmem:[#allocation5 + $0x8] sm:$0xff] %vm538_vm4, %v885_v42  ;;  %v8029_v2 = vpop.f32.mrb[18].mxu1  ;;  %v8041_v3 = vpop.f32.mrb[18].mxu0  ;;  %v728_v9 = vmax.f32 %v724_v56, %v726_v59  ;;  %v729_v10 = vmax.f32 %v725_v57, %v727_v60  ;;  %v1048_v11 = vsel %vm520_vm3, %v1046_v62, %v1047_v63  ;;  %v9038_v42 = vld [vmem:[#allocation2] sm:$0xff] }
 0x111   : > { %891 = vst.msk [vmem:[#allocation5 + $0x18] sm:$0x3f] %vm542_vm5, %v887_v33  ;;  %v1053_v4 = vrot.slane %v8029_v2, 6  ;;  %v1221_v6 = vrot.slane %v8041_v3, 6  ;;  %v1028_v7 = vpop.f32.mrb[19].mxu1  ;;  %v1196_v8 = vpop.f32.mrb[19].mxu0  ;;  %v8998_v12 = vsel %vm520_vm3, %v1214_v52, %v1215_v1  ;;  %v1059_v15 = vmax.f32 %v8976_v44, %v1048_v11 }
 0x112   : > { %890 = vst.msk [vmem:[#allocation5 + $0x10] sm:$0xff] %vm538_vm4, %v886_v43  ;;  %v1049_v13 = vrot.slane %v1028_v7, 6  ;;  %v1217_v14 = vrot.slane %v1196_v8, 6  ;;  %v1227_v16 = vmax.f32 %v8971_v41, %v8998_v12  ;;  %v736_v33 = vadd.f32 %v8951_v0, %v728_v9  ;;  %v9048_v47 = vld [vmem:[#allocation2 + $0x8] sm:$0x7f]  ;;  %v8345_v52 = vld [vmem:[%s11446_s3 + $0x40] sm:$0xff]  }
 0x113   : > { %v1054_v17 = vsel %vm520_vm3, %v1051_v58, %v1053_v4  ;;  %v9005_v18 = vsel %vm520_vm3, %v1219_v54, %v1221_v6  ;;  %v737_v38 = vadd.f32 %v8951_v0, %v729_v10  ;;  %7648 = vmatprep.subr.bf16.mxu1 %v8345_v52  ;;  %v3005_v61 = vrot.slane %v9048_v47, 2 }
 0x114   : > { %v1062_v19 = vmax.f32 %v8982_v48, %v1054_v17  ;;  %v1230_v20 = vmax.f32 %v8978_v45, %v9005_v18  ;;  %v1050_v21 = vsel %vm520_vm3, %v1047_v63, %v1049_v13  ;;  %v1052_v22 = vsel %vm520_vm3, %v1049_v13, %v1051_v58  ;;  %v9012_v23 = vpop.f32.mrb[20].mxu0  ;;  %v9022_v28 = vpop.f32.mrb[20].mxu1  ;;  %7649 = vmatpush3.bf16.msra.mxu1 %v8346_v53  ;;  %v8348_v17 = vld [vmem:[%s11446_s3 + $0x8] sm:$0xff]  }
 0x115   : > { %v1060_v24 = vmax.f32 %v8986_v50, %v1050_v21  ;;  %v1061_v25 = vmax.f32 %v8969_v40, %v1052_v22  ;;  %v9017_v26 = vsel %vm520_vm3, %v1215_v1, %v1217_v14  ;;  %v9020_v27 = vsel %vm520_vm3, %v1217_v14, %v1219_v54  ;;  %v9024_v29 = vpop.f32.mrb[21].mxu0  ;;  %v9030_v32 = vpop.f32.mrb[21].mxu1 }
 0x116   : > { %v1228_v30 = vmax.f32 %v8984_v49, %v9017_v26  ;;  %v1229_v31 = vmax.f32 %v8963_v35, %v9020_v27  ;;  %v9033_v5 = vpop.f32.mrb[22].mxu0  ;;  %v9035_v37 = vpop.f32.mrb[22].mxu1  ;;  %v738_v44 = vmax.f32 %v736_v33, 0.0  ;;  %v739_v48 = vmax.f32 %v737_v38, 0.0  ;;  %v8349_v49 = vld [vmem:[%s11446_s3 + $0x50] sm:$0xff]  }
 0x117   : > { %v892_v34 = vld [vmem:[#allocation5] ss:$2 sm:$0xff]  ;;  %v894_v39 = vld [vmem:[#allocation5 + $0x1] ss:$2 sm:$0xff]  ;;  %v9044_v43 = vpop.f32.mrb[23].mxu1  ;;  %v9046_v46 = vpop.f32.mrb[23].mxu0 }
 0x118   : > { %1063 = vst.msk [vmem:[#allocation5] sm:$0xff] %vm538_vm4, %v1059_v15  ;;  %1064 = vst.msk [vmem:[#allocation5 + $0x8] sm:$0xff] %vm538_vm4, %v1060_v24  ;;  %v896_v50 = vmax.f32 %v892_v34, %v894_v39  ;;  %v3004_v54 = vrot.slane %v9038_v42, 2  ;;  %v1389_v55 = vrot.slane %v9035_v37, 6  ;;  %v1557_v56 = vrot.slane %v9033_v5, 6  ;;  %v8347_v15 = vld [vmem:[%s11446_s3 + $0x48] sm:$0xff]  }
 0x119   : > { %v893_v36 = vld [vmem:[#allocation5 + $0x10] ss:$2 sm:$0x7f]  ;;  %v895_v40 = vld [vmem:[#allocation5 + $0x11] ss:$2 sm:$0x7f]  ;;  %7650 = vmatprep.subr.bf16.mxu1 %v8347_v15 }
 0x11a   : > { %1066 = vst.msk [vmem:[#allocation5 + $0x18] sm:$0x3f] %vm542_vm5, %v1062_v19  ;;  %v897_v51 = vmax.f32 %v893_v36, %v895_v40  ;;  %v904_v58 = vadd.f32 %v8951_v0, %v896_v50  ;;  %v2990_v62 = vrot.slane %v9038_v42, 1  ;;  %v2991_v63 = vrot.slane %v9048_v47, 1  ;;  %7651 = vmatpush3.bf16.msra.mxu1 %v8348_v17  ;;  %v8350_v35 = vld [vmem:[%s11446_s3 + $0x10] sm:$0xff]  }
 0x11b   : > { %1065 = vst.msk [vmem:[#allocation5 + $0x10] sm:$0xff] %vm538_vm4, %v1061_v25  ;;  %740 = vst.msk [vmem:[#allocation2 + $0xf] sm:$0xff] %vm538_vm4, %v738_v44  ;;  %v3006_v38 = vsel %vm443_vm1, %v3004_v54, %v3005_v61  ;;  %7652 = vmatprep.subr.bf16.mxu1 %v8349_v49 }
 0x11c   : > { %v9060_v57 = vpop.f32.mrb[24].mxu0  ;;  %741 = vst.msk [vmem:[#allocation2 + $0x17] sm:$0x7f] %vm564_vm6, %v739_v48  ;;  %v905_v59 = vadd.f32 %v8951_v0, %v897_v51  ;;  %v8052_v60 = vpop.f32.mrb[24].mxu1  ;;  %v906_v8 = vmax.f32 %v904_v58, 0.0  ;;  %v2992_v44 = vsel %vm2989_vm8, %v2990_v62, %v2991_v63 }
 0x11d   : > { %v1562_v1 = vrot.slane %v9060_v57, 6  ;;  %v1536_v2 = vpop.f32.mrb[25].mxu0  ;;  %v1394_v3 = vrot.slane %v8052_v60, 6  ;;  %v1368_v4 = vpop.f32.mrb[25].mxu1 }
 0x11e   : > { %v1558_v6 = vrot.slane %v1536_v2, 6  ;;  %v8065_v7 = vpop.f32.mrb[26].mxu0  ;;  %v907_v9 = vmax.f32 %v905_v59, 0.0  ;;  %v1390_v10 = vrot.slane %v1368_v4, 6  ;;  %v8053_v11 = vpop.f32.mrb[26].mxu1  ;;  %908 = vst.msk [vmem:[#allocation2 + $0x1e] sm:$0xff] %vm538_vm4, %v906_v8  ;;  %7653 = vmatpush3.bf16.msra.mxu1 %v8350_v35 }
 0x11f   : > { %v1564_v13 = vrot.slane %v8065_v7, 6  ;;  %v1539_v14 = vpop.f32.mrb[27].mxu0  ;;  %v9075_v19 = vld [vmem:[#allocation5] ss:$2 sm:$0xff]  ;;  %v1396_v22 = vrot.slane %v8053_v11, 6  ;;  %v1371_v36 = vpop.f32.mrb[27].mxu1 }
 0x120   : > { %v9080_v24 = vsel %vm520_vm3, %v1557_v56, %v1558_v6  ;;  %909 = vst.msk [vmem:[#allocation2 + $0x26] sm:$0x7f] %vm564_vm6, %v907_v9  ;;  %v9084_v25 = vld [vmem:[#allocation5 + $0x1] ss:$2 sm:$0xff]  ;;  %v9089_v34 = vsel %vm520_vm3, %v1389_v55, %v1390_v10 }
 0x121   : > { %v1570_v39 = vmax.f32 %v9024_v29, %v9080_v24  ;;  %v9097_v40 = vsel %vm520_vm3, %v1562_v1, %v1564_v13  ;;  %1231 = vst.msk [vmem:[#allocation5] sm:$0xff] %vm538_vm4, %v1227_v16  ;;  %1232 = vst.msk [vmem:[#allocation5 + $0x8] sm:$0xff] %vm538_vm4, %v1228_v30  ;;  %v1402_v41 = vmax.f32 %v9030_v32, %v9089_v34  ;;  %v1392_v16 = vrot.slane %v1371_v36, 6 }
 0x122   : > { %v9077_v21 = vld [vmem:[#allocation5 + $0x10] ss:$2 sm:$0x7f]  ;;  %v9086_v33 = vld [vmem:[#allocation5 + $0x11] ss:$2 sm:$0x7f]  ;;  %v1397_v12 = vsel %vm520_vm3, %v1394_v3, %v1396_v22  ;;  %v1573_v45 = vmax.f32 %v9033_v5, %v9097_v40 }
 0x123   : > { %1234 = vst.msk [vmem:[#allocation5 + $0x18] sm:$0x3f] %vm542_vm5, %v1230_v20  ;;  %v9118_v42 = vld [vmem:[#allocation2 + $0xf] sm:$0xff]  ;;  %v1405_v18 = vmax.f32 %v9035_v37, %v1397_v12  ;;  %v9131_v27 = vld [vmem:[#allocation2 + $0x17] sm:$0x7f]  ;;  %v1560_v30 = vrot.slane %v1539_v14, 6  ;;  %v1395_v32 = vsel %vm520_vm3, %v1392_v16, %v1394_v3  ;;  %v1071_v14 = vmax.f32 %v9075_v19, %v9084_v25 }
 0x124   : > { %1233 = vst.msk [vmem:[#allocation5 + $0x10] sm:$0xff] %vm538_vm4, %v1229_v31  ;;  %v3009_v20 = vrot.slane %v9118_v42, 6  ;;  %v2996_v26 = vrot.slane %v9118_v42, 5  ;;  %v1393_v31 = vsel %vm520_vm3, %v1390_v10, %v1392_v16  ;;  %v2997_v47 = vrot.slane %v9131_v27, 5  ;;  %v9137_v48 = vpop.f32.mrb[28].mxu0  ;;  %v9143_v53 = vpop.f32.mrb[28].mxu1 }
 0x125   : > { %v1403_v37 = vmax.f32 %v9044_v43, %v1393_v31  ;;  %v1404_v50 = vmax.f32 %v9022_v28, %v1395_v32  ;;  %v9145_v54 = vpop.f32.mrb[29].mxu0  ;;  %v9148_v58 = vsel %vm520_vm3, %v1558_v6, %v1560_v30  ;;  %v3010_v59 = vrot.slane %v9131_v27, 6  ;;  %v9151_v60 = vpop.f32.mrb[29].mxu1  ;;  %v8351_v28 = vld [vmem:[%s11446_s3 + $0x58] sm:$0xff]   ;;  %v8353_v12 = vld [vmem:[%s11446_s3 + $0x60] sm:$0xff]  }
 0x126   : > { %v3014_v51 = vsel %vm2978_vm7, %v3005_v61, %v3009_v20  ;;  %v3001_v52 = vsel %vm2978_vm7, %v2991_v63, %v2996_v26  ;;  %v9153_v43 = vpop.f32.mrb[30].mxu0  ;;  %v8352_v61 = vld [vmem:[%s11446_s3 + $0x18] sm:$0xff]   ;;  %v2998_v62 = vsel %vm2995_vm9, %v2996_v26, %v2997_v47  ;;  %v9165_v63 = vsel %vm520_vm3, %v1560_v30, %v1562_v1  ;;  %v9171_v4 = vpop.f32.mrb[30].mxu1  ;;  %7654 = vmatprep.subr.bf16.mxu1 %v8351_v28  ;;  %v8356_v28 = vld [vmem:[%s11446_s3 + $0x40] sm:$0xff]  }
 0x127   : > { %v3015_v55 = vpack.c.bf16 %v3014_v51, %v3006_v38  ;;  %v3002_v56 = vpack.c.bf16 %v3001_v52, %v2992_v44  ;;  %v1571_v2 = vmax.f32 %v9046_v46, %v9148_v58  ;;  %v9169_v3 = vld [vmem:[#allocation2 + $0x1e] sm:$0xff]  ;;  %v9173_v6 = vpop.f32.mrb[31].mxu0  ;;  %v1572_v57 = vmax.f32 %v9012_v23, %v9165_v63  ;;  %v9181_v8 = vpop.f32.mrb[31].mxu1  ;;  %v9183_v9 = vld [vmem:[#allocation2 + $0x26] sm:$0x7f]  ;;  %7655 = vmatpush3.bf16.msra.mxu1 %v8352_v61  ;;  %v8361_v23 = vld [vmem:[%s11446_s3 + $0x30] sm:$0xff]  }
 0x128   : > { %v3040_v1 = vrot.slane %v9118_v42, 2  ;;  %v3041_v7 = vrot.slane %v9131_v27, 2  ;;  %v9185_v10 = vld [vmem:[#allocation5] ss:$2 sm:$0xff]  ;;  %v3045_v13 = vrot.slane %v9169_v3, 6  ;;  %v1072_v15 = vmax.f32 %v9077_v21, %v9086_v33  ;;  %7656 = vmatprep.subr.bf16.mxu1 %v8353_v12  ;;  %7680 = vmatprep.subr.bf16.mxu0 %v8356_v28 }
 0x129   : > { %3097 = vrot.lane.b32.xlu1 %v3015_v55, %s8590_s16  ;;  %3091 = vrot.lane.b32.xlu0 %v3002_v56, %s8591_s18  ;;  %v9194_v17 = vld [vmem:[#allocation5 + $0x1] ss:$2 sm:$0xff]  ;;  %v3003_v34 = vpack.c.bf16 %v2998_v62, %v2998_v62  ;;  %v3011_v36 = vsel %vm520_vm3, %v3009_v20, %v3010_v59  ;;  %v3019_v21 = vrot.slane %v9169_v3, 4  ;;  %v3046_v25 = vrot.slane %v9183_v9, 6  ;;  %v9220_v26 = vld [vmem:[#allocation2 + $0x26] sm:$0x7f] }
 0x12a   : > { %v3042_v38 = vsel %vm443_vm1, %v3040_v1, %v3041_v7  ;;  %1406 = vst.msk [vmem:[#allocation5] sm:$0xff] %vm538_vm4, %v1402_v41  ;;  %1407 = vst.msk [vmem:[#allocation5 + $0x8] sm:$0xff] %vm538_vm4, %v1403_v37  ;;  %v3050_v19 = vsel %vm2978_vm7, %v3041_v7, %v3045_v13  ;;  %v1079_v33 = vadd.f32 %v8951_v0, %v1071_v14  ;;  %v8354_v41 = vld [vmem:[%s11446_s3 + $0x20] sm:$0xff]   ;;  %v1732_v49 = vrot.slane %v9171_v4, 6  ;;  %v8355_v59 = vld [vmem:[%s11446_s3 + $0x68] sm:$0xff]  }
 0x12b   : > { %v9187_v11 = vld [vmem:[#allocation5 + $0x10] ss:$2 sm:$0x7f]  ;;  %v9196_v22 = vld [vmem:[#allocation5 + $0x11] ss:$2 sm:$0x7f]  ;;  %v3051_v16 = vpack.c.bf16 %v3050_v19, %v3042_v38  ;;  %v1080_v35 = vadd.f32 %v8951_v0, %v1072_v15  ;;  %v3047_v31 = vsel %vm520_vm3, %v3045_v13, %v3046_v25  ;;  %7657 = vmatpush3.bf16.msra.mxu1 %v8354_v41  ;;  %v3024_v61 = vsel %vm2978_vm7, %v9131_v27, %v3019_v21 }
 0x12c   : > { %1409 = vst.msk [vmem:[#allocation5 + $0x18] sm:$0x3f] %vm542_vm5, %v1405_v18  ;;  %v3076_v18 = vrot.slane %v9169_v3, 2  ;;  %v9218_v20 = vpop.f32.mrb[32].mxu0  ;;  %v8076_v30 = vpop.f32.mrb[32].mxu1  ;;  %v1081_v32 = vmax.f32 %v1079_v33, 0.0  ;;  %v3052_v62 = vpack.c.bf16 %v3047_v31, %v3047_v31  ;;  %7658 = vmatprep.subr.bf16.mxu1 %v8355_v59 }
 0x12d   : > { %1408 = vst.msk [vmem:[#allocation5 + $0x10] sm:$0xff] %vm538_vm4, %v1404_v50  ;;  %3093 = vrot.lane.b32.xlu1 %v3003_v34, %s8591_s18  ;;  %v3077_v44 = vrot.slane %v9183_v9, 2  ;;  %v3020_v47 = vrot.slane %v9183_v9, 4  ;;  %v9225_v37 = vpop.f32.mrb[33].mxu0  ;;  %v3016_v50 = vpack.c.bf16 %v3011_v36, %v3011_v36  ;;  %3109 = vrot.lane.b32.xlu0 %v3051_v16, %s8591_s18  ;;  %v1737_v51 = vrot.slane %v8076_v30, 6  ;;  %v1711_v52 = vpop.f32.mrb[33].mxu1 }
 0x12e   : > { %v1082_v55 = vmax.f32 %v1080_v35, 0.0  ;;  %v9228_v56 = vpop.f32.mrb[34].mxu0  ;;  %v1733_v1 = vrot.slane %v1711_v52, 6  ;;  %v8077_v7 = vpop.f32.mrb[34].mxu1  ;;  %1083 = vst.msk [vmem:[#allocation2 + $0x2d] sm:$0xff] %vm538_vm4, %v1081_v32  ;;  %v8357_v15 = vld [vmem:[%s11446_s3 + $0x28] sm:$0xff]   ;;  %v3025_v35 = vpack.c.bf16 %v3024_v61, %v9118_v42 }
 0x12f   : > { %v3021_v13 = vsel %vm2978_vm7, %v3019_v21, %v3020_v47  ;;  %v9240_v14 = vpop.f32.mrb[35].mxu0  ;;  %v1739_v34 = vrot.slane %v8077_v7, 6  ;;  %v1714_v36 = vpop.f32.mrb[35].mxu1  ;;  %v1900_v27 = vrot.slane %v9153_v43, 6  ;;  %v1905_v38 = vrot.slane %v9218_v20, 6  ;;  %7659 = vmatpush3.bf16.msra.mxu1 %v8357_v15  ;;  %v8359_v52 = vld [vmem:[%s11446_s3 + $0x70] sm:$0xff]  }
 0x130   : > { %1084 = vst.msk [vmem:[#allocation2 + $0x35] sm:$0x7f] %vm564_vm6, %v1082_v55  ;;  %v3452_v19 = vrot.slane %v9169_v3, 1  ;;  %v9251_v21 = vsel %vm520_vm3, %v1732_v49, %v1733_v1  ;;  %v1735_v25 = vrot.slane %v1714_v36, 6  ;;  %v3453_v33 = vrot.slane %v9220_v26, 1  ;;  %7660 = vmatprep.subr.bf16.mxu1 %v8359_v52  ;;  %v8363_v28 = vld [vmem:[%s11446_s3 + $0x78] sm:$0xff]  }
 0x131   : > { %3099 = vrot.lane.b32.xlu1 %v3016_v50, %s8590_s16  ;;  %v3064_v12 = vrot.slane %v9183_v9, 1  ;;  %v9255_v41 = vld [vmem:[#allocation5] ss:$2 sm:$0xff]  ;;  %3111 = vrot.lane.b32.xlu0 %v3052_v62, %s8591_s18  ;;  %v1745_v20 = vmax.f32 %v9151_v60, %v9251_v21  ;;  %v9264_v49 = vsel %vm520_vm3, %v1737_v51, %v1739_v34  ;;  %v1901_v30 = vrot.slane %v9225_v37, 6  ;;  %v9267_v31 = vld [vmem:[#allocation5 + $0x1] ss:$2 sm:$0xff] }
 0x132   : > { %v1748_v47 = vmax.f32 %v9171_v4, %v9264_v49  ;;  %v9274_v42 = vsel %vm520_vm3, %v1733_v1, %v1735_v25  ;;  %v9277_v50 = vsel %vm520_vm3, %v1735_v25, %v1737_v51  ;;  %1574 = vst.msk [vmem:[#allocation5] sm:$0xff] %vm538_vm4, %v1570_v39  ;;  %1575 = vst.msk [vmem:[#allocation5 + $0x8] sm:$0xff] %vm538_vm4, %v1571_v2  ;;  %v1903_v58 = vrot.slane %v9240_v14, 6 }
 0x133   : > { %v1746_v29 = vmax.f32 %v9181_v8, %v9274_v42  ;;  %v1747_v5 = vmax.f32 %v9143_v53, %v9277_v50  ;;  %v3026_v24 = vpack.c.bf16 %v3021_v13, %v3021_v13  ;;  %v9304_v39 = vsel %vm520_vm3, %v1900_v27, %v1901_v30  ;;  %7661 = vmatpush3.bf16.msra.mxu1 %v8361_v23  ;;  %v8364_v8 = vld [vmem:[%s11446_s3 + $0x50] sm:$0xff]  }
 0x134   : > { %v9257_v16 = vld [vmem:[#allocation5 + $0x10] ss:$2 sm:$0x7f]  ;;  %v9269_v32 = vld [vmem:[#allocation5 + $0x11] ss:$2 sm:$0x7f]  ;;  %v1913_v40 = vmax.f32 %v9145_v54, %v9304_v39  ;;  %v1239_v2 = vmax.f32 %v9185_v10, %v9194_v17  ;;  %v3078_v51 = vsel %vm443_vm1, %v3076_v18, %v3077_v44  ;;  %v9332_v55 = vsel %vm2989_vm8, %v3452_v19, %v3453_v33  ;;  %7662 = vmatprep.subr.bf16.mxu1 %v8363_v28 }
 0x135   : > { %1577 = vst.msk [vmem:[#allocation5 + $0x18] sm:$0x3f] %vm542_vm5, %v1573_v45  ;;  %3103 = vrot.lane.b32.xlu1 %v3025_v35, %s8592_s13  ;;  %v9306_v46 = vpop.f32.mrb[36].mxu0  ;;  %v1907_v45 = vrot.slane %v9228_v56, 6  ;;  %v9315_v63 = vpop.f32.mrb[36].mxu1  ;;  %v9321_v37 = vld [vmem:[#allocation2 + $0x2d] sm:$0xff]  ;;  %3105 = vrot.lane.b32.xlu0 %v3026_v24, %s8592_s13  ;;  %v3065_v10 = vsel %vm2989_vm8, %v3452_v19, %v3064_v12  ;;  %v9361_v36 = vsel %vm520_vm3, %v1901_v30, %v1903_v58 }
 0x136   : > { %1576 = vst.msk [vmem:[#allocation5 + $0x10] sm:$0xff] %vm538_vm4, %v1572_v57  ;;  %v9319_v57 = vpop.f32.mrb[37].mxu0  ;;  %v3466_v17 = vrot.slane %v9220_v26, 2  ;;  %v9336_v56 = vpop.f32.mrb[37].mxu1  ;;  %v9346_v62 = vrot.slane %v9321_v37, 6  ;;  %v3055_v1 = vrot.slane %v9321_v37, 4  ;;  %v9364_v27 = vsel %vm520_vm3, %v1903_v58, %v1905_v38 }
 0x137   : > { %v9338_v59 = vpop.f32.mrb[38].mxu0  ;;  %v9343_v61 = vld [vmem:[#allocation2 + $0x35] sm:$0x7f]  ;;  %v9350_v7 = vrot.slane %v9321_v37, 5  ;;  %v9353_v13 = vsel %vm520_vm3, %v1905_v38, %v1907_v45  ;;  %v9355_v14 = vpop.f32.mrb[38].mxu1  ;;  %v1247_v24 = vadd.f32 %v8951_v0, %v1239_v2  ;;  %v1914_v2 = vmax.f32 %v9173_v6, %v9361_v36 }
 0x138   : > { %v3082_v15 = vrot.slane %v9343_v61, 6  ;;  %v9366_v19 = vpop.f32.mrb[39].mxu1  ;;  %v9368_v25 = vpop.f32.mrb[39].mxu0  ;;  %v8365_v35 = vld [vmem:[%s11446_s3 + $0x38] sm:$0xff]   ;;  %v3086_v52 = vsel %vm2978_vm7, %v3077_v44, %v9346_v62  ;;  %v3060_v30 = vsel %vm2978_vm7, %v9183_v9, %v3055_v1  ;;  %v8358_v9 = vld [vmem:[%s11446_s3] sm:$0xff]   ;;  %v3069_v21 = vrot.slane %v9343_v61, 5 }
 0x139   : > { %v3073_v38 = vsel %vm2978_vm7, %v3064_v12, %v9350_v7  ;;  %v3087_v45 = vpack.c.bf16 %v3086_v52, %v3078_v51  ;;  %v3061_v58 = vpack.c.bf16 %v3060_v30, %v9169_v3  ;;  %v3462_v28 = vsel %vm2978_vm7, %v3453_v33, %v9350_v7  ;;  %v9389_v44 = vld [vmem:[#allocation2 + $0x35] sm:$0x7f]  ;;  %v8360_v33 = vld [vmem:[%s11446_s3 + $0x48] sm:$0xff]   ;;  %7663 = vmatpush3.bf16.msra.mxu1 %v8365_v35 }
 0x13a   : > { %v3083_v23 = vsel %vm520_vm3, %v9346_v62, %v3082_v15  ;;  %v3074_v34 = vpack.c.bf16 %v3073_v38, %v3065_v10  ;;  %v9398_v15 = vld [vmem:[#allocation5] ss:$2 sm:$0xff]  ;;  %v9400_v52 = vld [vmem:[#allocation5 + $0x1] ss:$2 sm:$0xff]  ;;  %v3475_v10 = vsel %vm2978_vm7, %v3466_v17, %v9346_v62  ;;  %v3056_v30 = vrot.slane %v9343_v61, 4  ;;  %v8362_v35 = vld [vmem:[%s11446_s3 + $0x8] sm:$0xff]  }
 0x13b   : > { %v3088_v12 = vpack.c.bf16 %v3083_v23, %v3083_v23  ;;  %8166 = vmatprep.mubr.msk.bf16.mxu0 %vm538_vm4, %v3087_v45  ;;  %3115 = vrot.lane.b32.xlu1 %v3061_v58, %s8590_s16  ;;  %v1240_v38 = vmax.f32 %v9187_v11, %v9196_v22  ;;  %v1414_v51 = vmax.f32 %v9255_v41, %v9267_v31  ;;  %v2075_v11 = vrot.slane %v9355_v14, 6 }
 0x13c   : > { %v9414_v23 = vpop.f32.mrb[40].mxu0  ;;  %1749 = vst.msk [vmem:[#allocation5] sm:$0xff] %vm538_vm4, %v1745_v20  ;;  %1750 = vst.msk [vmem:[#allocation5 + $0x8] sm:$0xff] %vm538_vm4, %v1746_v29  ;;  %3121 = vrot.lane.b32.xlu0 %v3074_v34, %s8592_s13  ;;  %v8100_v22 = vpop.f32.mrb[40].mxu1  ;;  %v3458_v60 = vrot.slane %v9389_v44, 5  ;;  %v1249_v41 = vmax.f32 %v1247_v24, 0.0  ;;  %v3463_v31 = vpack.c.bf16 %v3462_v28, %v9332_v55  ;;  %v3057_v42 = vsel %vm2978_vm7, %v3055_v1, %v3056_v30 }
 0x13d   : > { %8167 = vmatmul.mubr.msk.bf16.vlgmr.msra.gmra.mrb[60].mxu0 %vm538_vm4, %v3088_v12  ;;  %v9434_v20 = vpop.f32.mrb[41].mxu0  ;;  %v2080_v29 = vrot.slane %v8100_v22, 6  ;;  %v2054_v34 = vpop.f32.mrb[41].mxu1  ;;  %v1415_v58 = vmax.f32 %v9257_v16, %v9269_v32  ;;  %v9445_v12 = vld [vmem:[#allocation5 + $0x10] ss:$2 sm:$0x7f]  ;;  %v3467_v61 = vsel %vm443_vm1, %v3076_v18, %v3466_v17  ;;  %v3062_v24 = vpack.c.bf16 %v3057_v42, %v3057_v42 }
 0x13e   : > { %v9441_v45 = vpop.f32.mrb[42].mxu0  ;;  %7681 = vmatpush3.bf16.msra.mxu0 %v8358_v9  ;;  %v3070_v55 = vsel %vm2995_vm9, %v9350_v7, %v3069_v21  ;;  %v2076_v1 = vrot.slane %v2054_v34, 6  ;;  %v8101_v28 = vpop.f32.mrb[42].mxu1  ;;  %1251 = vst.msk [vmem:[#allocation2 + $0x3c] sm:$0xff] %vm538_vm4, %v1249_v41  ;;  %v3476_v26 = vpack.c.bf16 %v3475_v10, %v3467_v61  ;;  %v3459_v3 = vsel %vm2995_vm9, %v9350_v7, %v3458_v60  ;;  %v8367_v60 = vld [vmem:[%s11446_s3 + $0x58] sm:$0xff]  }
 0x13f   : > { %v9455_v30 = vpop.f32.mrb[43].mxu0  ;;  %v9457_v16 = vld [vmem:[#allocation5 + $0x11] ss:$2 sm:$0x7f]  ;;  %7682 = vmatprep.subr.bf16.mxu0 %v8360_v33  ;;  %3552 = vrot.lane.b32.xlu1 %v3463_v31, %s8591_s18  ;;  %v3075_v18 = vpack.c.bf16 %v3070_v55, %v3070_v55  ;;  %v2082_v32 = vrot.slane %v8101_v28, 6  ;;  %v2057_v17 = vpop.f32.mrb[43].mxu1  ;;  %v1248_v7 = vadd.f32 %v8951_v0, %v1240_v38  ;;  %v1422_v49 = vadd.f32 %v8951_v0, %v1414_v51 }
 0x140   : > { %1751 = vst.msk [vmem:[#allocation5 + $0x10] sm:$0xff] %vm538_vm4, %v1747_v5  ;;  %3117 = vrot.lane.b32.xlu0 %v3062_v24, %s8590_s16  ;;  %v9472_v9 = vsel %vm520_vm3, %v2075_v11, %v2076_v1  ;;  %v2078_v33 = vrot.slane %v2057_v17, 6  ;;  %v2243_v10 = vrot.slane %v9338_v59, 6  ;;  %v2248_v4 = vrot.slane %v9414_v23, 6  ;;  %v8372_v5 = vld [vmem:[%s11446_s3 + $0x80] sm:$0xff]  }
 0x141   : > { %1752 = vst.msk [vmem:[#allocation5 + $0x18] sm:$0x3f] %vm542_vm5, %v1748_v47  ;;  %v2088_v53 = vmax.f32 %v9336_v56, %v9472_v9  ;;  %v9479_v50 = vsel %vm520_vm3, %v2080_v29, %v2082_v32  ;;  %v8366_v47 = vld [vmem:[%s11446_s3 + $0x10] sm:$0xff]   ;;  %v1250_v23 = vmax.f32 %v1248_v7, 0.0  ;;  %v1424_v31 = vmax.f32 %v1422_v49, 0.0  ;;  %8170 = vmatprep.subr.bf16.mxu1 %v8372_v5 }
 0x142   : > { %7683 = vmatpush3.bf16.msra.mxu0 %v8362_v35  ;;  %v2091_v38 = vmax.f32 %v9355_v14, %v9479_v50  ;;  %v9492_v11 = vsel %vm520_vm3, %v2076_v1, %v2078_v33  ;;  %v9495_v22 = vsel %vm520_vm3, %v2078_v33, %v2080_v29  ;;  %v2244_v42 = vrot.slane %v9434_v20, 6  ;;  %v8368_v1 = vld [vmem:[%s11446_s3 + $0x18] sm:$0xff]  }
 0x143   : > { %v9497_v51 = vld [vmem:[#allocation5] ss:$2 sm:$0xff]  ;;  %v9499_v35 = vld [vmem:[#allocation5 + $0x1] ss:$2 sm:$0xff]  ;;  %7684 = vmatprep.subr.bf16.mxu0 %v8364_v8  ;;  %3558 = vrot.lane.b32.xlu1 %v3476_v26, %s8590_s16  ;;  %v2089_v21 = vmax.f32 %v9366_v19, %v9492_v11  ;;  %v2090_v41 = vmax.f32 %v9315_v63, %v9495_v22  ;;  %v3501_v8 = vrot.slane %v9321_v37, 2  ;;  %v3502_v34 = vrot.slane %v9389_v44, 2 }
 0x144   : > { %v9510_v29 = vpop.f32.mrb[44].mxu0  ;;  %1917 = vst.msk [vmem:[#allocation5] sm:$0xff] %vm538_vm4, %v1913_v40  ;;  %1918 = vst.msk [vmem:[#allocation5 + $0x8] sm:$0xff] %vm538_vm4, %v1914_v2  ;;  %3123 = vrot.lane.b32.xlu0 %v3075_v18, %s8592_s13  ;;  %v2250_v20 = vrot.slane %v9441_v45, 6  ;;  %v2246_v54 = vrot.slane %v9455_v30, 6  ;;  %v9526_v39 = vpop.f32.mrb[44].mxu1  ;;  %v3464_v6 = vpack.c.bf16 %v3459_v3, %v3459_v3  ;;  %v9534_v2 = vsel %vm520_vm3, %v2243_v10, %v2244_v42 }
 0x145   : > { %1252 = vst.msk [vmem:[#allocation2 + $0x44] sm:$0x7f] %vm564_vm6, %v1250_v23  ;;  %v9528_v40 = vpop.f32.mrb[45].mxu0  ;;  %v9530_v36 = vld [vmem:[#allocation2 + $0x3c] sm:$0xff]  ;;  %v3471_v61 = vrot.slane %v9389_v44, 6  ;;  %v1423_v24 = vadd.f32 %v8951_v0, %v1415_v58  ;;  %v9538_v55 = vpop.f32.mrb[45].mxu1  ;;  %v3503_v10 = vsel %vm443_vm1, %v3501_v8, %v3502_v34 }
 0x146   : > { %1426 = vst.msk [vmem:[#allocation2 + $0x4b] sm:$0xff] %vm538_vm4, %v1424_v31  ;;  %v9540_v45 = vpop.f32.mrb[46].mxu0  ;;  %7685 = vmatpush3.bf16.msra.mxu0 %v8366_v47  ;;  %v3506_v28 = vrot.slane %v9530_v36, 6  ;;  %v3480_v30 = vrot.slane %v9530_v36, 4  ;;  %v9550_v3 = vsel %vm520_vm3, %v2248_v4, %v2250_v20  ;;  %v9552_v0 = vpop.f32.mrb[46].mxu1  ;;  %v8369_v18 = vld [vmem:[%s11446_s3 + $0x60] sm:$0xff]   ;;  %v9563_v17 = vsel %vm520_vm3, %v2244_v42, %v2246_v54 }
 0x147   : > { %v9554_v58 = vpop.f32.mrb[47].mxu0  ;;  %7686 = vmatprep.subr.bf16.mxu0 %v8367_v60  ;;  %3554 = vrot.lane.b32.xlu1 %v3464_v6, %s8591_s18  ;;  %v9566_v33 = vsel %vm520_vm3, %v2246_v54, %v2248_v4  ;;  %v9568_v7 = vpop.f32.mrb[47].mxu1  ;;  %v11465_v4 = vmax.f32 %v9137_v48, %v9364_v27  ;;  %v11466_v42 = vmax.f32 %v9153_v43, %v9353_v13  ;;  %v8370_v8 = vld [vmem:[%s11446_s3 + $0x20] sm:$0xff]   ;;  %v1425_v27 = vmax.f32 %v1423_v24, 0.0  ;;  %v8371_v13 = vld [vmem:[%s11446_s3 + $0x68] sm:$0xff]  }
 0x148   : > { %v3511_v49 = vsel %vm2978_vm7, %v3502_v34, %v3506_v28  ;;  %v9576_v23 = vld [vmem:[#allocation5 + $0x10] ss:$2 sm:$0x7f]  ;;  %v9578_v60 = vld [vmem:[#allocation5 + $0x11] ss:$2 sm:$0x7f]  ;;  %v3485_v34 = vsel %vm2978_vm7, %v9389_v44, %v3480_v30  ;;  %v9597_v48 = vsel %vm520_vm3, %v9346_v62, %v3471_v61  ;;  %v1582_v43 = vmax.f32 %v9398_v15, %v9400_v52 }
 0x149   : > { %v3512_v31 = vpack.c.bf16 %v3511_v49, %v3503_v10  ;;  %1919 = vst.msk [vmem:[#allocation5 + $0x10] sm:$0xff] %vm538_vm4, %v11465_v4  ;;  %v1583_v44 = vmax.f32 %v9445_v12, %v9457_v16  ;;  %v8373_v15 = vld [vmem:[%s11446_s3 + $0x28] sm:$0xff]   ;;  %v2418_v61 = vrot.slane %v9552_v0, 6  ;;  %v8374_v12 = vld [vmem:[%s11446_s3 + $0x70] sm:$0xff]   ;;  %v3486_v16 = vpack.c.bf16 %v3485_v34, %v9321_v37  ;;  %v9644_v34 = vld [vmem:[%s11445_s2] ss:$0 sm:$0xff] }
 0x14a   : > { %1920 = vst.msk [vmem:[#allocation5 + $0x18] sm:$0x3f] %vm542_vm5, %v11466_v42  ;;  %7687 = vmatpush3.bf16.msra.mxu0 %v8368_v1  ;;  %v1757_v1 = vmax.f32 %v9497_v51, %v9499_v35  ;;  %v3477_v49 = vpack.c.bf16 %v9597_v48, %v9597_v48  ;;  %v1590_v48 = vadd.f32 %v9644_v34, %v1582_v43  ;;  %v8376_v43 = vld [vmem:[%s11446_s3 + $0x30] sm:$0xff]   ;;  %v11468_v50 = vrot.slane %v9530_v36, 1 }
 0x14b   : > { %7688 = vmatprep.subr.bf16.mxu0 %v8369_v18  ;;  %3570 = vrot.lane.b32.xlu1 %v3512_v31, %s8591_s18  ;;  %1427 = vst.msk [vmem:[#allocation2 + $0x53] sm:$0x7f] %vm564_vm6, %v1425_v27  ;;  %v9622_v18 = vld [vmem:[#allocation5] ss:$2 sm:$0xff]  ;;  %v9649_v47 = vld [vmem:[#allocation5 + $0x1] ss:$2 sm:$0xff]  ;;  %v9657_v26 = vadd.f32 %v9644_v34, %v1583_v44 }
 0x14c   : > { %v9605_v20 = vld [vmem:[#allocation2 + $0x44] sm:$0x7f]  ;;  %v9610_v62 = vpop.f32.mrb[48].mxu0  ;;  %v8124_v24 = vpop.f32.mrb[48].mxu1  ;;  %2092 = vst.msk [vmem:[#allocation5] sm:$0xff] %vm538_vm4, %v2088_v53  ;;  %2093 = vst.msk [vmem:[#allocation5 + $0x8] sm:$0xff] %vm538_vm4, %v2089_v21 }
 0x14d   : > { %v3507_v52 = vrot.slane %v9605_v20, 6  ;;  %v9616_v6 = vld [vmem:[#allocation2 + $0x4b] sm:$0xff]  ;;  %v3481_v31 = vrot.slane %v9605_v20, 4  ;;  %v9632_v4 = vld [vmem:[#allocation2 + $0x44] sm:$0x7f]  ;;  %v2397_v42 = vpop.f32.mrb[49].mxu1 }
 0x14e   : > { %v3516_v10 = vrot.slane %v9616_v6, 4  ;;  %v9634_v27 = vpop.f32.mrb[49].mxu0  ;;  %7689 = vmatpush3.bf16.msra.mxu0 %v8370_v8  ;;  %v9638_v35 = vrot.slane %v9616_v6, 5  ;;  %v8125_v32 = vpop.f32.mrb[50].mxu1  ;;  %v2419_v44 = vrot.slane %v2397_v42, 6  ;;  %v3909_v9 = vrot.slane %v9632_v4, 1 }
 0x14f   : > { %v3508_v51 = vsel %vm520_vm3, %v3506_v28, %v3507_v52  ;;  %v9647_v5 = vpop.f32.mrb[50].mxu0  ;;  %7690 = vmatprep.subr.bf16.mxu0 %v8371_v13  ;;  %3564 = vrot.lane.b32.xlu1 %v3486_v16, %s8592_s13  ;;  %v2423_v52 = vrot.slane %v8124_v24, 6  ;;  %v2400_v37 = vpop.f32.mrb[51].mxu1  ;;  %v3525_v13 = vrot.slane %v9605_v20, 1  ;;  %v2586_v24 = vrot.slane %v9540_v45, 6 }
 0x150   : > { %v3513_v8 = vpack.c.bf16 %v3508_v51, %v3508_v51  ;;  %v3521_v28 = vsel %vm2978_vm7, %v9605_v20, %v3516_v10  ;;  %v9659_v54 = vpop.f32.mrb[51].mxu0  ;;  %v9675_v16 = vadd.f32 %v9644_v34, %v1757_v1  ;;  %v3482_v19 = vsel %vm2978_vm7, %v3480_v30, %v3481_v31  ;;  %v8377_v30 = vld [vmem:[%s11446_s3 + $0x78] sm:$0xff]  }
 0x151   : > { %v9677_v56 = vld [vmem:[#allocation5 + $0x10] ss:$2 sm:$0x7f]  ;;  %v2425_v53 = vrot.slane %v8125_v32, 6  ;;  %v2421_v11 = vrot.slane %v2400_v37, 6  ;;  %v3522_v42 = vpack.c.bf16 %v3521_v28, %v9530_v36  ;;  %v3534_v1 = vsel %vm2978_vm7, %v3525_v13, %v9638_v35 }
 0x152   : > { %3572 = vrot.lane.b32.xlu0 %v3513_v8, %s8591_s18  ;;  %v9684_v21 = vld [vmem:[#allocation5 + $0x11] ss:$2 sm:$0x7f]  ;;  %7691 = vmatpush3.bf16.msra.mxu0 %v8373_v15  ;;  %v9690_v51 = vsel %vm520_vm3, %v2418_v61, %v2419_v44  ;;  %v1592_v8 = vmax.f32 %v1590_v48, 0.0  ;;  %v9704_v32 = vld [vmem:[#allocation2 + $0x53] sm:$0x7f]  ;;  %v3918_v61 = vsel %vm2978_vm7, %v3909_v9, %v9638_v35  ;;  %v3487_v31 = vpack.c.bf16 %v3482_v19, %v3482_v19 }
 0x153   : > { %2094 = vst.msk [vmem:[#allocation5 + $0x10] sm:$0xff] %vm538_vm4, %v2090_v41  ;;  %7692 = vmatprep.subr.bf16.mxu0 %v8374_v12  ;;  %3560 = vrot.lane.b32.xlu1 %v3477_v49, %s8590_s16  ;;  %11467 = vst [vmem:[#allocation9_spill] sm:$0xff] %v9704_v32  ;;  %v2431_v15 = vmax.f32 %v9538_v55, %v9690_v51  ;;  %v9709_v63 = vsel %vm520_vm3, %v2423_v52, %v2425_v53  ;;  %v3517_v41 = vrot.slane %v9704_v32, 4  ;;  %v8383_v19 = vld [vmem:[%s11446_s3 + $0x80] sm:$0xff]  }
 0x154   : > { %2095 = vst.msk [vmem:[#allocation5 + $0x18] sm:$0x3f] %vm542_vm5, %v2091_v38  ;;  %v9712_v22 = vsel %vm520_vm3, %v2419_v44, %v2421_v11  ;;  %v9715_v14 = vsel %vm520_vm3, %v2421_v11, %v2423_v52  ;;  %v3526_v38 = vsel %vm2989_vm8, %v11468_v50, %v3525_v13  ;;  %v9726_v49 = vpop.f32.mrb[52].mxu1  ;;  %v3922_v28 = vrot.slane %v9632_v4, 2  ;;  %v9734_v52 = vld [vmem:[#allocation2 + $0x53] sm:$0x7f] }
 0x155   : > { %1594 = vst.msk [vmem:[#allocation2 + $0x5a] sm:$0xff] %vm538_vm4, %v1592_v8  ;;  %v9736_v13 = vpop.f32.mrb[53].mxu1  ;;  %v8379_v44 = vld [vmem:[%s11446_s3 + $0x38] sm:$0xff]   ;;  %v3535_v53 = vpack.c.bf16 %v3534_v1, %v3526_v38  ;;  %v11469_v11 = vmov %v11468_v50  ;;  %v9748_v4 = vrot.slane %v9616_v6, 6  ;;  %v3530_v38 = vrot.slane %v9704_v32, 5 }
 0x156   : > { %3576 = vrot.lane.b32.xlu0 %v3522_v42, %s8590_s16  ;;  %7693 = vmatpush3.bf16.msra.mxu0 %v8376_v43  ;;  %v3910_v42 = vsel %vm2989_vm8, %v11469_v11, %v3909_v9  ;;  %v9750_v8 = vpop.f32.mrb[54].mxu1  ;;  %v1758_v43 = vmax.f32 %v9576_v23, %v9578_v60  ;;  %v9754_v50 = vld [vmem:[#allocation5] ss:$2 sm:$0xff]  ;;  %v9756_v12 = vld [vmem:[#allocation5 + $0x1] ss:$2 sm:$0xff]  ;;  %v3957_v9 = vrot.slane %v9616_v6, 2  ;;  %v11471_v37 = vmax.f32 %v9319_v57, %v9534_v2 }
 0x157   : > { %11470 = vst [vmem:[#allocation10_spill] sm:$0xff] %v9748_v4  ;;  %7694 = vmatprep.subr.bf16.mxu0 %v8377_v30  ;;  %3566 = vrot.lane.b32.xlu1 %v3487_v31, %s8592_s13  ;;  %v3919_v1 = vpack.c.bf16 %v3918_v61, %v3910_v42  ;;  %v1593_v11 = vmax.f32 %v9657_v26, 0.0  ;;  %v9762_v48 = vpop.f32.mrb[55].mxu1  ;;  %v11472_v23 = vmax.f32 %v9368_v25, %v9563_v17  ;;  %v3958_v30 = vrot.slane %v9734_v52, 2 }
 0x158   : > { %2260 = vst.msk [vmem:[#allocation5] sm:$0xff] %vm538_vm4, %v11471_v37  ;;  %v3518_v60 = vsel %vm2978_vm7, %v3516_v10, %v3517_v41  ;;  %v2591_v26 = vrot.slane %v9610_v62, 6  ;;  %v2587_v61 = vrot.slane %v9634_v27, 6  ;;  %v3914_v57 = vrot.slane %v9734_v52, 5 }
 0x159   : > { %2261 = vst.msk [vmem:[#allocation5 + $0x8] sm:$0xff] %vm538_vm4, %v11472_v23  ;;  %v2593_v25 = vrot.slane %v9647_v5, 6  ;;  %v2589_v2 = vrot.slane %v9659_v54, 6  ;;  %v1767_v17 = vmax.f32 %v9675_v16, 0.0  ;;  %v11473_v10 = vrot.slane %v9530_v36, 2 }
 0x15a   : > { %3582 = vrot.lane.b32.xlu0 %v3535_v53, %s8592_s13  ;;  %1595 = vst.msk [vmem:[#allocation2 + $0x62] sm:$0x7f] %vm564_vm6, %v1593_v11  ;;  %7695 = vmatpush3.bf16.msra.mxu0 %v8379_v44  ;;  %v3931_v62 = vsel %vm2978_vm7, %v3922_v28, %v9748_v4  ;;  %v9792_v27 = vsel %vm520_vm3, %v2586_v24, %v2587_v61 }
 0x15b   : > { %v3923_v41 = vsel %vm443_vm1, %v11473_v10, %v3922_v28  ;;  %v1766_v31 = vadd.f32 %v9644_v34, %v1758_v43  ;;  %v9795_v5 = vld [vmem:[#allocation5 + $0x10] ss:$2 sm:$0x7f]  ;;  %v9797_v54 = vld [vmem:[#allocation5 + $0x11] ss:$2 sm:$0x7f]  ;;  %8178 = vmatprep.subr.bf16.mxu0 %v8383_v19  ;;  %v3523_v16 = vpack.c.bf16 %v3518_v60, %v3518_v60  ;;  %4008 = vrot.lane.b32.xlu1 %v3919_v1, %s8591_s18 }
 0x15c   : > { %v9800_v37 = vld [vmem:[#allocation2 + $0x5a] sm:$0xff]  ;;  %v2599_v28 = vmax.f32 %v9528_v40, %v9792_v27  ;;  %v9805_v44 = vsel %vm520_vm3, %v2591_v26, %v2593_v25  ;;  %v9808_v24 = vsel %vm520_vm3, %v2587_v61, %v2589_v2  ;;  %1769 = vst.msk [vmem:[#allocation2 + $0x69] sm:$0xff] %vm538_vm4, %v1767_v17  ;;  %v11474_v34 = vmax.f32 %v9306_v46, %v9566_v33  ;;  %v8148_v11 = vpop.f32.mrb[56].mxu1 }
 0x15d   : > { %v11475_v19 = vmax.f32 %v9338_v59, %v9550_v3  ;;  %v3531_v53 = vsel %vm2995_vm9, %v9638_v35, %v3530_v38  ;;  %v3962_v42 = vrot.slane %v9800_v37, 6  ;;  %v2602_v43 = vmax.f32 %v9540_v45, %v9805_v44  ;;  %v2740_v38 = vpop.f32.mrb[57].mxu1 }
 0x15e   : > { %2262 = vst.msk [vmem:[#allocation5 + $0x10] sm:$0xff] %vm538_vm4, %v11474_v34  ;;  %v9825_v1 = vsel %vm520_vm3, %v2589_v2, %v2591_v26  ;;  %3578 = vrot.lane.b32.xlu0 %v3523_v16, %s8590_s16  ;;  %v3932_v46 = vpack.c.bf16 %v3931_v62, %v3923_v41  ;;  %v3927_v33 = vrot.slane %v9734_v52, 6  ;;  %v2600_v59 = vmax.f32 %v9554_v58, %v9808_v24  ;;  %v8149_v25 = vpop.f32.mrb[58].mxu1 }
 0x15f   : > { %2263 = vst.msk [vmem:[#allocation5 + $0x18] sm:$0x3f] %vm542_vm5, %v11475_v19  ;;  %v2601_v3 = vmax.f32 %v9510_v29, %v9825_v1  ;;  %v3915_v23 = vsel %vm2995_vm9, %v9638_v35, %v3914_v57  ;;  %v2761_v60 = vrot.slane %v9750_v8, 6  ;;  %v2766_v26 = vrot.slane %v8148_v11, 6  ;;  %v2743_v62 = vpop.f32.mrb[59].mxu1 }
 0x160   : > { %v1768_v61 = vmax.f32 %v1766_v31, 0.0  ;;  %v9836_v2 = vld [vmem:[#allocation5] ss:$2 sm:$0xff]  ;;  %v3536_v17 = vpack.c.bf16 %v3531_v53, %v3531_v53  ;;  %4014 = vrot.lane.b32.xlu1 %v3932_v46, %s8590_s16  ;;  %v2762_v10 = vrot.slane %v2740_v38, 6  ;;  %v2768_v41 = vrot.slane %v8149_v25, 6 }
 0x161   : > { %v9839_v16 = vld [vmem:[#allocation5 + $0x1] ss:$2 sm:$0xff]  ;;  %v3967_v34 = vsel %vm2978_vm7, %v3958_v30, %v3962_v42  ;;  %v2764_v35 = vrot.slane %v2743_v62, 6  ;;  %v11476_v57 = vmax.f32 %v9568_v7, %v9712_v22  ;;  %v3959_v31 = vsel %vm443_vm1, %v3957_v9, %v3958_v30 }
 0x162   : > { %v9842_v19 = vld [vmem:[#allocation2 + $0x62] sm:$0x7f]  ;;  %1770 = vst.msk [vmem:[#allocation2 + $0x71] sm:$0x7f] %vm564_vm6, %v1768_v61  ;;  %3584 = vrot.lane.b32.xlu0 %v3536_v17, %s8592_s13  ;;  %v3920_v53 = vpack.c.bf16 %v3915_v23, %v3915_v23  ;;  %v3928_v46 = vsel %vm520_vm3, %v9748_v4, %v3927_v33  ;;  %v3936_v55 = vrot.slane %v9800_v37, 4  ;;  %v9864_v7 = vsel %vm520_vm3, %v2761_v60, %v2762_v10 }
 0x163   : > { %2435 = vst.msk [vmem:[#allocation5] sm:$0xff] %vm538_vm4, %v2431_v15  ;;  %2436 = vst.msk [vmem:[#allocation5 + $0x8] sm:$0xff] %vm538_vm4, %v11476_v57  ;;  %v3963_v11 = vrot.slane %v9842_v19, 6  ;;  %v9861_v51 = vld [vmem:[#allocation2 + $0x69] sm:$0xff]  ;;  %v9867_v15 = vsel %vm520_vm3, %v2766_v26, %v2768_v41  ;;  %v9870_v22 = vsel %vm520_vm3, %v2762_v10, %v2764_v35  ;;  %v3968_v9 = vpack.c.bf16 %v3967_v34, %v3959_v31  ;;  %v4345_v61 = vld [vmem:[#allocation2 + $0x62] sm:$0x7f] }
 0x164   : > { %4010 = vrot.lane.b32.xlu1 %v3920_v53, %s8591_s18  ;;  %v3937_v23 = vrot.slane %v9842_v19, 4  ;;  %v11477_v60 = vmax.f32 %v9526_v39, %v9715_v14  ;;  %v11478_v25 = vmax.f32 %v9552_v0, %v9709_v63  ;;  %v3933_v17 = vpack.c.bf16 %v3928_v46, %v3928_v46  ;;  %v9903_v63 = vld [vmem:[%s11445_s2] ss:$0 sm:$0xff] }
 0x165   : > { %v3964_v33 = vsel %vm520_vm3, %v3962_v42, %v3963_v11  ;;  %v4364_v10 = vrot.slane %v9800_v37, 1  ;;  %v2774_v42 = vmax.f32 %v9736_v13, %v9864_v7  ;;  %v1925_v41 = vmax.f32 %v9622_v18, %v9649_v47 }
 0x166   : > { %v9873_v30 = vld [vmem:[#allocation5 + $0x10] ss:$2 sm:$0x7f]  ;;  %v9875_v38 = vld [vmem:[#allocation5 + $0x11] ss:$2 sm:$0x7f]  ;;  %4026 = vrot.lane.b32.xlu0 %v3968_v9, %s8591_s18  ;;  %v3941_v39 = vsel %vm2978_vm7, %v9734_v52, %v3936_v55  ;;  %v2777_v0 = vmax.f32 %v9750_v8, %v9867_v15  ;;  %v1926_v62 = vmax.f32 %v9677_v56, %v9684_v21  ;;  %v3969_v34 = vpack.c.bf16 %v3964_v33, %v3964_v33 }
 0x167   : > { %2437 = vst.msk [vmem:[#allocation5 + $0x10] sm:$0xff] %vm538_vm4, %v11477_v60  ;;  %v9896_v14 = vrot.slane %v9861_v51, 5  ;;  %v4365_v47 = vrot.slane %v4345_v61, 1  ;;  %v4377_v18 = vrot.slane %v9800_v37, 2  ;;  %v9910_v52 = vsel %vm520_vm3, %v2764_v35, %v2766_v26 }
 0x168   : > { %2438 = vst.msk [vmem:[#allocation5 + $0x18] sm:$0x3f] %vm542_vm5, %v11478_v25  ;;  %4016 = vrot.lane.b32.xlu1 %v3933_v17, %s8590_s16  ;;  %v3938_v57 = vsel %vm2978_vm7, %v3936_v55, %v3937_v23  ;;  %v3972_v31 = vrot.slane %v9861_v51, 4  ;;  %v4378_v53 = vrot.slane %v4345_v61, 2  ;;  %v2775_v11 = vmax.f32 %v9762_v48, %v9870_v22 }
 0x169   : > { %v3942_v56 = vpack.c.bf16 %v3941_v39, %v9616_v6  ;;  %v2776_v21 = vmax.f32 %v9726_v49, %v9910_v52  ;;  %v1933_v26 = vadd.f32 %v9903_v63, %v1925_v41  ;;  %v2100_v35 = vmax.f32 %v9754_v50, %v9756_v12  ;;  %v9937_v40 = vld [vmem:[#allocation2 + $0x71] sm:$0x7f] }
 0x16a   : > { %v2439_v46 = vld [vmem:[#allocation5] ss:$2 sm:$0xff]  ;;  %v2441_v9 = vld [vmem:[#allocation5 + $0x1] ss:$2 sm:$0xff]  ;;  %4028 = vrot.lane.b32.xlu0 %v3969_v34, %s8591_s18  ;;  %v4374_v6 = vsel %vm2978_vm7, %v4365_v47, %v9896_v14  ;;  %v3981_v48 = vrot.slane %v9842_v19, 1  ;;  %v4382_v55 = vrot.slane %v9861_v51, 6  ;;  %v1934_v22 = vadd.f32 %v9903_v63, %v1926_v62 }
 0x16b   : > { %2603 = vst.msk [vmem:[#allocation5] sm:$0xff] %vm538_vm4, %v2599_v28  ;;  %2604 = vst.msk [vmem:[#allocation5 + $0x8] sm:$0xff] %vm538_vm4, %v2600_v59  ;;  %v3943_v12 = vpack.c.bf16 %v3938_v57, %v3938_v57  ;;  %v1935_v50 = vmax.f32 %v1933_v26, 0.0  ;;  %v3977_v58 = vsel %vm2978_vm7, %v9842_v19, %v3972_v31  ;;  %v4366_v28 = vsel %vm2989_vm8, %v4364_v10, %v4365_v47  ;;  %v9948_v61 = vld [vmem:[#allocation2 + $0x71] sm:$0x7f] }
 0x16c   : > { %4020 = vrot.lane.b32.xlu1 %v3942_v56, %s8592_s13  ;;  %v4379_v24 = vsel %vm443_vm1, %v4377_v18, %v4378_v53  ;;  %v1936_v59 = vmax.f32 %v1934_v22, 0.0  ;;  %v4375_v23 = vpack.c.bf16 %v4374_v6, %v4366_v28  ;;  %11479 = vst [vmem:[#allocation11_spill] sm:$0xff] %v9948_v61  ;;  %v2108_v60 = vadd.f32 %v9903_v63, %v2100_v35 }
 0x16d   : > { %1937 = vst.msk [vmem:[#allocation2 + $0x78] sm:$0xff] %vm538_vm4, %v1935_v50  ;;  %v2101_v19 = vmax.f32 %v9795_v5, %v9797_v54  ;;  %v2268_v25 = vmax.f32 %v9836_v2, %v9839_v16  ;;  %v4387_v17 = vsel %vm2978_vm7, %v4378_v53, %v4382_v55  ;;  %v4370_v41 = vrot.slane %v9937_v40, 5 }
 0x16e   : > { %4022 = vrot.lane.b32.xlu0 %v3943_v12, %s8592_s13  ;;  %1938 = vst.msk [vmem:[#allocation2 + $0x80] sm:$0x7f] %vm564_vm6, %v1936_v59  ;;  %v2269_v5 = vmax.f32 %v9873_v30, %v9875_v38  ;;  %v2443_v54 = vmax.f32 %v2439_v46, %v2441_v9  ;;  %v3978_v29 = vpack.c.bf16 %v3977_v58, %v9800_v37  ;;  %v2110_v1 = vmax.f32 %v2108_v60, 0.0 }
 0x16f   : > { %v2440_v27 = vld [vmem:[#allocation5 + $0x10] ss:$2 sm:$0x7f]  ;;  %v2442_v33 = vld [vmem:[#allocation5 + $0x11] ss:$2 sm:$0x7f]  ;;  %v2109_v45 = vadd.f32 %v9903_v63, %v2101_v19  ;;  %v2276_v44 = vadd.f32 %v9903_v63, %v2268_v25  ;;  %v3982_v39 = vsel %vm2989_vm8, %v4364_v10, %v3981_v48  ;;  %v4388_v62 = vpack.c.bf16 %v4387_v17, %v4379_v24 }
 0x170   : > { %2605 = vst.msk [vmem:[#allocation5 + $0x10] sm:$0xff] %vm538_vm4, %v2601_v3  ;;  %4464 = vrot.lane.b32.xlu1 %v4375_v23, %s8591_s18  ;;  %v3973_v3 = vrot.slane %v9948_v61, 4  ;;  %v2277_v2 = vadd.f32 %v9903_v63, %v2269_v5  ;;  %v2451_v16 = vadd.f32 %v9903_v63, %v2443_v54  ;;  %2112 = vst.msk [vmem:[#allocation2 + $0x87] sm:$0xff] %vm538_vm4, %v2110_v1  ;;  %v3986_v10 = vrot.slane %v9948_v61, 5 }
 0x171   : > { %2606 = vst.msk [vmem:[#allocation5 + $0x18] sm:$0x3f] %vm542_vm5, %v2602_v43  ;;  %v3990_v43 = vsel %vm2978_vm7, %v3981_v48, %v9896_v14  ;;  %v2111_v34 = vmax.f32 %v2109_v45, 0.0  ;;  %v2278_v47 = vmax.f32 %v2276_v44, 0.0  ;;  %v4371_v18 = vsel %vm2995_vm9, %v9896_v14, %v4370_v41 }
 0x172   : > { %v9980_v30 = vld [vmem:[#allocation5] ss:$2 sm:$0xff]  ;;  %v9982_v38 = vld [vmem:[#allocation5 + $0x1] ss:$2 sm:$0xff]  ;;  %4032 = vrot.lane.b32.xlu0 %v3978_v29, %s8590_s16  ;;  %v2279_v57 = vmax.f32 %v2277_v2, 0.0  ;;  %v2453_v53 = vmax.f32 %v2451_v16, 0.0  ;;  %v2444_v37 = vmax.f32 %v2440_v27, %v2442_v33  ;;  %v3991_v46 = vpack.c.bf16 %v3990_v43, %v3982_v39 }
 0x173   : > { %2778 = vst.msk [vmem:[#allocation5] sm:$0xff] %vm538_vm4, %v2774_v42  ;;  %2779 = vst.msk [vmem:[#allocation5 + $0x8] sm:$0xff] %vm538_vm4, %v2775_v11  ;;  %v3974_v13 = vsel %vm2978_vm7, %v3972_v31, %v3973_v3  ;;  %v4413_v42 = vrot.slane %v9861_v51, 2  ;;  %v4414_v11 = vrot.slane %v9937_v40, 2  ;;  %v4376_v56 = vpack.c.bf16 %v4371_v18, %v4371_v18  ;;  %v10075_v2 = vld [vmem:[#allocation2 + $0x17] sm:$0x7f] }
 0x174   : > { %4470 = vrot.lane.b32.xlu1 %v4388_v62, %s8590_s16  ;;  %2113 = vst.msk [vmem:[#allocation2 + $0x8f] sm:$0x7f] %vm564_vm6, %v2111_v34  ;;  %v10003_v7 = vld [vmem:[#allocation2 + $0x78] sm:$0xff]  ;;  %2281 = vst.msk [vmem:[#allocation2 + $0x9e] sm:$0x7f] %vm564_vm6, %v2279_v57  ;;  %v2452_v9 = vadd.f32 %v9903_v63, %v2444_v37  ;;  %v3979_v22 = vpack.c.bf16 %v3974_v13, %v3974_v13  ;;  %v3987_v27 = vsel %vm2995_vm9, %v9896_v14, %v3986_v10 }
 0x175   : > { %2280 = vst.msk [vmem:[#allocation2 + $0x96] sm:$0xff] %vm538_vm4, %v2278_v47  ;;  %2455 = vst.msk [vmem:[#allocation2 + $0xa5] sm:$0xff] %vm538_vm4, %v2453_v53  ;;  %v4418_v26 = vrot.slane %v10003_v7, 6  ;;  %v10012_v35 = vld [vmem:[#allocation2 + $0x80] sm:$0x7f]  ;;  %v4392_v6 = vrot.slane %v10003_v7, 4  ;;  %v4415_v58 = vsel %vm443_vm1, %v4413_v42, %v4414_v11  ;;  %v3992_v23 = vpack.c.bf16 %v3987_v27, %v3987_v27 }
 0x176   : > { %4038 = vrot.lane.b32.xlu0 %v3991_v46, %s8592_s13  ;;  %v2454_v48 = vmax.f32 %v2452_v9, 0.0  ;;  %v4419_v28 = vrot.slane %v10012_v35, 6  ;;  %v4383_v33 = vrot.slane %v9937_v40, 6  ;;  %v10061_v41 = vld [vmem:[#allocation2 + $0x80] sm:$0x7f]  ;;  %v4436_v54 = vrot.slane %v10003_v7, 1 }
 0x177   : > { %v4423_v12 = vsel %vm2978_vm7, %v4414_v11, %v4418_v26  ;;  %v10035_v14 = vld [vmem:[#allocation2 + $0x87] sm:$0xff]  ;;  %v4397_v59 = vsel %vm2978_vm7, %v9937_v40, %v4392_v6  ;;  %v4437_v29 = vrot.slane %v10012_v35, 1  ;;  %v4821_v3 = vrot.slane %v10061_v41, 1 }
 0x178   : > { %v10014_v31 = vld [vmem:[#allocation5 + $0x10] ss:$2 sm:$0x7f]  ;;  %4466 = vrot.lane.b32.xlu1 %v4376_v56, %s8591_s18  ;;  %v10019_v50 = vld [vmem:[#allocation5 + $0x11] ss:$2 sm:$0x7f]  ;;  %v4424_v24 = vpack.c.bf16 %v4423_v12, %v4415_v58  ;;  %v4420_v49 = vsel %vm520_vm3, %v4418_v26, %v4419_v28  ;;  %v4398_v8 = vpack.c.bf16 %v4397_v59, %v9861_v51  ;;  %v4384_v15 = vsel %vm520_vm3, %v4382_v55, %v4383_v33 }
 0x179   : > { %2456 = vst.msk [vmem:[#allocation2 + $0xad] sm:$0x7f] %vm564_vm6, %v2454_v48  ;;  %v10043_v52 = vrot.slane %v10035_v14, 4  ;;  %v10056_v19 = vrot.slane %v10035_v14, 5  ;;  %v4389_v25 = vpack.c.bf16 %v4384_v15, %v4384_v15  ;;  %v10063_v55 = vld [vmem:[#allocation2 + $0xf] sm:$0xff]  ;;  %v2980_v16 = vrot.slane %v10075_v2, 4 }
 0x17a   : > { %2780 = vst.msk [vmem:[#allocation5 + $0x10] sm:$0xff] %vm538_vm4, %v2776_v21  ;;  %4034 = vrot.lane.b32.xlu0 %v3979_v22, %s8590_s16  ;;  %v4425_v21 = vpack.c.bf16 %v4420_v49, %v4420_v49  ;;  %v2979_v5 = vrot.slane %v10063_v55, 4  ;;  %v11455_v62 = vrot.slane %v10003_v7, 2  ;;  %v10081_v34 = vrot.slane %v10035_v14, 6  ;;  %v8562_v47 = vld [vmem:[#allocation2 + $0x8] sm:$0x7f] }
 0x17b   : > { %2781 = vst.msk [vmem:[#allocation5 + $0x18] sm:$0x3f] %vm542_vm5, %v2777_v0  ;;  %v4393_v0 = vrot.slane %v10012_v35, 4  ;;  %v4433_v60 = vsel %vm2978_vm7, %v10012_v35, %v10043_v52  ;;  %v10059_v17 = vld [vmem:[#allocation2 + $0x8f] sm:$0x7f]  ;;  %v4446_v44 = vsel %vm2978_vm7, %v4437_v29, %v10056_v19  ;;  %v4438_v57 = vsel %vm2989_vm8, %v4436_v54, %v4437_v29  ;;  %v10105_v22 = vld [vmem:[#allocation2] sm:$0xff] }
 0x17c   : > { %4482 = vrot.lane.b32.xlu1 %v4424_v24, %s8591_s18  ;;  %v4434_v45 = vpack.c.bf16 %v4433_v60, %v10003_v7  ;;  %v4429_v43 = vrot.slane %v10059_v17, 4  ;;  %v10084_v18 = vsel %vm2978_vm7, %v8562_v47, %v2979_v5  ;;  %v4830_v53 = vsel %vm2978_vm7, %v4821_v3, %v10056_v19  ;;  %v10092_v13 = vld [vmem:[#allocation2 + $0x8f] sm:$0x7f]  ;;  %v10099_v56 = vld [vmem:[#allocation2 + $0x96] sm:$0xff]  ;;  %v10115_v28 = vld [vmem:[#allocation2 + $0x9e] sm:$0x7f] }
 0x17d   : > { %v4394_v1 = vsel %vm2978_vm7, %v4392_v6, %v4393_v0  ;;  %v4442_v37 = vrot.slane %v10059_v17, 5  ;;  %v4834_v46 = vrot.slane %v10061_v41, 2  ;;  %v4447_v10 = vpack.c.bf16 %v4446_v44, %v4438_v57  ;;  %v2784_v59 = vld [vmem:[#allocation5 + $0x1] ss:$2 sm:$0xff]  ;;  %v10130_v29 = vpop.f32.mrb[52].mxu0 }
 0x17e   : > { %4040 = vrot.lane.b32.xlu0 %v3992_v23, %s8592_s13  ;;  %v4399_v39 = vpack.c.bf16 %v4394_v1, %v4394_v1  ;;  %v2611_v42 = vmax.f32 %v9980_v30, %v9982_v38  ;;  %v4430_v11 = vsel %vm2978_vm7, %v10043_v52, %v4429_v43  ;;  %v4822_v9 = vsel %vm2989_vm8, %v4436_v54, %v4821_v3  ;;  %v2782_v38 = vld [vmem:[#allocation5] ss:$2 sm:$0xff]  ;;  %v10135_v3 = vpop.f32.mrb[53].mxu0 }
 0x17f   : > { %v4831_v6 = vpack.c.bf16 %v4830_v53, %v4822_v9  ;;  %v4843_v48 = vsel %vm2978_vm7, %v4834_v46, %v10081_v34  ;;  %v4443_v12 = vsel %vm2995_vm9, %v10056_v19, %v4442_v37  ;;  %v4835_v27 = vsel %vm443_vm1, %v11455_v62, %v4834_v46  ;;  %11480 = vst [vmem:[#allocation12_spill] sm:$0xff] %v10130_v29  ;;  %v10141_v47 = vpop.f32.mrb[54].mxu0 }
 0x180   : > { %4476 = vrot.lane.b32.xlu1 %v4398_v8, %s8592_s13  ;;  %v4826_v58 = vrot.slane %v10092_v13, 5  ;;  %v10118_v24 = vsel %vm2978_vm7, %v2979_v5, %v2980_v16  ;;  %v4435_v33 = vpack.c.bf16 %v4430_v11, %v4430_v11  ;;  %v4874_v23 = vrot.slane %v10099_v56, 6  ;;  %v10123_v8 = vld [vmem:[#allocation2 + $0xa5] sm:$0xff]  ;;  %v10151_v46 = vpop.f32.mrb[55].mxu0 }
 0x181   : > { %v4839_v49 = vrot.slane %v10092_v13, 6  ;;  %v2619_v15 = vadd.f32 %v9903_v63, %v2611_v42  ;;  %v4869_v60 = vrot.slane %v10035_v14, 2  ;;  %v2612_v5 = vmax.f32 %v10014_v31, %v10019_v50 }
 0x182   : > { %4484 = vrot.lane.b32.xlu0 %v4425_v21, %s8591_s18  ;;  %v2783_v0 = vld [vmem:[#allocation5 + $0x10] ss:$2 sm:$0x7f]  ;;  %v4844_v21 = vpack.c.bf16 %v4843_v48, %v4835_v27  ;;  %v2785_v54 = vld [vmem:[#allocation5 + $0x11] ss:$2 sm:$0x7f]  ;;  %v4448_v1 = vpack.c.bf16 %v4443_v12, %v4443_v12  ;;  %v4827_v16 = vsel %vm2995_vm9, %v10056_v19, %v4826_v58  ;;  %v2786_v50 = vmax.f32 %v2782_v38, %v2784_v59 }
 0x183   : > { %v4848_v44 = vrot.slane %v10099_v56, 4  ;;  %v2621_v43 = vmax.f32 %v2619_v15, 0.0  ;;  %v2620_v31 = vadd.f32 %v9903_v63, %v2612_v5  ;;  %v4840_v53 = vsel %vm520_vm3, %v10081_v34, %v4839_v49  ;;  %v10161_v12 = vld [vmem:[#allocation2 + $0x9e] sm:$0x7f] }
 0x184   : > { %4472 = vrot.lane.b32.xlu1 %v4389_v25, %s8590_s16  ;;  %v4870_v25 = vrot.slane %v10092_v13, 2  ;;  %v10148_v37 = vrot.slane %v10123_v8, 4  ;;  %v2787_v19 = vmax.f32 %v2783_v0, %v2785_v54  ;;  %v3027_v42 = vrot.slane %v10063_v55, 1  ;;  %11482 = vst [vmem:[#allocation14_spill] sm:$0xff] %v10161_v12  ;;  %v10168_v0 = vld [vmem:[#allocation2 + $0xad] sm:$0x7f] }
 0x185   : > { %2623 = vst.msk [vmem:[#allocation2 + $0xb4] sm:$0xff] %vm538_vm4, %v2621_v43  ;;  %v2622_v11 = vmax.f32 %v2620_v31, 0.0  ;;  %v2794_v9 = vadd.f32 %v9903_v63, %v2786_v50  ;;  %v4832_v38 = vpack.c.bf16 %v4827_v16, %v4827_v16  ;;  %v3028_v27 = vrot.slane %v10075_v2, 1 }
 0x186   : > { %4488 = vrot.lane.b32.xlu0 %v4434_v45, %s8590_s16  ;;  %v4875_v45 = vrot.slane %v10115_v28, 6  ;;  %v4879_v57 = vsel %vm2978_vm7, %v4870_v25, %v4874_v23  ;;  %11481 = vst [vmem:[#allocation13_spill] sm:$0xff] %v10148_v37  ;;  %v4871_v48 = vsel %vm443_vm1, %v4869_v60, %v4870_v25  ;;  %v2795_v58 = vadd.f32 %v9903_v63, %v2787_v19  ;;  %v10198_v19 = vld [vmem:[#allocation2 + $0x1e] sm:$0xff] }
 0x187   : > { %v4845_v15 = vpack.c.bf16 %v4840_v53, %v4840_v53  ;;  %2624 = vst.msk [vmem:[#allocation2 + $0xbc] sm:$0x7f] %vm564_vm6, %v2622_v11  ;;  %v4853_v63 = vsel %vm2978_vm7, %v10092_v13, %v4848_v44  ;;  %v10180_v25 = vsel %vm2978_vm7, %v10115_v28, %v10148_v37  ;;  %v5276_v54 = vrot.slane %v10099_v56, 1  ;;  %11483 = vst [vmem:[#allocation15_spill] sm:$0xff] %v10198_v19 }
 0x188   : > { %4478 = vrot.lane.b32.xlu1 %v4399_v39, %s8592_s13  ;;  %v4849_v39 = vrot.slane %v10115_v28, 4  ;;  %v4876_v49 = vsel %vm520_vm3, %v4874_v23, %v4875_v45  ;;  %v2797_v23 = vmax.f32 %v2795_v58, 0.0  ;;  %v5281_v45 = vrot.slane %v10123_v8, 5 }
 0x189   : > { %v4893_v43 = vrot.slane %v10115_v28, 1  ;;  %v10193_v31 = vrot.slane %v10123_v8, 6  ;;  %v4885_v50 = vrot.slane %v10168_v0, 4  ;;  %v4881_v53 = vpack.c.bf16 %v4876_v49, %v4876_v49 }
 0x18a   : > { %4494 = vrot.lane.b32.xlu0 %v4447_v10, %s8592_s13  ;;  %v4850_v60 = vsel %vm2978_vm7, %v4848_v44, %v4849_v39  ;;  %v11456_v44 = vrot.slane %v10099_v56, 2  ;;  %v5290_v39 = vrot.slane %v10161_v12, 2  ;;  %2799 = vst.msk [vmem:[#allocation2 + $0xcb] sm:$0x7f] %vm564_vm6, %v2797_v23  ;;  %v3032_v11 = vrot.slane %v10198_v19, 5 }
 0x18b   : > { %v4855_v58 = vpack.c.bf16 %v4850_v60, %v4850_v60  ;;  %v10214_v62 = vsel %vm2978_vm7, %v4893_v43, %v5281_v45  ;;  %v10242_v61 = vsel %vm2989_vm8, %v3027_v42, %v3028_v27  ;;  %v3538_v2 = vrot.slane %v9605_v20, 2 }
 0x18c   : > { %4920 = vrot.lane.b32.xlu1 %v4831_v6, %s8591_s18  ;;  %v10157_v6 = vpop.f32.mrb[56].mxu0  ;;  %v5291_v60 = vsel %vm443_vm1, %v11456_v44, %v5290_v39  ;;  %v10247_v19 = vsel %vm2978_vm7, %v3028_v27, %v3032_v11 }
 0x18d   : > { %v10165_v59 = vpop.f32.mrb[57].mxu0  ;;  %v10276_v20 = vsel %vm2978_vm7, %v3538_v2, %v9748_v4  ;;  %v3038_v4 = vpack.c.bf16 %v10247_v19, %v10242_v61 }
 0x18e   : > { %4490 = vrot.lane.b32.xlu0 %v4435_v33, %s8590_s16  ;;  %v4880_v33 = vpack.c.bf16 %v4879_v57, %v4871_v48  ;;  %v10171_v5 = vpop.f32.mrb[58].mxu0  ;;  %v8565_v48 = vld [vmem:[#allocation2 + $0x26] sm:$0x7f]  ;;  %v10211_v57 = vsel %vm2989_vm8, %v5276_v54, %v4893_v43  ;;  %v4898_v43 = vrot.slane %v10168_v0, 5 }
 0x18f   : > { %v10187_v16 = vpop.f32.mrb[59].mxu0 }
 0x190   : > { %4926 = vrot.lane.b32.xlu1 %v4844_v21, %s8590_s16  ;;  %v2796_v21 = vmax.f32 %v2794_v9, 0.0  ;;  %v10201_v9 = vld [vmem:[#allocation2 + $0xad] sm:$0x7f]  ;;  %v10263_v27 = vsel %vm2995_vm9, %v5281_v45, %v4898_v43  ;;  %v11484_v43 = vpack.c.bf16 %v10084_v18, %v10105_v22  ;;  %v11485_v22 = vrot.slane %v9530_v36, 2 }
 0x191   : > { %v5295_v23 = vrot.slane %v10201_v9, 6  ;;  %v4904_v29 = vpack.c.bf16 %v10263_v27, %v10263_v27  ;;  %v10301_v18 = vld [vmem:[#allocation2 + $0xcb] sm:$0x7f] }
 0x192   : > { %4496 = vrot.lane.b32.xlu0 %v4448_v1, %s8592_s13  ;;  %v5277_v1 = vrot.slane %v10161_v12, 1  ;;  %2798 = vst.msk [vmem:[#allocation2 + $0xc3] sm:$0xff] %vm538_vm4, %v2796_v21  ;;  %v4890_v21 = vpack.c.bf16 %v10180_v25, %v10099_v56  ;;  %v10224_v25 = vsel %vm2978_vm7, %v10148_v37, %v4885_v50  ;;  %v4903_v50 = vpack.c.bf16 %v10214_v62, %v10211_v57 }
 0x193   : > { %v4891_v57 = vpack.c.bf16 %v10224_v25, %v10224_v25 }
 0x194   : > { %4922 = vrot.lane.b32.xlu1 %v4832_v38, %s8591_s18  ;;  %v3033_v38 = vrot.slane %v8565_v48, 5  ;;  %v5278_v49 = vsel %vm2989_vm8, %v5276_v54, %v5277_v1  ;;  %v5286_v26 = vsel %vm2978_vm7, %v5277_v1, %v5281_v45  ;;  %v5282_v54 = vrot.slane %v10201_v9, 5  ;;  %v10227_v1 = vld [vmem:[#allocation2 + $0xb4] sm:$0xff] }
 0x195   : > { %v5326_v48 = vrot.slane %v10201_v9, 2  ;;  %v5287_v44 = vpack.c.bf16 %v5286_v26, %v5278_v49  ;;  %v5330_v10 = vrot.slane %v10227_v1, 6  ;;  %v5304_v26 = vrot.slane %v10227_v1, 4 }
 0x196   : > { %4938 = vrot.lane.b32.xlu0 %v4880_v33, %s8591_s18  ;;  %v4854_v33 = vpack.c.bf16 %v4853_v63, %v10035_v14  ;;  %v5299_v63 = vsel %vm2978_vm7, %v5290_v39, %v10193_v31  ;;  %v5283_v55 = vsel %vm2995_vm9, %v5281_v45, %v5282_v54  ;;  %v10257_v42 = vsel %vm2995_vm9, %v3032_v11, %v3033_v38 }
 0x197   : > { %v5300_v30 = vpack.c.bf16 %v5299_v63, %v5291_v60  ;;  %v5335_v25 = vsel %vm2978_vm7, %v5326_v48, %v5330_v10  ;;  %v5348_v38 = vrot.slane %v10227_v1, 1  ;;  %v10280_v45 = vsel %vm2978_vm7, %v10201_v9, %v5304_v26 }
 0x198   : > { %4928 = vrot.lane.b32.xlu1 %v4845_v15, %s8590_s16  ;;  %v3039_v32 = vpack.c.bf16 %v10257_v42, %v10257_v42  ;;  %v5288_v37 = vpack.c.bf16 %v5283_v55, %v5283_v55  ;;  %v5310_v27 = vpack.c.bf16 %v10280_v45, %v10123_v8 }
 0x199   : > { %v10259_v49 = vld [vmem:[#allocation2 + $0xc3] sm:$0xff] }
 0x19a   : > { %4940 = vrot.lane.b32.xlu0 %v4881_v53, %s8591_s18  ;;  %v5325_v53 = vrot.slane %v10123_v8, 2  ;;  %v11464_v12 = vrot.slane %v10259_v49, 5 }
 0x19b   : > { %v3098_v15 = vpop.permute.xlu1 %3097  ;;  %v3092_v39 = vpop.permute.xlu0 %3091 }
 0x19c   : > { %4932 = vrot.lane.b32.xlu1 %v4854_v33, %s8592_s13  ;;  %v10249_v33 = vld [vmem:[#allocation2 + $0xbc] sm:$0x7f]  ;;  %v5327_v60 = vsel %vm443_vm1, %v5325_v53, %v5326_v48  ;;  %v3127_v53 = vsel %vm538_vm4, %v11484_v43, %v3092_v39  ;;  %v10306_v39 = vsel %vm443_vm1, %v11485_v22, %v3538_v2 }
 0x19d   : > { %v5331_v11 = vrot.slane %v10249_v33, 6  ;;  %v5349_v54 = vrot.slane %v10249_v33, 1  ;;  %v5336_v19 = vpack.c.bf16 %v5335_v25, %v5327_v60  ;;  %v3133_v36 = vsel %vm3131_vm10, %v3127_v53, %v3098_v15 }
 0x19e   : > { %4934 = vrot.lane.b32.xlu0 %v4855_v58, %s8592_s13  ;;  %v10268_v58 = vsel %vm520_vm3, %v10193_v31, %v5295_v23  ;;  %v5340_v23 = vrot.slane %v10259_v49, 4  ;;  %v5341_v25 = vrot.slane %v10301_v18, 4  ;;  %v4400_v15 = vrot.slane %v9861_v51, 1 }
 0x19f   : > { %v3094_v62 = vpop.permute.xlu1 %3093  ;;  %v3110_v63 = vpop.permute.xlu0 %3109  ;;  %v10312_v55 = vsel %vm520_vm3, %v5330_v10, %v5331_v11  ;;  %v10333_v10 = vsel %vm2978_vm7, %v5349_v54, %v11464_v12  ;;  %v4401_v11 = vrot.slane %v9937_v40, 1  ;;  %v11487_v12 = vrot.slane %v10003_v7, 2 }
 0x1a0   : > { %5376 = vrot.lane.b32.xlu1 %v5287_v44, %s8591_s18  ;;  %v5305_v44 = vrot.slane %v10249_v33, 4  ;;  %v10321_v2 = vsel %vm2978_vm7, %v10249_v33, %v5340_v23 }
 0x1a1   : > { %v5346_v51 = vpack.c.bf16 %v10321_v2, %v10227_v1  ;;  %v10357_v22 = vsel %vm2989_vm8, %v4400_v15, %v4401_v11  ;;  %v4906_v15 = vrot.slane %v10115_v28, 2 }
 0x1a2   : > { %4944 = vrot.lane.b32.xlu0 %v4890_v21, %s8590_s16  ;;  %v5301_v21 = vpack.c.bf16 %v10268_v58, %v10268_v58  ;;  %v10327_v60 = vsel %vm2978_vm7, %v5304_v26, %v5305_v44  ;;  %v5337_v26 = vpack.c.bf16 %v10312_v55, %v10312_v55  ;;  %v4406_v44 = vrot.slane %v10012_v35, 5 }
 0x1a3   : > { %v10290_v48 = vpop.permute.xlu1 %3099  ;;  %v10309_v61 = vpop.permute.xlu0 %3111  ;;  %v5311_v40 = vpack.c.bf16 %v10327_v60, %v10327_v60  ;;  %v5361_v60 = vrot.slane %v10227_v1, 2 }
 0x1a4   : > { %5382 = vrot.lane.b32.xlu1 %v5300_v30, %s8590_s16  ;;  %v10324_v30 = vsel %vm2989_vm8, %v5348_v38, %v5349_v54  ;;  %v11486_v38 = vpack.c.bf16 %v10118_v24, %v10118_v24  ;;  %v4450_v24 = vrot.slane %v10012_v35, 2 }
 0x1a6   : > { %4950 = vrot.lane.b32.xlu0 %v4903_v50, %s8592_s13  ;;  %v3130_v45 = vsel %vm538_vm4, %v11486_v38, %v3094_v62  ;;  %v4405_v50 = vrot.slane %v10003_v7, 5  ;;  %v5359_v62 = vpack.c.bf16 %v10333_v10, %v10324_v30  ;;  %v10367_v38 = vsel %vm2978_vm7, %v5340_v23, %v5341_v25 }
 0x1a7   : > { %v3104_v54 = vpop.permute.xlu1 %3103  ;;  %v10352_v53 = vpop.permute.xlu0 %3105  ;;  %v10374_v43 = vsel %vm443_vm1, %v11487_v12, %v4450_v24  ;;  %v10386_v23 = vsel %vm2978_vm7, %v4450_v24, %v10081_v34  ;;  %v4856_v25 = vrot.slane %v10035_v14, 1  ;;  %v3145_v12 = vsel %vm538_vm4, %v3038_v4, %v3110_v63 }
 0x1a8   : > { %5378 = vrot.lane.b32.xlu1 %v5288_v37, %s8591_s18  ;;  %v10360_v55 = vsel %vm2978_vm7, %v4401_v11, %v4405_v50  ;;  %v10363_v37 = vsel %vm2995_vm9, %v4405_v50, %v4406_v44  ;;  %v11488_v11 = vrot.slane %v10059_v17, 6  ;;  %v4857_v50 = vrot.slane %v10092_v13, 1 }
 0x1a9   : > { %v4460_v44 = vpack.c.bf16 %v10386_v23, %v10374_v43  ;;  %v10396_v17 = vsel %vm2978_vm7, %v10061_v41, %v10043_v52  ;;  %v11490_v4 = vrot.slane %v10168_v0, 6  ;;  %v10414_v41 = vsel %vm2978_vm7, %v4906_v15, %v10193_v31  ;;  %v8415_v43 = vld [vmem:[%s11446_s3 + $0x38] sm:$0xff]   ;;  %v8416_v23 = vld [vmem:[%s11446_s3] sm:$0xff]  }
 0x1aa   : > { %4946 = vrot.lane.b32.xlu0 %v4891_v57, %s8590_s16  ;;  %v10382_v57 = vsel %vm520_vm3, %v10081_v34, %v11488_v11  ;;  %v10417_v24 = vsel %vm2989_vm8, %v4856_v25, %v4857_v50  ;;  %v4861_v34 = vrot.slane %v10099_v56, 5  ;;  %v4811_v0 = vrot.slane %v10092_v13, 4 }
 0x1ab   : > { %v10410_v63 = vsel %vm520_vm3, %v10193_v31, %v11490_v4  ;;  %v3138_v4 = vsel %vm3136_vm11, %v3133_v36, %v3104_v54  ;;  %v4862_v25 = vrot.slane %v10115_v28, 5  ;;  %v2930_v36 = vrot.slane %v10165_v59, 6 }
 0x1ac   : > { %5394 = vrot.lane.b32.xlu1 %v5336_v19, %s8591_s18  ;;  %v11489_v19 = vrot.slane %v10099_v56, 2  ;;  %v10437_v13 = vsel %vm2978_vm7, %v10043_v52, %v4811_v0  ;;  %v5367_v28 = vrot.slane %v10301_v18, 6  ;;  %v2936_v52 = vrot.slane %v10171_v5, 6 }
 0x1ad   : > { %v3116_v14 = vpop.permute.xlu1 %3115  ;;  %v5354_v59 = vrot.slane %v10301_v18, 5  ;;  %v3148_v5 = vsel %vm538_vm4, %v3039_v32, %v10309_v61  ;;  %v5267_v61 = vrot.slane %v10201_v9, 4  ;;  %v5347_v10 = vpack.c.bf16 %v10367_v38, %v10367_v38 }
 0x1ae   : > { %v10401_v11 = vsel %vm443_vm1, %v11489_v19, %v4906_v15  ;;  %4952 = vrot.lane.b32.xlu0 %v4904_v29, %s8592_s13  ;;  %v3150_v19 = vsel %vm3131_vm10, %v3145_v12, %v3116_v14  ;;  %v3122_v29 = vpop.permute.xlu0 %3121  ;;  %v8375_v15 = vld [vmem:[%s11446_s3 + $0x88] sm:$0xff]   ;;  %v2929_v12 = vrot.slane %v10141_v47, 6  ;;  %v10433_v14 = vsel %vm2978_vm7, %v4857_v50, %v4861_v34 }
 0x1af   : > { %v4916_v35 = vpack.c.bf16 %v10414_v41, %v10401_v11  ;;  %v3154_v31 = vsel %vm3136_vm11, %v3150_v19, %v3122_v29  ;;  %v4867_v19 = vpack.c.bf16 %v10433_v14, %v10417_v24  ;;  %v10448_v50 = vsel %vm2995_vm9, %v4861_v34, %v4862_v25  ;;  %v8429_v11 = vld [vmem:[%s11446_s3] sm:$0xff]  }
 0x1b0   : > { %5388 = vrot.lane.b32.xlu1 %v5310_v27, %s8592_s13  ;;  %3341 = vmatprep.mubr.bf16.mxu1 %v3154_v31  ;;  %v2934_v27 = vrot.slane %v10157_v6, 6  ;;  %v3135_v6 = vsel %vm3131_vm10, %v3130_v45, %v10290_v48  ;;  %v2931_v0 = vsel %vm520_vm3, %v2929_v12, %v2930_v36  ;;  %v8378_v48 = vld [vmem:[%s11446_s3 + $0x40] sm:$0xff]   ;;  %v11493_v31 = vld [vmem:[#allocation14_spill] sm:$0xff]  ;;  %v5312_v12 = vrot.slane %v10123_v8, 1 }
 0x1b1   : > { %v10442_v54 = vpop.permute.xlu1 %3552  ;;  %3342 = vmatmul.mubr.bf16.vlgmr.msra.gmra.mrb[60].mxu1 %v3138_v4  ;;  %v2932_v4 = vrot.slane %v10187_v16, 6  ;;  %v2942_v18 = vmax.f32 %v10135_v3, %v2931_v0  ;;  %v4917_v41 = vpack.c.bf16 %v10410_v63, %v10410_v63  ;;  %v8434_v63 = vld [vmem:[%s11446_s3 + $0x30] sm:$0xff]  }
 0x1b2   : > { %5396 = vrot.lane.b32.xlu0 %v5337_v26, %s8591_s18  ;;  %v3118_v29 = vpop.permute.xlu0 %3117  ;;  %v8566_v26 = vld [vmem:[%s11446_s3 + $0x80] sm:$0xff]   ;;  %v2937_v16 = vsel %vm520_vm3, %v2934_v27, %v2936_v52  ;;  %v5317_v52 = vrot.slane %v10227_v1, 5  ;;  %v11494_v1 = vpack.c.bf16 %v10276_v20, %v10306_v39  ;;  %v11496_v39 = vld [vmem:[#allocation9_spill] sm:$0xff] }
 0x1b3   : > { %8171 = vmatpush3.bf16.msra.mxu1 %v8566_v26  ;;  %v2945_v45 = vmax.f32 %v10141_v47, %v2937_v16  ;;  %v2933_v42 = vsel %vm520_vm3, %v2930_v36, %v2932_v4  ;;  %v2935_v32 = vsel %vm520_vm3, %v2932_v4, %v2934_v27  ;;  %2946 = vst.msk [vmem:[#allocation5] sm:$0xff] %vm538_vm4, %v2942_v18  ;;  %v11492_v47 = vld [vmem:[#allocation13_spill] sm:$0xff]  ;;  %v5366_v26 = vrot.slane %v10259_v49, 6  ;;  %v11498_v18 = vld [vmem:[#allocation10_spill] sm:$0xff] }
 0x1b4   : > { %5384 = vrot.lane.b32.xlu1 %v5301_v21, %s8590_s16  ;;  %8172 = vmatprep.subr.bf16.mxu1 %v8375_v15  ;;  %v2943_v3 = vmax.f32 %v10151_v46, %v2933_v42  ;;  %v11491_v21 = vld [vmem:[#allocation12_spill] sm:$0xff]  ;;  %v10489_v25 = vsel %vm2978_vm7, %v11493_v31, %v11492_v47  ;;  %v3152_v27 = vsel %vm3131_vm10, %v3148_v5, %v3118_v29  ;;  %v5318_v29 = vrot.slane %v10249_v33, 5 }
 0x1b5   : > { %v10481_v58 = vpop.permute.xlu1 %3558  ;;  %v2944_v34 = vmax.f32 %v11491_v21, %v2935_v32  ;;  %2949 = vst.msk [vmem:[#allocation5 + $0x18] sm:$0x3f] %vm542_vm5, %v2945_v45  ;;  %v5272_v2 = vpack.c.bf16 %v10489_v25, %v10099_v56  ;;  %v10498_v46 = vsel %vm2978_vm7, %v11492_v47, %v5267_v61  ;;  %v11495_v5 = vrot.slane %v10259_v49, 5  ;;  %v8381_v49 = vld [vmem:[%s11446_s3 + $0x48] sm:$0xff]  }
 0x1b6   : > { %5400 = vrot.lane.b32.xlu0 %v5346_v51, %s8590_s16  ;;  %v3124_v36 = vpop.permute.xlu0 %3123  ;;  %v5313_v51 = vrot.slane %v10201_v9, 1  ;;  %2947 = vst.msk [vmem:[#allocation5 + $0x8] sm:$0xff] %vm538_vm4, %v2943_v3  ;;  %v10528_v0 = vsel %vm2995_vm9, %v5317_v52, %v5318_v29  ;;  %v8568_v21 = vld [vmem:[#allocation2 + $0x2d] sm:$0xff]  ;;  %v5273_v56 = vpack.c.bf16 %v10498_v46, %v10498_v46 }
 0x1b7   : > { %8173 = vmatpush3.bf16.msra.mxu1 %v8375_v15  ;;  %v3157_v8 = vsel %vm3136_vm11, %v3152_v27, %v3124_v36  ;;  %v3141_v15 = vsel %vm3136_vm11, %v3135_v6, %v10352_v53  ;;  %2948 = vst.msk [vmem:[#allocation5 + $0x10] sm:$0xff] %vm538_vm4, %v2944_v34  ;;  %v5355_v20 = vsel %vm2995_vm9, %v11495_v5, %v5354_v59  ;;  %v10564_v59 = vld [vmem:[#allocation2 + $0x3c] sm:$0xff]  ;;  %v3442_v34 = vrot.slane %v8568_v21, 4  ;;  %v8382_v47 = vld [vmem:[%s11446_s3 + $0x8] sm:$0xff]  }
 0x1b8   : > { %5390 = vrot.lane.b32.xlu1 %v5311_v40, %s8592_s13  ;;  %7712 = vmatprep.subr.bf16.mxu1 %v8378_v48  ;;  %v10513_v9 = vsel %vm2989_vm8, %v5312_v12, %v5313_v51  ;;  %v5362_v40 = vrot.slane %v10249_v33, 2  ;;  %v10525_v6 = vsel %vm2978_vm7, %v5313_v51, %v5317_v52  ;;  %v11497_v48 = vrot.slane %v11496_v39, 6  ;;  %v8569_v12 = vld [vmem:[#allocation2 + $0x35] sm:$0x7f]  ;;  %v8570_v52 = vld [vmem:[#allocation2 + $0x26] sm:$0x7f] }
 0x1b9   : > { %3349 = vmatprep.mubr.bf16.mxu1 %v3157_v8  ;;  %v10522_v53 = vpop.permute.xlu1 %3554  ;;  %v5323_v33 = vpack.c.bf16 %v10525_v6, %v10513_v9  ;;  %v5360_v42 = vpack.c.bf16 %v5355_v20, %v5355_v20  ;;  %v3493_v61 = vrot.slane %v10564_v59, 5  ;;  %v3488_v31 = vrot.slane %v8568_v21, 1  ;;  %v8384_v51 = vld [vmem:[%s11446_s3 + $0x50] sm:$0xff]   ;;  %v11499_v5 = vld [vmem:[#allocation15_spill] sm:$0xff]  ;;  %v8571_v39 = vld [vmem:[#allocation2 + $0x44] sm:$0x7f] }
 0x1ba   : > { %5406 = vrot.lane.b32.xlu0 %v5359_v62, %s8592_s13  ;;  %3350 = vmatmul.mubr.bf16.gmra.mrb[64].mxu1 %v3141_v15  ;;  %v10537_v30 = vsel %vm443_vm1, %v5361_v60, %v5362_v40  ;;  %v10542_v62 = vsel %vm520_vm3, %v5366_v26, %v5367_v28  ;;  %v10545_v4 = vsel %vm2978_vm7, %v5362_v40, %v5366_v26  ;;  %v8380_v28 = vld [vmem:[%s11446_s3] sm:$0xff]   ;;  %v3489_v27 = vrot.slane %v8569_v12, 1  ;;  %v8385_v60 = vld [vmem:[%s11446_s3 + $0x10] sm:$0xff]  }
 0x1bb   : > { %8174 = vmatprep.mubr.msk.bf16.mxu1 %vm538_vm4, %v11494_v1  ;;  %v3544_v16 = vsel %vm520_vm3, %v11498_v18, %v11497_v48  ;;  %v5372_v45 = vpack.c.bf16 %v10545_v4, %v10537_v30  ;;  %v3447_v29 = vsel %vm2978_vm7, %v8570_v52, %v3442_v34  ;;  %v8386_v1 = vld [vmem:[%s11446_s3 + $0x58] sm:$0xff]   ;;  %v3494_v48 = vrot.slane %v8571_v39, 5  ;;  %v10605_v52 = vld [vmem:[#allocation2 + $0x69] sm:$0xff] }
 0x1bc   : > { %v3549_v32 = vpack.c.bf16 %v3544_v16, %v3544_v16  ;;  %v3498_v8 = vsel %vm2978_vm7, %v3489_v27, %v3493_v61  ;;  %v3490_v40 = vsel %vm2989_vm8, %v3488_v31, %v3489_v27  ;;  %v3448_v20 = vpack.c.bf16 %v3447_v29, %v11499_v5  ;;  %v8390_v29 = vld [vmem:[%s11446_s3 + $0x20] sm:$0xff]  }
 0x1bd   : > { %v3571_v38 = vpop.permute.xlu1 %3570  ;;  %v3443_v16 = vrot.slane %v8569_v12, 4  ;;  %v8388_v12 = vld [vmem:[%s11446_s3 + $0x88] sm:$0xff]   ;;  %v3495_v27 = vsel %vm2995_vm9, %v3493_v61, %v3494_v48  ;;  %v8573_v61 = vld [vmem:[%s11446_s3 + $0x80] sm:$0xff]   ;;  %v5373_v30 = vpack.c.bf16 %v10542_v62, %v10542_v62 }
 0x1be   : > { %5402 = vrot.lane.b32.xlu0 %v5347_v10, %s8590_s16  ;;  %v3499_v10 = vpack.c.bf16 %v3498_v8, %v3490_v40  ;;  %v10617_v40 = vld [vmem:[#allocation2 + $0x5a] sm:$0xff] }
 0x1bf   : > { %v3444_v8 = vsel %vm2978_vm7, %v3442_v34, %v3443_v16  ;;  %v3500_v34 = vpack.c.bf16 %v3495_v27, %v3495_v27  ;;  %v8392_v5 = vld [vmem:[%s11446_s3 + $0x40] sm:$0xff]  }
 0x1c1   : > { %v3565_v3 = vpop.permute.xlu1 %3564 }
 0x1c2   : > { %5408 = vrot.lane.b32.xlu0 %v5360_v42, %s8592_s13  ;;  %8175 = vmatmul.mubr.msk.bf16.vlgmr.msra.gmra.mrb[68].mxu1 %vm538_vm4, %v3549_v32  ;;  %v8387_v42 = vld [vmem:[%s11446_s3 + $0x18] sm:$0xff]   ;;  %v3588_v32 = vsel %vm538_vm4, %v3448_v20, %v10442_v54  ;;  %v3449_v20 = vpack.c.bf16 %v3444_v8, %v3444_v8 }
 0x1c3   : > { %7713 = vmatpush3.bf16.msra.mxu1 %v8380_v28  ;;  %v3604_v28 = vsel %vm538_vm4, %v3499_v10, %v3571_v38  ;;  %v3593_v31 = vsel %vm3131_vm10, %v3588_v32, %v10481_v58  ;;  %v3998_v58 = vrot.slane %v10605_v52, 6 }
 0x1c4   : > { %v3573_v36 = vpop.permute.xlu0 %3572  ;;  %7714 = vmatprep.subr.bf16.mxu1 %v8381_v49  ;;  %v3597_v54 = vsel %vm3136_vm11, %v3593_v31, %v3565_v3  ;;  %v8391_v3 = vld [vmem:[%s11446_s3 + $0x68] sm:$0xff]  }
 0x1c5   : > { %v3561_v15 = vpop.permute.xlu1 %3560  ;;  %v3607_v48 = vsel %vm538_vm4, %v3500_v34, %v3573_v36  ;;  %v8393_v34 = vld [vmem:[%s11446_s3] sm:$0xff]  }
 0x1c7   : > { %7715 = vmatpush3.bf16.msra.mxu1 %v8382_v47  ;;  %v8389_v47 = vld [vmem:[%s11446_s3 + $0x60] sm:$0xff]  }
 0x1c8   : > { %v3577_v26 = vpop.permute.xlu0 %3576  ;;  %7716 = vmatprep.subr.bf16.mxu1 %v8384_v51 }
 0x1c9   : > { %v3567_v18 = vpop.permute.xlu1 %3566  ;;  %v3609_v49 = vsel %vm3131_vm10, %v3604_v28, %v3577_v26  ;;  %v3993_v26 = vrot.slane %v10617_v40, 2  ;;  %v8394_v28 = vld [vmem:[%s11446_s3 + $0x28] sm:$0xff]  }
 0x1cb   : > { %7717 = vmatpush3.bf16.msra.mxu1 %v8385_v60 }
 0x1cc   : > { %v3583_v21 = vpop.permute.xlu0 %3582  ;;  %7718 = vmatprep.subr.bf16.mxu1 %v8386_v1  ;;  %v10620_v1 = vld [vmem:[#allocation2 + $0x62] sm:$0x7f] }
 0x1cd   : > { %v3613_v38 = vsel %vm3136_vm11, %v3609_v49, %v3583_v21  ;;  %v10602_v51 = vpop.permute.xlu1 %4008  ;;  %v3994_v10 = vrot.slane %v10620_v1, 2  ;;  %v8395_v21 = vld [vmem:[%s11446_s3 + $0x70] sm:$0xff]  }
 0x1ce   : > { %3800 = vmatprep.mubr.bf16.mxu0 %v3613_v38  ;;  %v11500_v38 = vld [vmem:[#allocation11_spill] sm:$0xff] }
 0x1cf   : > { %3801 = vmatmul.mubr.bf16.vlgmr.msra.gmra.mrb[64].mxu0 %v3597_v54  ;;  %7719 = vmatpush3.bf16.msra.mxu1 %v8387_v42  ;;  %v4003_v16 = vsel %vm2978_vm7, %v3994_v10, %v3998_v58  ;;  %v3591_v42 = vsel %vm538_vm4, %v3449_v20, %v10522_v53  ;;  %v3995_v31 = vsel %vm443_vm1, %v3993_v26, %v3994_v10  ;;  %v3999_v27 = vrot.slane %v11500_v38, 6  ;;  %v8408_v26 = vld [vmem:[%s11446_s3 + $0x80] sm:$0xff]  }
 0x1d0   : > { %v3579_v60 = vpop.permute.xlu0 %3578  ;;  %8179 = vmatpush3.bf16.msra.mxu0 %v8573_v61  ;;  %7720 = vmatprep.subr.bf16.mxu1 %v8389_v47  ;;  %v3595_v36 = vsel %vm3131_vm10, %v3591_v42, %v3561_v15  ;;  %v4004_v54 = vpack.c.bf16 %v4003_v16, %v3995_v31  ;;  %v8402_v61 = vld [vmem:[%s11446_s3 + $0x38] sm:$0xff]   ;;  %v8578_v38 = vld [vmem:[#allocation2 + $0x44] sm:$0x7f] }
 0x1d1   : > { %8180 = vmatprep.subr.bf16.mxu0 %v8388_v12  ;;  %v3611_v32 = vsel %vm3131_vm10, %v3607_v48, %v3579_v60  ;;  %v3600_v53 = vsel %vm3136_vm11, %v3595_v36, %v3567_v18  ;;  %v4000_v60 = vsel %vm520_vm3, %v3998_v58, %v3999_v27  ;;  %v8396_v58 = vld [vmem:[%s11446_s3 + $0x48] sm:$0xff]   ;;  %v8577_v42 = vld [vmem:[#allocation2 + $0x53] sm:$0x7f] }
 0x1d2   : > { %v10626_v39 = vpop.permute.xlu1 %4014  ;;  %v4005_v10 = vpack.c.bf16 %v4000_v60, %v4000_v60  ;;  %v8576_v48 = vld [vmem:[#allocation2 + $0x4b] sm:$0xff]  ;;  %v3899_v60 = vrot.slane %v8577_v42, 4 }
 0x1d3   : > { %7721 = vmatpush3.bf16.msra.mxu1 %v8390_v29  ;;  %v8399_v29 = vld [vmem:[%s11446_s3 + $0x78] sm:$0xff]   ;;  %v3898_v16 = vrot.slane %v8576_v48, 4  ;;  %v8400_v36 = vld [vmem:[%s11446_s3 + $0x50] sm:$0xff]  }
 0x1d4   : > { %v3585_v49 = vpop.permute.xlu0 %3584  ;;  %8181 = vmatpush3.bf16.msra.mxu0 %v8388_v12  ;;  %7722 = vmatprep.subr.bf16.mxu1 %v8391_v3  ;;  %v8398_v12 = vld [vmem:[%s11446_s3 + $0x30] sm:$0xff]  }
 0x1d5   : > { %v3616_v47 = vsel %vm3136_vm11, %v3611_v32, %v3585_v49  ;;  %7744 = vmatprep.subr.bf16.mxu0 %v8392_v5  ;;  %v3949_v5 = vrot.slane %v10617_v40, 5  ;;  %v3945_v32 = vrot.slane %v8577_v42, 1  ;;  %v3903_v27 = vsel %vm2978_vm7, %v8578_v38, %v3898_v16 }
 0x1d6   : > { %3808 = vmatprep.mubr.bf16.mxu0 %v3616_v47  ;;  %v10644_v8 = vpop.permute.xlu1 %4010 }
 0x1d7   : > { %3809 = vmatmul.mubr.bf16.gmra.mrb[68].mxu0 %v3600_v53  ;;  %7723 = vmatpush3.bf16.msra.mxu1 %v8394_v28  ;;  %v3944_v28 = vrot.slane %v8576_v48, 1  ;;  %v3954_v47 = vsel %vm2978_vm7, %v3945_v32, %v3949_v5 }
 0x1d8   : > { %8182 = vmatprep.mubr.msk.bf16.mxu0 %vm538_vm4, %v4004_v54  ;;  %v4027_v15 = vpop.permute.xlu0 %4026  ;;  %7724 = vmatprep.subr.bf16.mxu1 %v8395_v21  ;;  %v8397_v21 = vld [vmem:[%s11446_s3 + $0x8] sm:$0xff]  }
 0x1d9   : > { %v3946_v53 = vsel %vm2989_vm8, %v3944_v28, %v3945_v32 }
 0x1da   : > { %v10654_v18 = vpop.permute.xlu1 %4016 }
 0x1db   : > { %7725 = vmatpush3.bf16.msra.mxu1 %v8398_v12  ;;  %v8401_v12 = vld [vmem:[%s11446_s3 + $0x10] sm:$0xff]  }
 0x1dc   : > { %v10659_v3 = vpop.permute.xlu0 %4028  ;;  %7726 = vmatprep.subr.bf16.mxu1 %v8399_v29  ;;  %v3955_v29 = vpack.c.bf16 %v3954_v47, %v3946_v53  ;;  %v8406_v53 = vld [vmem:[%s11446_s3 + $0x20] sm:$0xff]  }
 0x1de   : > { %v4021_v20 = vpop.permute.xlu1 %4020  ;;  %v4060_v48 = vsel %vm538_vm4, %v3955_v29, %v4027_v15  ;;  %v8411_v15 = vld [vmem:[%s11446_s3 + $0x88] sm:$0xff]  }
 0x1df   : > { %8183 = vmatmul.mubr.msk.bf16.vlgmr.msra.gmra.mrb[72].mxu0 %vm538_vm4, %v4005_v10  ;;  %7727 = vmatpush3.bf16.msra.mxu1 %v8402_v61  ;;  %v8403_v61 = vld [vmem:[%s11446_s3 + $0x58] sm:$0xff]   ;;  %v3950_v10 = vrot.slane %v10620_v1, 5  ;;  %v3900_v1 = vsel %vm2978_vm7, %v3898_v16, %v3899_v60 }
 0x1e0   : > { %7745 = vmatpush3.bf16.msra.mxu0 %v8393_v34  ;;  %v4023_v49 = vpop.permute.xlu0 %4022  ;;  %8186 = vmatprep.subr.bf16.mxu1 %v8408_v26  ;;  %v3904_v34 = vpack.c.bf16 %v3903_v27, %v10564_v59 }
 0x1e1   : > { %7746 = vmatprep.subr.bf16.mxu0 %v8396_v58  ;;  %v3951_v47 = vsel %vm2995_vm9, %v3949_v5, %v3950_v10  ;;  %v8407_v5 = vld [vmem:[%s11446_s3 + $0x68] sm:$0xff]  }
 0x1e2   : > { %v10679_v31 = vpop.permute.xlu1 %4464  ;;  %v4044_v28 = vsel %vm538_vm4, %v3904_v34, %v10602_v51  ;;  %v8405_v51 = vld [vmem:[%s11446_s3 + $0x60] sm:$0xff]   ;;  %v8409_v10 = vld [vmem:[%s11446_s3 + $0x28] sm:$0xff]  }
 0x1e3   : > { %v4049_v59 = vsel %vm3131_vm10, %v4044_v28, %v10626_v39  ;;  %v3905_v39 = vpack.c.bf16 %v3900_v1, %v3900_v1  ;;  %v4354_v28 = vrot.slane %v10605_v52, 4 }
 0x1e4   : > { %7747 = vmatpush3.bf16.msra.mxu0 %v8397_v21  ;;  %v4033_v54 = vpop.permute.xlu0 %4032  ;;  %v8404_v21 = vld [vmem:[%s11446_s3 + $0x18] sm:$0xff]   ;;  %v4053_v38 = vsel %vm3136_vm11, %v4049_v59, %v4021_v20  ;;  %v8414_v20 = vld [vmem:[%s11446_s3 + $0x40] sm:$0xff]  }
 0x1e5   : > { %7748 = vmatprep.subr.bf16.mxu0 %v8400_v36  ;;  %v4065_v32 = vsel %vm3131_vm10, %v4060_v48, %v4033_v54  ;;  %v3956_v54 = vpack.c.bf16 %v3951_v47, %v3951_v47  ;;  %v8579_v59 = vld [vmem:[#allocation2 + $0x62] sm:$0x7f] }
 0x1e6   : > { %v10691_v58 = vpop.permute.xlu1 %4470  ;;  %v4359_v52 = vsel %vm2978_vm7, %v8579_v59, %v4354_v28 }
 0x1e7   : > { %v4063_v60 = vsel %vm538_vm4, %v3956_v54, %v10659_v3 }
 0x1e8   : > { %7749 = vmatpush3.bf16.msra.mxu0 %v8401_v12  ;;  %v4039_v42 = vpop.permute.xlu0 %4038  ;;  %v4047_v12 = vsel %vm538_vm4, %v3905_v39, %v10644_v8  ;;  %v8410_v8 = vld [vmem:[%s11446_s3 + $0x70] sm:$0xff]  }
 0x1e9   : > { %v4069_v36 = vsel %vm3136_vm11, %v4065_v32, %v4039_v42  ;;  %7750 = vmatprep.subr.bf16.mxu0 %v8403_v61  ;;  %v8412_v42 = vld [vmem:[%s11446_s3 + $0x30] sm:$0xff]  }
 0x1ea   : > { %4256 = vmatprep.mubr.bf16.mxu1 %v4069_v36  ;;  %v10712_v27 = vpop.permute.xlu1 %4466  ;;  %v8417_v36 = vld [vmem:[%s11446_s3 + $0x48] sm:$0xff]  }
 0x1eb   : > { %4257 = vmatmul.mubr.bf16.vlgmr.msra.gmra.mrb[72].mxu1 %v4053_v38  ;;  %v8580_v38 = vld [vmem:[#allocation2 + $0x71] sm:$0x7f] }
 0x1ec   : > { %7751 = vmatpush3.bf16.msra.mxu0 %v8404_v21  ;;  %v4035_v16 = vpop.permute.xlu0 %4034  ;;  %8187 = vmatpush3.bf16.msra.mxu1 %v8408_v26  ;;  %v4051_v26 = vsel %vm3131_vm10, %v4047_v12, %v10654_v18  ;;  %v4355_v39 = vrot.slane %v8580_v38, 4  ;;  %v8433_v38 = vld [vmem:[%s11446_s3 + $0x8] sm:$0xff]  }
 0x1ed   : > { %7752 = vmatprep.subr.bf16.mxu0 %v8405_v51  ;;  %8188 = vmatprep.subr.bf16.mxu1 %v8411_v15  ;;  %v4067_v61 = vsel %vm3131_vm10, %v4063_v60, %v4035_v16  ;;  %v4056_v18 = vsel %vm3136_vm11, %v4051_v26, %v4023_v49  ;;  %v8413_v49 = vld [vmem:[%s11446_s3 + $0x78] sm:$0xff]   ;;  %v8418_v51 = vld [vmem:[%s11446_s3 + $0x80] sm:$0xff]   ;;  %v11501_v16 = vpack.c.bf16 %v10360_v55, %v10357_v22  ;;  %v8420_v55 = vld [vmem:[%s11446_s3 + $0x50] sm:$0xff]  }
 0x1ee   : > { %v4483_v29 = vpop.permute.xlu1 %4482  ;;  %v4356_v60 = vsel %vm2978_vm7, %v4354_v28, %v4355_v39  ;;  %v8421_v26 = vld [vmem:[%s11446_s3 + $0x10] sm:$0xff]  }
 0x1f0   : > { %7753 = vmatpush3.bf16.msra.mxu0 %v8406_v53  ;;  %v4041_v34 = vpop.permute.xlu0 %4040  ;;  %8189 = vmatpush3.bf16.msra.mxu1 %v8411_v15  ;;  %v4360_v15 = vpack.c.bf16 %v4359_v52, %v10617_v40  ;;  %v4516_v53 = vsel %vm538_vm4, %v11501_v16, %v4483_v29  ;;  %v8419_v40 = vld [vmem:[%s11446_s3 + $0x8] sm:$0xff]  }
 0x1f1   : > { %v4072_v48 = vsel %vm3136_vm11, %v4067_v61, %v4041_v34  ;;  %7754 = vmatprep.subr.bf16.mxu0 %v8407_v5  ;;  %7776 = vmatprep.subr.bf16.mxu1 %v8414_v20  ;;  %v4412_v61 = vpack.c.bf16 %v10363_v37, %v10363_v37  ;;  %v8422_v34 = vld [vmem:[%s11446_s3 + $0x58] sm:$0xff]  }
 0x1f2   : > { %4264 = vmatprep.mubr.bf16.mxu1 %v4072_v48  ;;  %v4477_v3 = vpop.permute.xlu1 %4476  ;;  %v4361_v48 = vpack.c.bf16 %v4356_v60, %v4356_v60 }
 0x1f3   : > { %4265 = vmatmul.mubr.bf16.gmra.mrb[76].mxu1 %v4056_v18 }
 0x1f4   : > { %7755 = vmatpush3.bf16.msra.mxu0 %v8409_v10  ;;  %v4485_v32 = vpop.permute.xlu0 %4484  ;;  %8190 = vmatprep.mubr.msk.bf16.mxu1 %vm538_vm4, %v4460_v44  ;;  %v4461_v44 = vpack.c.bf16 %v10382_v57, %v10382_v57  ;;  %v4500_v57 = vsel %vm538_vm4, %v4360_v15, %v10679_v31  ;;  %v8423_v31 = vld [vmem:[%s11446_s3 + $0x88] sm:$0xff]   ;;  %v8428_v10 = vld [vmem:[%s11446_s3 + $0x40] sm:$0xff]  }
 0x1f5   : > { %7756 = vmatprep.subr.bf16.mxu0 %v8410_v8  ;;  %v4505_v20 = vsel %vm3131_vm10, %v4500_v57, %v10691_v58  ;;  %v4519_v18 = vsel %vm538_vm4, %v4412_v61, %v4485_v32  ;;  %v8425_v32 = vld [vmem:[%s11446_s3 + $0x60] sm:$0xff]   ;;  %v8436_v57 = vld [vmem:[%s11446_s3 + $0x50] sm:$0xff]  }
 0x1f6   : > { %v4473_v21 = vpop.permute.xlu1 %4472  ;;  %v4509_v12 = vsel %vm3136_vm11, %v4505_v20, %v4477_v3  ;;  %v4503_v3 = vsel %vm538_vm4, %v4361_v48, %v10712_v27  ;;  %v8440_v48 = vld [vmem:[%s11446_s3 + $0x18] sm:$0xff]  }
 0x1f8   : > { %7757 = vmatpush3.bf16.msra.mxu0 %v8412_v42  ;;  %v4489_v1 = vpop.permute.xlu0 %4488  ;;  %v8424_v42 = vld [vmem:[%s11446_s3 + $0x18] sm:$0xff]  }
 0x1f9   : > { %7758 = vmatprep.subr.bf16.mxu0 %v8413_v49  ;;  %v4521_v54 = vsel %vm3131_vm10, %v4516_v53, %v4489_v1  ;;  %v4507_v49 = vsel %vm3131_vm10, %v4503_v3, %v4473_v21  ;;  %v8426_v1 = vld [vmem:[%s11446_s3 + $0x20] sm:$0xff]   ;;  %v8435_v53 = vld [vmem:[%s11446_s3 + $0x78] sm:$0xff]  }
 0x1fa   : > { %v4479_v47 = vpop.permute.xlu1 %4478  ;;  %v8442_v3 = vld [vmem:[%s11446_s3 + $0x20] sm:$0xff]  }
 0x1fb   : > { %8191 = vmatmul.mubr.msk.bf16.vlgmr.msra.gmra.mrb[80].mxu1 %vm538_vm4, %v4461_v44  ;;  %v4512_v27 = vsel %vm3136_vm11, %v4507_v49, %v4479_v47 }
 0x1fc   : > { %7759 = vmatpush3.bf16.msra.mxu0 %v8415_v43  ;;  %v4495_v5 = vpop.permute.xlu0 %4494  ;;  %7777 = vmatpush3.bf16.msra.mxu1 %v8416_v23  ;;  %v8427_v43 = vld [vmem:[%s11446_s3 + $0x68] sm:$0xff]  }
 0x1fd   : > { %v4525_v22 = vsel %vm3136_vm11, %v4521_v54, %v4495_v5  ;;  %7778 = vmatprep.subr.bf16.mxu1 %v8417_v36  ;;  %8194 = vmatprep.subr.bf16.mxu0 %v8418_v51  ;;  %v8431_v36 = vld [vmem:[%s11446_s3 + $0x70] sm:$0xff]  }
 0x1fe   : > { %4712 = vmatprep.mubr.bf16.mxu0 %v4525_v22  ;;  %v10786_v29 = vpop.permute.xlu1 %4920  ;;  %v8437_v22 = vld [vmem:[%s11446_s3 + $0x10] sm:$0xff]  }
 0x1ff   : > { %4713 = vmatmul.mubr.bf16.vlgmr.msra.gmra.mrb[76].mxu0 %v4509_v12  ;;  %v8444_v12 = vld [vmem:[%s11446_s3 + $0x80] sm:$0xff]  }
 0x200   : > { %v4491_v58 = vpop.permute.xlu0 %4490  ;;  %7779 = vmatpush3.bf16.msra.mxu1 %v8419_v40  ;;  %8195 = vmatpush3.bf16.msra.mxu0 %v8418_v51  ;;  %v8432_v51 = vld [vmem:[%s11446_s3 + $0x48] sm:$0xff]  }
 0x201   : > { %7780 = vmatprep.subr.bf16.mxu1 %v8420_v55  ;;  %8196 = vmatprep.subr.bf16.mxu0 %v8423_v31  ;;  %v4523_v37 = vsel %vm3131_vm10, %v4519_v18, %v4491_v58  ;;  %v8438_v55 = vld [vmem:[%s11446_s3 + $0x38] sm:$0xff]  }
 0x202   : > { %v10800_v8 = vpop.permute.xlu1 %4926 }
 0x204   : > { %v4497_v28 = vpop.permute.xlu0 %4496  ;;  %7781 = vmatpush3.bf16.msra.mxu1 %v8421_v26  ;;  %8197 = vmatpush3.bf16.msra.mxu0 %v8423_v31  ;;  %v8439_v31 = vld [vmem:[%s11446_s3 + $0x58] sm:$0xff]   ;;  %v11502_v26 = vpack.c.bf16 %v10396_v17, %v10003_v7  ;;  %v8441_v7 = vld [vmem:[%s11446_s3 + $0x60] sm:$0xff]   ;;  %v8447_v17 = vld [vmem:[%s11446_s3 + $0x88] sm:$0xff]  }
 0x205   : > { %v4528_v59 = vsel %vm3136_vm11, %v4523_v37, %v4497_v28  ;;  %7782 = vmatprep.subr.bf16.mxu1 %v8422_v34  ;;  %7808 = vmatprep.subr.bf16.mxu0 %v8428_v10  ;;  %v4868_v37 = vpack.c.bf16 %v10448_v50, %v10448_v50  ;;  %v8443_v28 = vld [vmem:[%s11446_s3 + $0x68] sm:$0xff]  }
 0x206   : > { %4720 = vmatprep.mubr.bf16.mxu0 %v4528_v59  ;;  %v10815_v52 = vpop.permute.xlu1 %4922  ;;  %v4956_v61 = vsel %vm538_vm4, %v11502_v26, %v10786_v29  ;;  %v8445_v50 = vld [vmem:[%s11446_s3 + $0x28] sm:$0xff]  }
 0x207   : > { %4721 = vmatmul.mubr.bf16.gmra.mrb[80].mxu0 %v4512_v27  ;;  %v4961_v24 = vsel %vm3131_vm10, %v4956_v61, %v10800_v8  ;;  %v4817_v8 = vpack.c.bf16 %v10437_v13, %v10437_v13 }
 0x208   : > { %8198 = vmatprep.mubr.msk.bf16.mxu0 %vm538_vm4, %v4916_v35  ;;  %v4939_v21 = vpop.permute.xlu0 %4938  ;;  %7783 = vmatpush3.bf16.msra.mxu1 %v8424_v42  ;;  %v8430_v35 = vld [vmem:[%s11446_s3 + $0x28] sm:$0xff]  }
 0x209   : > { %7784 = vmatprep.subr.bf16.mxu1 %v8425_v32  ;;  %v4972_v58 = vsel %vm538_vm4, %v4867_v19, %v4939_v21  ;;  %v4959_v42 = vsel %vm538_vm4, %v4817_v8, %v10815_v52  ;;  %v8446_v52 = vld [vmem:[%s11446_s3 + $0x70] sm:$0xff]  }
 0x20a   : > { %v10827_v23 = vpop.permute.xlu1 %4928 }
 0x20b   : > { %v4963_v49 = vsel %vm3131_vm10, %v4959_v42, %v10827_v23  ;;  %v8448_v23 = vld [vmem:[%s11446_s3 + $0x30] sm:$0xff]  }
 0x20c   : > { %v4941_v44 = vpop.permute.xlu0 %4940  ;;  %7785 = vmatpush3.bf16.msra.mxu1 %v8426_v1 }
 0x20d   : > { %7786 = vmatprep.subr.bf16.mxu1 %v8427_v43  ;;  %v4975_v13 = vsel %vm538_vm4, %v4868_v37, %v4941_v44  ;;  %v8449_v44 = vld [vmem:[%s11446_s3 + $0x78] sm:$0xff]  }
 0x20e   : > { %v4933_v15 = vpop.permute.xlu1 %4932 }
 0x20f   : > { %8199 = vmatmul.mubr.msk.bf16.vlgmr.msra.gmra.mrb[84].mxu0 %vm538_vm4, %v4917_v41  ;;  %v4965_v19 = vsel %vm3136_vm11, %v4961_v24, %v4933_v15  ;;  %v8450_v41 = vld [vmem:[%s11446_s3 + $0x38] sm:$0xff]  }
 0x210   : > { %7809 = vmatpush3.bf16.msra.mxu0 %v8429_v11  ;;  %v10844_v47 = vpop.permute.xlu0 %4934  ;;  %7787 = vmatpush3.bf16.msra.mxu1 %v8430_v35  ;;  %v10852_v39 = vpop.f32.mrb[60].mxu0 }
 0x211   : > { %7788 = vmatprep.subr.bf16.mxu1 %v8431_v36  ;;  %7810 = vmatprep.subr.bf16.mxu0 %v8432_v51  ;;  %v10854_v16 = vpop.f32.mrb[61].mxu0  ;;  %v4968_v1 = vsel %vm3136_vm11, %v4963_v49, %v10844_v47 }
 0x212   : > { %v8169_v54 = vpop.f32.mrb[62].mxu0  ;;  %v10862_v5 = vpop.permute.xlu1 %5376 }
 0x213   : > { %v10864_v40 = vpop.f32.mrb[63].mxu0 }
 0x214   : > { %7811 = vmatpush3.bf16.msra.mxu0 %v8433_v38  ;;  %v4945_v20 = vpop.permute.xlu0 %4944  ;;  %7789 = vmatpush3.bf16.msra.mxu1 %v8434_v63 }
 0x215   : > { %7790 = vmatprep.subr.bf16.mxu1 %v8435_v53  ;;  %7812 = vmatprep.subr.bf16.mxu0 %v8436_v57  ;;  %v4977_v34 = vsel %vm3131_vm10, %v4972_v58, %v4945_v20 }
 0x216   : > { %v5383_v60 = vpop.permute.xlu1 %5382 }
 0x218   : > { %7813 = vmatpush3.bf16.msra.mxu0 %v8437_v22  ;;  %v4951_v10 = vpop.permute.xlu0 %4950  ;;  %7791 = vmatpush3.bf16.msra.mxu1 %v8438_v55 }
 0x219   : > { %v4981_v14 = vsel %vm3136_vm11, %v4977_v34, %v4951_v10  ;;  %7814 = vmatprep.subr.bf16.mxu0 %v8439_v31  ;;  %8202 = vmatprep.subr.bf16.mxu1 %v8444_v12 }
 0x21a   : > { %5168 = vmatprep.mubr.bf16.mxu1 %v4981_v14  ;;  %v5379_v29 = vpop.permute.xlu1 %5378 }
 0x21b   : > { %5169 = vmatmul.mubr.bf16.vlgmr.msra.gmra.mrb[84].mxu1 %v4965_v19  ;;  %v5415_v38 = vsel %vm538_vm4, %v5273_v56, %v5379_v29 }
 0x21c   : > { %7815 = vmatpush3.bf16.msra.mxu0 %v8440_v48  ;;  %v4947_v18 = vpop.permute.xlu0 %4946  ;;  %8203 = vmatpush3.bf16.msra.mxu1 %v8444_v12 }
 0x21d   : > { %7816 = vmatprep.subr.bf16.mxu0 %v8441_v7  ;;  %8204 = vmatprep.subr.bf16.mxu1 %v8447_v17  ;;  %v4979_v59 = vsel %vm3131_vm10, %v4975_v13, %v4947_v18  ;;  %v10974_v18 = vld [vmem:[%s11447_s4] ss:$0 sm:$0xff] }
 0x21e   : > { %v5395_v21 = vpop.permute.xlu1 %5394 }
 0x21f   : > { %v5428_v4 = vsel %vm538_vm4, %v5323_v33, %v5395_v21  ;;  %v5324_v33 = vpack.c.bf16 %v10528_v0, %v10528_v0 }
 0x220   : > { %7817 = vmatpush3.bf16.msra.mxu0 %v8442_v3  ;;  %v4953_v32 = vpop.permute.xlu0 %4952  ;;  %8205 = vmatpush3.bf16.msra.mxu1 %v8447_v17 }
 0x221   : > { %v4984_v27 = vsel %vm3136_vm11, %v4979_v59, %v4953_v32  ;;  %7818 = vmatprep.subr.bf16.mxu0 %v8443_v28 }
 0x222   : > { %5176 = vmatprep.mubr.bf16.mxu1 %v4984_v27  ;;  %v5389_v11 = vpop.permute.xlu1 %5388 }
 0x223   : > { %5177 = vmatmul.mubr.bf16.gmra.mrb[88].mxu1 %v4968_v1 }
 0x224   : > { %7819 = vmatpush3.bf16.msra.mxu0 %v8445_v50  ;;  %v5397_v43 = vpop.permute.xlu0 %5396  ;;  %8206 = vmatprep.mubr.msk.bf16.mxu1 %vm538_vm4, %v5372_v45  ;;  %v5412_v45 = vsel %vm538_vm4, %v5272_v2, %v10862_v5 }
 0x225   : > { %7820 = vmatprep.subr.bf16.mxu0 %v8446_v52  ;;  %v5417_v15 = vsel %vm3131_vm10, %v5412_v45, %v5383_v60  ;;  %v5431_v25 = vsel %vm538_vm4, %v5324_v33, %v5397_v43  ;;  %v8452_v45 = vld [vmem:[%s11448_s5] sm:$0xff]  }
 0x226   : > { %v5385_v62 = vpop.permute.xlu1 %5384  ;;  %v5421_v9 = vsel %vm3136_vm11, %v5417_v15, %v5389_v11 }
 0x227   : > { %v5419_v57 = vsel %vm3131_vm10, %v5415_v38, %v5385_v62 }
 0x228   : > { %7821 = vmatpush3.bf16.msra.mxu0 %v8448_v23  ;;  %v5401_v35 = vpop.permute.xlu0 %5400 }
 0x229   : > { %7822 = vmatprep.subr.bf16.mxu0 %v8449_v44  ;;  %v5433_v36 = vsel %vm3131_vm10, %v5428_v4, %v5401_v35  ;;  %v8451_v4 = vld [vmem:[%s11448_s5 + $0x40] sm:$0xff]  }
 0x22a   : > { %v5391_v2 = vpop.permute.xlu1 %5390  ;;  %7840 = vmatprep.subr.bf16.mxu1 %v8451_v4 }
 0x22b   : > { %8207 = vmatmul.mubr.msk.bf16.vlgmr.msra.gmra.mrb[92].mxu1 %vm538_vm4, %v5373_v30  ;;  %v5424_v5 = vsel %vm3136_vm11, %v5419_v57, %v5391_v2 }
 0x22c   : > { %7823 = vmatpush3.bf16.msra.mxu0 %v8450_v41  ;;  %v5407_v51 = vpop.permute.xlu0 %5406  ;;  %7841 = vmatpush3.bf16.msra.mxu1 %v8452_v45  ;;  %v8463_v45 = vld [vmem:[%s11448_s5 + $0x28] sm:$0xff]  }
 0x22d   : > { %v5437_v47 = vsel %vm3136_vm11, %v5433_v36, %v5407_v51 }
 0x22e   : > { %5624 = vmatprep.mubr.bf16.mxu0 %v5437_v47 }
 0x22f   : > { %5625 = vmatmul.mubr.bf16.vlgmr.msra.gmra.mrb[88].mxu0 %v5421_v9 }
 0x230   : > { %v5403_v6 = vpop.permute.xlu0 %5402 }
 0x231   : > { %v5435_v63 = vsel %vm3131_vm10, %v5431_v25, %v5403_v6 }
 0x234   : > { %v5409_v53 = vpop.permute.xlu0 %5408 }
 0x235   : > { %v5440_v54 = vsel %vm3136_vm11, %v5435_v63, %v5409_v53 }
 0x236   : > { %5632 = vmatprep.mubr.bf16.mxu0 %v5440_v54 }
 0x237   : > { %5633 = vmatmul.mubr.bf16.gmra.mrb[92].mxu0 %v5424_v5 }
 0x284   : > { %v7664_v0 = vpop.f32.mrb[60].mxu1 }
 0x285   : > { %v7665_v20 = vpop.f32.mrb[61].mxu1 }
 0x286   : > { %v7666_v22 = vadd.f32 %v7665_v20, %v7664_v0  ;;  %v7667_v46 = vpop.f32.mrb[62].mxu1 }
 0x287   : > { %v7668_v55 = vpop.f32.mrb[63].mxu1 }
 0x288   : > { %v3392_v31 = vadd.f32 %v7666_v22, %v10854_v16  ;;  %v7669_v12 = vadd.f32 %v7668_v55, %v7667_v46  ;;  %v8453_v22 = vld [vmem:[%s11448_s5 + $0x48] sm:$0xff]   ;;  %v8455_v55 = vld [vmem:[%s11448_s5 + $0x50] sm:$0xff]  }
 0x289   : > { %v8454_v46 = vld [vmem:[%s11448_s5 + $0x8] sm:$0xff]   ;;  %7842 = vmatprep.subr.bf16.mxu1 %v8453_v22 }
 0x28a   : > { %v3395_v60 = vadd.f32 %v7669_v12, %v10864_v40  ;;  %7843 = vmatpush3.bf16.msra.mxu1 %v8454_v46 }
 0x28b   : > { %7844 = vmatprep.subr.bf16.mxu1 %v8455_v55 }
 0x28c   : > { %v3408_v24 = vrot.slane %v3395_v60, 4 }
 0x28d   : > { %v7670_v58 = vpop.f32.mrb[64].mxu1 }
 0x28e   : > { %v7671_v26 = vpop.f32.mrb[65].mxu1 }
 0x28f   : > { %v7672_v61 = vadd.f32 %v7671_v26, %v7670_v58  ;;  %v7673_v34 = vpop.f32.mrb[66].mxu1  ;;  %v8462_v58 = vld [vmem:[%s11448_s5 + $0xc0] sm:$0xff]  }
 0x290   : > { %v7674_v10 = vpop.f32.mrb[67].mxu1  ;;  %v8464_v26 = vld [vmem:[%s11448_s5 + $0x80] sm:$0xff]   ;;  %v8457_v34 = vld [vmem:[%s11448_s5 + $0x58] sm:$0xff]   ;;  %7862 = vmatprep.subr.bf16.mxu0 %v8462_v58  ;;  %v8593_v58 = vmov 0.0  }
 0x291   : > { %v3400_v48 = vadd.f32 %v10852_v39, %v7672_v61  ;;  %v8466_v10 = vld [vmem:[%s11448_s5 + $0xc8] sm:$0xff]   ;;  %7863 = vmatpush3.bf16.msra.mxu0 %v8464_v26  ;;  %v8474_v26 = vld [vmem:[%s11448_s5 + $0x98] sm:$0xff]  }
 0x292   : > { %7864 = vmatprep.subr.bf16.mxu0 %v8466_v10 }
 0x293   : > { %v3409_v14 = vrot.slane %v3400_v48, 4 }
 0x295   : > { %v3410_v7 = vsel %vm2978_vm7, %v3408_v24, %v3409_v14  ;;  %v3414_v17 = vmax.f32 %v3395_v60, %v3409_v14  ;;  %v8176_v19 = vpop.f32.mrb[68].mxu1  ;;  %v8456_v60 = vld [vmem:[%s11448_s5 + $0x10] sm:$0xff]  }
 0x296   : > { %v3413_v29 = vmax.f32 %v3392_v31, %v3410_v7  ;;  %v3850_v8 = vpop.f32.mrb[69].mxu1  ;;  %7845 = vmatpush3.bf16.msra.mxu1 %v8456_v60  ;;  %v8473_v60 = vld [vmem:[%s11448_s5 + $0xd8] sm:$0xff]  }
 0x297   : > { %3417 = vst.msk [vmem:[#allocation6 + $0x8] sm:$0xf] %vm3416_vm12, %v3414_v17  ;;  %v8177_v16 = vpop.f32.mrb[70].mxu1  ;;  %v8468_v17 = vld [vmem:[%s11448_s5 + $0x88] sm:$0xff]   ;;  %7846 = vmatprep.subr.bf16.mxu1 %v8457_v34 }
 0x298   : > { %3415 = vst.msk [vmem:[#allocation6] sm:$0xff] %vm3131_vm10, %v3413_v29  ;;  %v3853_v40 = vpop.f32.mrb[71].mxu1  ;;  %7865 = vmatpush3.bf16.msra.mxu0 %v8468_v17 }
 0x29f   : > { %v3418_v39 = vld [vmem:[#allocation6] ss:$2 sm:$0x3f]  ;;  %v3420_v3 = vld [vmem:[#allocation6 + $0x1] ss:$2 sm:$0x3f] }
 0x2a0   : > { %v3421_v37 = vmax.f32 %v3418_v39, %v3420_v3  ;;  %v8459_v3 = vld [vmem:[%s11448_s5 + $0x60] sm:$0xff]  }
 0x2a2   : > { %v7696_v28 = vpop.f32.mrb[64].mxu0  ;;  %v3428_v42 = vadd.f32 %v10974_v18, %v3421_v37  ;;  %v8470_v37 = vld [vmem:[%s11448_s5 + $0xd0] sm:$0xff]  }
 0x2a3   : > { %v7697_v13 = vpop.f32.mrb[65].mxu0  ;;  %7866 = vmatprep.subr.bf16.mxu0 %v8470_v37  ;;  %v8480_v37 = vld [vmem:[%s11448_s5 + $0xa8] sm:$0xff]  }
 0x2a4   : > { %v7698_v49 = vadd.f32 %v7697_v13, %v7696_v28  ;;  %v7699_v59 = vpop.f32.mrb[66].mxu0  ;;  %v3429_v32 = vmax.f32 %v3428_v42, 0.0 }
 0x2a5   : > { %v7700_v50 = vpop.f32.mrb[67].mxu0 }
 0x2a6   : > { %v3851_v27 = vadd.f32 %v7698_v49, %v3850_v8  ;;  %v7701_v21 = vadd.f32 %v7700_v50, %v7699_v59  ;;  %3431 = vst.msk [vmem:[#allocation3] sm:$0x3f] %vm3430_vm13, %v3429_v32  ;;  %v8458_v8 = vld [vmem:[%s11448_s5 + $0x18] sm:$0xff]   ;;  %v8472_v32 = vld [vmem:[%s11448_s5 + $0x90] sm:$0xff]  }
 0x2a7   : > { %7847 = vmatpush3.bf16.msra.mxu1 %v8458_v8  ;;  %7867 = vmatpush3.bf16.msra.mxu0 %v8472_v32 }
 0x2a8   : > { %v3854_v52 = vadd.f32 %v7701_v21, %v3853_v40  ;;  %7848 = vmatprep.subr.bf16.mxu1 %v8459_v3  ;;  %7868 = vmatprep.subr.bf16.mxu0 %v8473_v60 }
 0x2aa   : > { %v7702_v1 = vpop.f32.mrb[68].mxu0  ;;  %v3867_v41 = vrot.slane %v3854_v52, 4 }
 0x2ab   : > { %v7703_v43 = vpop.f32.mrb[69].mxu0  ;;  %7869 = vmatpush3.bf16.msra.mxu0 %v8474_v26 }
 0x2ac   : > { %v7704_v23 = vadd.f32 %v7703_v43, %v7702_v1  ;;  %v7705_v44 = vpop.f32.mrb[70].mxu0  ;;  %v8460_v43 = vld [vmem:[%s11448_s5 + $0x20] sm:$0xff]  }
 0x2ad   : > { %v7706_v11 = vpop.f32.mrb[71].mxu0  ;;  %v5712_v14 = vld [vmem:[#allocation3] sm:$0x3f]  ;;  %7849 = vmatpush3.bf16.msra.mxu1 %v8460_v43 }
 0x2ae   : > { %v3859_v35 = vadd.f32 %v8176_v19, %v7704_v23  ;;  %v5722_v16 = vrot.slane %v5712_v14, 1  ;;  %v5728_v50 = vrot.slane %v5712_v14, 2  ;;  %v8461_v11 = vld [vmem:[%s11448_s5 + $0x68] sm:$0xff]  }
 0x2af   : > { %7850 = vmatprep.subr.bf16.mxu1 %v8461_v11 }
 0x2b0   : > { %v3868_v30 = vrot.slane %v3859_v35, 4 }
 0x2b1   : > { %7851 = vmatpush3.bf16.msra.mxu1 %v8463_v45 }
 0x2b2   : > { %v3869_v36 = vsel %vm2978_vm7, %v3867_v41, %v3868_v30  ;;  %v3873_v51 = vmax.f32 %v3854_v52, %v3868_v30  ;;  %v8184_v15 = vpop.f32.mrb[72].mxu0 }
 0x2b3   : > { %v3872_v62 = vmax.f32 %v3851_v27, %v3869_v36  ;;  %v4306_v47 = vpop.f32.mrb[73].mxu0 }
 0x2b4   : > { %3875 = vst.msk [vmem:[#allocation6 + $0x8] sm:$0xf] %vm3416_vm12, %v3873_v51  ;;  %v8185_v9 = vpop.f32.mrb[74].mxu0  ;;  %v8465_v51 = vld [vmem:[%s11448_s5 + $0x70] sm:$0xff]  }
 0x2b5   : > { %3874 = vst.msk [vmem:[#allocation6] sm:$0xff] %vm3131_vm10, %v3872_v62  ;;  %v4309_v6 = vpop.f32.mrb[75].mxu0  ;;  %7852 = vmatprep.subr.bf16.mxu1 %v8465_v51  ;;  %v8486_v51 = vld [vmem:[%s11448_s5 + $0xb8] sm:$0xff]  }
 0x2bc   : > { %v3876_v33 = vld [vmem:[#allocation6] ss:$2 sm:$0x3f]  ;;  %v3877_v56 = vld [vmem:[#allocation6 + $0x1] ss:$2 sm:$0x3f] }
 0x2bd   : > { %v3878_v25 = vmax.f32 %v3876_v33, %v3877_v56  ;;  %v8467_v33 = vld [vmem:[%s11448_s5 + $0x30] sm:$0xff]   ;;  %v8469_v56 = vld [vmem:[%s11448_s5 + $0x78] sm:$0xff]  }
 0x2be   : > { %v7728_v2 = vpop.f32.mrb[72].mxu1  ;;  %7853 = vmatpush3.bf16.msra.mxu1 %v8467_v33 }
 0x2bf   : > { %v7729_v38 = vpop.f32.mrb[73].mxu1  ;;  %v3885_v63 = vadd.f32 %v10974_v18, %v3878_v25  ;;  %7854 = vmatprep.subr.bf16.mxu1 %v8469_v56 }
 0x2c0   : > { %v7730_v53 = vadd.f32 %v7729_v38, %v7728_v2  ;;  %v7731_v57 = vpop.f32.mrb[74].mxu1 }
 0x2c1   : > { %v7732_v54 = vpop.f32.mrb[75].mxu1  ;;  %v3886_v5 = vmax.f32 %v3885_v63, 0.0 }
 0x2c2   : > { %v4307_v0 = vadd.f32 %v7730_v53, %v4306_v47  ;;  %v7733_v20 = vadd.f32 %v7732_v54, %v7731_v57  ;;  %v8471_v57 = vld [vmem:[%s11448_s5 + $0x38] sm:$0xff]  }
 0x2c3   : > { %3887 = vst.msk [vmem:[#allocation3 + $0x6] sm:$0x3f] %vm3430_vm13, %v3886_v5  ;;  %7855 = vmatpush3.bf16.msra.mxu1 %v8471_v57 }
 0x2c4   : > { %v4310_v31 = vadd.f32 %v7733_v20, %v4309_v6  ;;  %8210 = vmatprep.subr.bf16.mxu1 %v8593_v58 }
 0x2c6   : > { %v7734_v12 = vpop.f32.mrb[76].mxu1  ;;  %v4323_v28 = vrot.slane %v4310_v31, 4 }
 0x2c7   : > { %v7735_v61 = vpop.f32.mrb[77].mxu1 }
 0x2c8   : > { %v7736_v48 = vadd.f32 %v7735_v61, %v7734_v12  ;;  %v7737_v24 = vpop.f32.mrb[78].mxu1 }
 0x2c9   : > { %v7738_v7 = vpop.f32.mrb[79].mxu1 }
 0x2ca   : > { %v4315_v19 = vadd.f32 %v8184_v15, %v7736_v48  ;;  %v11016_v29 = vld [vmem:[#allocation3 + $0x6] sm:$0x3f]  ;;  %v8476_v48 = vld [vmem:[%s11448_s5 + $0xe0] sm:$0xff]  }
 0x2cb   : > { %v5724_v40 = vrot.slane %v11016_v29, 5  ;;  %v5717_v39 = vrot.slane %v11016_v29, 4  ;;  %v5730_v13 = vrot.slane %v11016_v29, 6  ;;  %v8477_v7 = vld [vmem:[%s11448_s5 + $0xa0] sm:$0xff]   ;;  %7870 = vmatprep.subr.bf16.mxu0 %v8476_v48 }
 0x2cc   : > { %v4324_v42 = vrot.slane %v4315_v19, 4  ;;  %7871 = vmatpush3.bf16.msra.mxu0 %v8477_v7 }
 0x2cd   : > { %v5726_v49 = vsel %vm2978_vm7, %v5722_v16, %v5724_v40  ;;  %v11032_v59 = vsel %vm2978_vm7, %v5712_v14, %v5717_v39  ;;  %v11045_v35 = vsel %vm2978_vm7, %v5728_v50, %v5730_v13  ;;  %v8479_v16 = vld [vmem:[%s11448_s5 + $0xe8] sm:$0xff]   ;;  %v5745_v39 = vrot.slane %v11016_v29, 2 }
 0x2ce   : > { %v4325_v27 = vsel %vm2978_vm7, %v4323_v28, %v4324_v42  ;;  %v4329_v21 = vmax.f32 %v4310_v31, %v4324_v42  ;;  %v8192_v52 = vpop.f32.mrb[80].mxu1  ;;  %v5727_v1 = vpack.c.bf16 %v5726_v49, %v5726_v49  ;;  %v5739_v28 = vrot.slane %v11016_v29, 1  ;;  %7872 = vmatprep.subr.bf16.mxu0 %v8479_v16 }
 0x2cf   : > { %v4328_v23 = vmax.f32 %v4307_v0, %v4325_v27  ;;  %v4762_v44 = vpop.f32.mrb[81].mxu1 }
 0x2d0   : > { %4331 = vst.msk [vmem:[#allocation6 + $0x8] sm:$0xf] %vm3416_vm12, %v4329_v21  ;;  %v8193_v41 = vpop.f32.mrb[82].mxu1  ;;  %5769 = vrot.lane.b32.xlu1 %v5727_v1, %s8590_s16  ;;  %v8482_v21 = vld [vmem:[%s11448_s5 + $0xf0] sm:$0xff]   ;;  %7873 = vmatpush3.bf16.msra.mxu0 %v8480_v37 }
 0x2d1   : > { %4330 = vst.msk [vmem:[#allocation6] sm:$0xff] %vm3131_vm10, %v4328_v23  ;;  %v4765_v30 = vpop.f32.mrb[83].mxu1  ;;  %7874 = vmatprep.subr.bf16.mxu0 %v8482_v21 }
 0x2d2   : > { %v7760_v4 = vpop.f32.mrb[76].mxu0 }
 0x2d3   : > { %v7761_v36 = vpop.f32.mrb[77].mxu0 }
 0x2d4   : > { %v7762_v15 = vadd.f32 %v7761_v36, %v7760_v4  ;;  %v7763_v62 = vpop.f32.mrb[78].mxu0 }
 0x2d5   : > { %v7764_v47 = vpop.f32.mrb[79].mxu0 }
 0x2d6   : > { %v4763_v9 = vadd.f32 %v7762_v15, %v4762_v44  ;;  %v7765_v6 = vadd.f32 %v7764_v47, %v7763_v62  ;;  %v8485_v44 = vld [vmem:[%s11448_s5 + $0xf8] sm:$0xff]  }
 0x2d8   : > { %v4332_v25 = vld [vmem:[#allocation6] ss:$2 sm:$0x3f]  ;;  %v4333_v2 = vld [vmem:[#allocation6 + $0x1] ss:$2 sm:$0x3f]  ;;  %v4766_v38 = vadd.f32 %v7765_v6, %v4765_v30 }
 0x2d9   : > { %v4334_v63 = vmax.f32 %v4332_v25, %v4333_v2 }
 0x2da   : > { %v7766_v53 = vpop.f32.mrb[80].mxu0  ;;  %v4779_v31 = vrot.slane %v4766_v38, 4 }
 0x2db   : > { %v7767_v54 = vpop.f32.mrb[81].mxu0  ;;  %v4341_v5 = vadd.f32 %v10974_v18, %v4334_v63 }
 0x2dc   : > { %v7768_v0 = vadd.f32 %v7767_v54, %v7766_v53  ;;  %v7769_v20 = vpop.f32.mrb[82].mxu0 }
 0x2dd   : > { %v7770_v22 = vpop.f32.mrb[83].mxu0  ;;  %v4342_v46 = vmax.f32 %v4341_v5, 0.0 }
 0x2de   : > { %v4771_v55 = vadd.f32 %v8192_v52, %v7768_v0  ;;  %v8483_v52 = vld [vmem:[%s11448_s5 + $0xb0] sm:$0xff]  }
 0x2df   : > { %4343 = vst.msk [vmem:[#allocation3 + $0xc] sm:$0x3f] %vm3430_vm13, %v4342_v46  ;;  %7875 = vmatpush3.bf16.msra.mxu0 %v8483_v52 }
 0x2e0   : > { %v4780_v12 = vrot.slane %v4771_v55, 4  ;;  %7876 = vmatprep.subr.bf16.mxu0 %v8485_v44 }
 0x2e2   : > { %v4781_v61 = vsel %vm2978_vm7, %v4779_v31, %v4780_v12  ;;  %v4785_v34 = vmax.f32 %v4766_v38, %v4780_v12  ;;  %v8200_v10 = vpop.f32.mrb[84].mxu0 }
 0x2e3   : > { %v4784_v24 = vmax.f32 %v4763_v9, %v4781_v61  ;;  %v5218_v14 = vpop.f32.mrb[85].mxu0  ;;  %7877 = vmatpush3.bf16.msra.mxu0 %v8486_v51  ;;  %v8487_v9 = vld [vmem:[%s11448_s5 + $0x40] sm:$0xff]  }
 0x2e4   : > { %4787 = vst.msk [vmem:[#allocation6 + $0x8] sm:$0xf] %vm3416_vm12, %v4785_v34  ;;  %v8201_v17 = vpop.f32.mrb[86].mxu0  ;;  %7889 = vmatprep.subr.bf16.mxu0 %v8487_v9 }
 0x2e5   : > { %4786 = vst.msk [vmem:[#allocation6] sm:$0xff] %vm3131_vm10, %v4784_v24  ;;  %v5221_v19 = vpop.f32.mrb[87].mxu0 }
 0x2e6   : > { %v11083_v8 = vld [vmem:[#allocation3 + $0xc] sm:$0x3f] }
 0x2e7   : > { %v5735_v40 = vrot.slane %v11083_v8, 4  ;;  %v5747_v3 = vrot.slane %v11083_v8, 6  ;;  %v5741_v42 = vrot.slane %v11083_v8, 5  ;;  %v6226_v56 = vld [vmem:[#allocation3 + $0xc] sm:$0x3f]  ;;  %v5756_v63 = vrot.slane %v11083_v8, 1 }
 0x2e8   : > { %v6236_v5 = vrot.slane %v6226_v56, 1  ;;  %v5762_v0 = vrot.slane %v11083_v8, 2  ;;  %v6242_v55 = vrot.slane %v6226_v56, 2 }
 0x2e9   : > { %v5737_v13 = vsel %vm2978_vm7, %v11016_v29, %v5735_v40  ;;  %v5749_v49 = vsel %vm2978_vm7, %v5745_v39, %v5747_v3  ;;  %v11100_v27 = vsel %vm2978_vm7, %v5739_v28, %v5741_v42 }
 0x2ea   : > { %v5738_v32 = vpack.c.bf16 %v5737_v13, %v5737_v13  ;;  %v5750_v50 = vpack.c.bf16 %v5749_v49, %v5749_v49 }
 0x2ec   : > { %5772 = vrot.lane.b32.xlu0 %v5738_v32, %s8590_s16  ;;  %5775 = vrot.lane.b32.xlu1 %v5750_v50, %s8590_s16  ;;  %v4788_v29 = vld [vmem:[#allocation6] ss:$2 sm:$0x3f]  ;;  %v4789_v1 = vld [vmem:[#allocation6 + $0x1] ss:$2 sm:$0x3f] }
 0x2ed   : > { %v4790_v43 = vmax.f32 %v4788_v29, %v4789_v1 }
 0x2ee   : > { %v7792_v23 = vpop.f32.mrb[84].mxu1 }
 0x2ef   : > { %v7793_v11 = vpop.f32.mrb[85].mxu1  ;;  %v4797_v41 = vadd.f32 %v10974_v18, %v4790_v43 }
 0x2f0   : > { %v7794_v30 = vadd.f32 %v7793_v11, %v7792_v23  ;;  %v7795_v4 = vpop.f32.mrb[86].mxu1 }
 0x2f1   : > { %v7796_v45 = vpop.f32.mrb[87].mxu1  ;;  %v4798_v36 = vmax.f32 %v4797_v41, 0.0 }
 0x2f2   : > { %v5219_v15 = vadd.f32 %v7794_v30, %v5218_v14  ;;  %v7797_v62 = vadd.f32 %v7796_v45, %v7795_v4 }
 0x2f3   : > { %4799 = vst.msk [vmem:[#allocation3 + $0x12] sm:$0x3f] %vm3430_vm13, %v4798_v36 }
 0x2f4   : > { %v5222_v47 = vadd.f32 %v7797_v62, %v5221_v19 }
 0x2f6   : > { %v7798_v6 = vpop.f32.mrb[88].mxu1  ;;  %v5235_v31 = vrot.slane %v5222_v47, 4 }
 0x2f7   : > { %v7799_v33 = vpop.f32.mrb[89].mxu1 }
 0x2f8   : > { %v7800_v25 = vadd.f32 %v7799_v33, %v7798_v6  ;;  %v7801_v2 = vpop.f32.mrb[90].mxu1 }
 0x2f9   : > { %v7802_v38 = vpop.f32.mrb[91].mxu1 }
 0x2fa   : > { %v5227_v53 = vadd.f32 %v8200_v10, %v7800_v25  ;;  %v5715_v57 = vld [vmem:[#allocation3 + $0x12] sm:$0x3f] }
 0x2fb   : > { %v11122_v54 = vld [vmem:[#allocation3 + $0x12] sm:$0x3f]  ;;  %v5758_v20 = vrot.slane %v5715_v57, 5  ;;  %v5764_v22 = vrot.slane %v5715_v57, 6  ;;  %v5752_v26 = vrot.slane %v5715_v57, 4 }
 0x2fc   : > { %v6238_v46 = vrot.slane %v11122_v54, 5  ;;  %v5236_v12 = vrot.slane %v5227_v53, 4  ;;  %v6231_v60 = vrot.slane %v11122_v54, 4  ;;  %v6244_v48 = vrot.slane %v11122_v54, 6 }
 0x2fd   : > { %v5760_v61 = vsel %vm2978_vm7, %v5756_v63, %v5758_v20  ;;  %v11130_v10 = vsel %vm2978_vm7, %v5762_v0, %v5764_v22  ;;  %v11139_v3 = vsel %vm2978_vm7, %v11083_v8, %v5752_v26  ;;  %v6253_v38 = vrot.slane %v11122_v54, 1 }
 0x2fe   : > { %v6240_v34 = vsel %vm2978_vm7, %v6236_v5, %v6238_v46  ;;  %v5237_v24 = vsel %vm2978_vm7, %v5235_v31, %v5236_v12  ;;  %v5241_v14 = vmax.f32 %v5222_v47, %v5236_v12  ;;  %v8208_v7 = vpop.f32.mrb[92].mxu1  ;;  %v5761_v17 = vpack.c.bf16 %v5760_v61, %v5760_v61 }
 0x2ff   : > { %v6241_v19 = vpack.c.bf16 %v6240_v34, %v6240_v34  ;;  %v5240_v16 = vmax.f32 %v5219_v15, %v5237_v24  ;;  %v5674_v40 = vpop.f32.mrb[93].mxu1  ;;  %v11135_v39 = vsel %vm2978_vm7, %v6226_v56, %v6231_v60  ;;  %v11145_v28 = vsel %vm2978_vm7, %v6242_v55, %v6244_v48 }
 0x300   : > { %v8209_v37 = vpop.f32.mrb[94].mxu1  ;;  %5243 = vst.msk [vmem:[#allocation6 + $0x8] sm:$0xf] %vm3416_vm12, %v5241_v14  ;;  %5778 = vrot.lane.b32.xlu0 %v5761_v17, %s8590_s16  ;;  %v6259_v56 = vrot.slane %v11122_v54, 2 }
 0x301   : > { %6283 = vrot.lane.b32.xlu1 %v6241_v19, %s8590_s16  ;;  %5242 = vst.msk [vmem:[#allocation6] sm:$0xff] %vm3131_vm10, %v5240_v16  ;;  %v5677_v42 = vpop.f32.mrb[95].mxu1  ;;  %v5733_v19 = vpack.c.bf16 %v11045_v35, %v11045_v35  ;;  %v5720_v16 = vpack.c.bf16 %v11032_v59, %v11032_v59  ;;  %v8475_v37 = vld [vmem:[%s11448_s5 + $0x100] sm:$0xff]   ;;  %v8481_v59 = vld [vmem:[%s11448_s5 + $0x110] sm:$0xff]   ;;  %v8484_v35 = vld [vmem:[%s11448_s5 + $0x118] sm:$0xff]  }
 0x302   : > { %v7824_v13 = vpop.f32.mrb[88].mxu0 }
 0x303   : > { %v7825_v49 = vpop.f32.mrb[89].mxu0 }
 0x304   : > { %v7826_v32 = vadd.f32 %v7825_v49, %v7824_v13  ;;  %v7827_v50 = vpop.f32.mrb[90].mxu0  ;;  %v8478_v49 = vld [vmem:[%s11448_s5 + $0x108] sm:$0xff]  }
 0x305   : > { %v7828_v21 = vpop.f32.mrb[91].mxu0 }
 0x306   : > { %v5675_v8 = vadd.f32 %v7826_v32, %v5674_v40  ;;  %v7829_v52 = vadd.f32 %v7828_v21, %v7827_v50  ;;  %v8497_v32 = vld [vmem:[%s11448_s5 + $0xc0] sm:$0xff]   ;;  %v5767_v21 = vpack.c.bf16 %v11130_v10, %v11130_v10  ;;  %v8502_v10 = vld [vmem:[%s11448_s5 + $0x88] sm:$0xff]  }
 0x307   : > { %v8498_v50 = vld [vmem:[%s11448_s5 + $0x80] sm:$0xff]  }
 0x308   : > { %v5678_v29 = vadd.f32 %v7829_v52, %v5677_v42  ;;  %v5244_v1 = vld [vmem:[#allocation6] ss:$2 sm:$0x3f]  ;;  %v5245_v43 = vld [vmem:[#allocation6 + $0x1] ss:$2 sm:$0x3f] }
 0x309   : > { %v5246_v23 = vmax.f32 %v5244_v1, %v5245_v43  ;;  %v5744_v1 = vpack.c.bf16 %v11100_v27, %v11100_v27  ;;  %v8505_v27 = vld [vmem:[%s11448_s5 + $0xd0] sm:$0xff]  }
 0x30a   : > { %v7830_v44 = vpop.f32.mrb[92].mxu0  ;;  %v5691_v15 = vrot.slane %v5678_v29, 4 }
 0x30b   : > { %v7831_v11 = vpop.f32.mrb[93].mxu0  ;;  %v5253_v41 = vadd.f32 %v10974_v18, %v5246_v23  ;;  %v8488_v23 = vld [vmem:[%s11448_s5] sm:$0xff]  }
 0x30c   : > { %v7832_v30 = vadd.f32 %v7831_v11, %v7830_v44  ;;  %v7833_v4 = vpop.f32.mrb[94].mxu0  ;;  %v8489_v11 = vld [vmem:[%s11448_s5 + $0x48] sm:$0xff]  }
 0x30d   : > { %v7834_v45 = vpop.f32.mrb[95].mxu0  ;;  %v5254_v36 = vmax.f32 %v5253_v41, 0.0  ;;  %v8490_v41 = vld [vmem:[%s11448_s5 + $0x8] sm:$0xff]   ;;  %v8491_v4 = vld [vmem:[%s11448_s5 + $0x50] sm:$0xff]  }
 0x30e   : > { %v5683_v51 = vadd.f32 %v8208_v7, %v7832_v30  ;;  %v8506_v30 = vld [vmem:[%s11448_s5 + $0x90] sm:$0xff]   ;;  %v8509_v45 = vld [vmem:[%s11448_s5 + $0xd8] sm:$0xff]  }
 0x30f   : > { %5255 = vst.msk [vmem:[#allocation3 + $0x18] sm:$0x3f] %vm3430_vm13, %v5254_v36  ;;  %v8492_v36 = vld [vmem:[%s11448_s5 + $0x10] sm:$0xff]  }
 0x310   : > { %v5692_v62 = vrot.slane %v5683_v51, 4  ;;  %v8510_v51 = vld [vmem:[%s11448_s5 + $0x98] sm:$0xff]  }
 0x312   : > { %v5693_v47 = vsel %vm2978_vm7, %v5691_v15, %v5692_v62  ;;  %v5697_v9 = vmax.f32 %v5678_v29, %v5692_v62  ;;  %v5755_v29 = vpack.c.bf16 %v11139_v3, %v11139_v3  ;;  %v8493_v15 = vld [vmem:[%s11448_s5 + $0x58] sm:$0xff]   ;;  %v8511_v62 = vld [vmem:[%s11448_s5 + $0xe0] sm:$0xff]  }
 0x313   : > { %v5696_v6 = vmax.f32 %v5675_v8, %v5693_v47  ;;  %v8501_v8 = vld [vmem:[%s11448_s5 + $0xc8] sm:$0xff]   ;;  %v8494_v47 = vld [vmem:[%s11448_s5 + $0x18] sm:$0xff]  }
 0x314   : > { %5699 = vst.msk [vmem:[#allocation6 + $0x8] sm:$0xf] %vm3416_vm12, %v5697_v9  ;;  %v8513_v9 = vld [vmem:[%s11448_s5 + $0xa0] sm:$0xff]  }
 0x315   : > { %5698 = vst.msk [vmem:[#allocation6] sm:$0xff] %vm3131_vm10, %v5696_v6  ;;  %v8495_v6 = vld [vmem:[%s11448_s5 + $0x60] sm:$0xff]  }
 0x316   : > { %v6228_v33 = vld [vmem:[#allocation3 + $0x18] sm:$0x3f] }
 0x317   : > { %v6249_v25 = vrot.slane %v6228_v33, 4  ;;  %v6261_v2 = vrot.slane %v6228_v33, 6  ;;  %v6255_v63 = vrot.slane %v6228_v33, 5  ;;  %v6270_v60 = vrot.slane %v6228_v33, 1 }
 0x318   : > { %v6276_v48 = vrot.slane %v6228_v33, 2 }
 0x319   : > { %v6251_v53 = vsel %vm2978_vm7, %v11122_v54, %v6249_v25  ;;  %v6263_v57 = vsel %vm2978_vm7, %v6259_v56, %v6261_v2  ;;  %v11159_v5 = vsel %vm2978_vm7, %v6253_v38, %v6255_v63  ;;  %v8496_v56 = vld [vmem:[%s11448_s5 + $0x20] sm:$0xff]   ;;  %v8516_v25 = vld [vmem:[%s11448_s5 + $0xa8] sm:$0xff]   ;;  %v8517_v38 = vld [vmem:[%s11448_s5 + $0xf0] sm:$0xff]  }
 0x31a   : > { %v6252_v0 = vpack.c.bf16 %v6251_v53, %v6251_v53  ;;  %v6264_v20 = vpack.c.bf16 %v6263_v57, %v6263_v57  ;;  %v8499_v2 = vld [vmem:[%s11448_s5 + $0x68] sm:$0xff]   ;;  %v8519_v53 = vld [vmem:[%s11448_s5 + $0xb0] sm:$0xff]  }
 0x31b   : > { %v8500_v63 = vld [vmem:[%s11448_s5 + $0x28] sm:$0xff]   ;;  %v8503_v57 = vld [vmem:[%s11448_s5 + $0x70] sm:$0xff]  }
 0x31c   : > { %6286 = vrot.lane.b32.xlu0 %v6252_v0, %s8590_s16  ;;  %6289 = vrot.lane.b32.xlu1 %v6264_v20, %s8590_s16  ;;  %v5700_v22 = vld [vmem:[#allocation6] ss:$2 sm:$0x3f]  ;;  %v5701_v46 = vld [vmem:[#allocation6 + $0x1] ss:$2 sm:$0x3f] }
 0x31d   : > { %v5702_v55 = vmax.f32 %v5700_v22, %v5701_v46  ;;  %v8520_v0 = vld [vmem:[%s11448_s5 + $0xf8] sm:$0xff]   ;;  %v8504_v20 = vld [vmem:[%s11448_s5 + $0x30] sm:$0xff]  }
 0x31e   : > { %v8522_v22 = vld [vmem:[%s11448_s5 + $0xb8] sm:$0xff]  }
 0x31f   : > { %v5709_v31 = vadd.f32 %v10974_v18, %v5702_v55  ;;  %v8507_v46 = vld [vmem:[%s11448_s5 + $0x78] sm:$0xff]   ;;  %v6247_v55 = vpack.c.bf16 %v11145_v28, %v11145_v28  ;;  %v8512_v28 = vld [vmem:[%s11448_s5 + $0x100] sm:$0xff]  }
 0x321   : > { %v5710_v12 = vmax.f32 %v5709_v31, 0.0 }
 0x323   : > { %5711 = vst.msk [vmem:[#allocation3 + $0x1e] sm:$0x3f] %vm3430_vm13, %v5710_v12  ;;  %v8508_v12 = vld [vmem:[%s11448_s5 + $0x38] sm:$0xff]  }
 0x32a   : > { %v6229_v54 = vld [vmem:[#allocation3 + $0x1e] sm:$0x3f] }
 0x32b   : > { %v6272_v26 = vrot.slane %v6229_v54, 5  ;;  %v6278_v61 = vrot.slane %v6229_v54, 6  ;;  %v6266_v34 = vrot.slane %v6229_v54, 4 }
 0x32d   : > { %v6274_v24 = vsel %vm2978_vm7, %v6270_v60, %v6272_v26  ;;  %v11167_v14 = vsel %vm2978_vm7, %v6228_v33, %v6266_v34  ;;  %v11170_v7 = vsel %vm2978_vm7, %v6276_v48, %v6278_v61  ;;  %v8514_v33 = vld [vmem:[%s11448_s5 + $0xe8] sm:$0xff]   ;;  %v6234_v26 = vpack.c.bf16 %v11135_v39, %v11135_v39  ;;  %v8518_v39 = vld [vmem:[%s11448_s5 + $0x110] sm:$0xff]   ;;  %v8521_v48 = vld [vmem:[%s11448_s5 + $0x118] sm:$0xff]  }
 0x32e   : > { %v6275_v17 = vpack.c.bf16 %v6274_v24, %v6274_v24  ;;  %v8515_v34 = vld [vmem:[%s11448_s5 + $0x108] sm:$0xff]  }
 0x330   : > { %6292 = vrot.lane.b32.xlu0 %v6275_v17, %s8590_s16  ;;  %v6269_v17 = vpack.c.bf16 %v11167_v14, %v11167_v14  ;;  %v8525_v14 = vld [vmem:[%s11450_s7 + $0xc0] sm:$0xff]  }
 0x342   : > { %v5770_v18 = vpop.permute.xlu1 %5769 }
 0x343   : > { %v5782_v13 = vsel %vm3131_vm10, %v5720_v16, %v5770_v18  ;;  %v6258_v18 = vpack.c.bf16 %v11159_v5, %v11159_v5  ;;  %v8524_v5 = vld [vmem:[%s11450_s7] sm:$0xff]  }
 0x35e   : > { %v5773_v40 = vpop.permute.xlu0 %5772  ;;  %v5776_v52 = vpop.permute.xlu1 %5775 }
 0x35f   : > { %v5786_v42 = vsel %vm3131_vm10, %v5733_v19, %v5773_v40  ;;  %v5790_v3 = vsel %vm3131_vm10, %v5744_v1, %v5776_v52  ;;  %v6281_v40 = vpack.c.bf16 %v11170_v7, %v11170_v7  ;;  %v8526_v7 = vld [vmem:[%s11450_s7 + $0x80] sm:$0xff]   ;;  %v8537_v52 = vld [vmem:[%s11450_s7 + $0xd8] sm:$0xff]  }
 0x360   : > { %6119 = vmatprep.mubr.bf16.mxu1 %v5786_v42  ;;  %v8527_v42 = vld [vmem:[%s11450_s7 + $0x48] sm:$0xff]   ;;  %v8538_v1 = vld [vmem:[%s11450_s7 + $0x98] sm:$0xff]  }
 0x361   : > { %6120 = vmatmul.mubr.bf16.vlgmr.msra.gmra.mrb[96].mxu1 %v5782_v13  ;;  %v8529_v13 = vld [vmem:[%s11450_s7 + $0xc8] sm:$0xff]  }
 0x362   : > { %8211 = vmatpush3.bf16.msra.mxu1 %v8475_v37  ;;  %8218 = vmatprep.mubr.msk.bf16.mxu1 %vm8594_vm14, %v8593_v58 }
 0x363   : > { %8212 = vmatprep.subr.bf16.mxu1 %v8593_v58 }
 0x366   : > { %8213 = vmatpush3.bf16.msra.mxu1 %v8478_v49  ;;  %v8528_v49 = vld [vmem:[%s11450_s7 + $0x8] sm:$0xff]  }
 0x367   : > { %8214 = vmatprep.subr.bf16.mxu1 %v8593_v58 }
 0x36a   : > { %8215 = vmatpush3.bf16.msra.mxu1 %v8481_v59  ;;  %v8530_v59 = vld [vmem:[%s11450_s7 + $0x88] sm:$0xff]  }
 0x36b   : > { %8216 = vmatprep.subr.bf16.mxu1 %v8593_v58 }
 0x36e   : > { %8217 = vmatpush3.bf16.msra.mxu1 %v8484_v35  ;;  %v8531_v35 = vld [vmem:[%s11450_s7 + $0x50] sm:$0xff]  }
 0x36f   : > { %7911 = vmatprep.subr.bf16.mxu1 %v8497_v32  ;;  %v8533_v32 = vld [vmem:[%s11450_s7 + $0xd0] sm:$0xff]  }
 0x371   : > { %8219 = vmatmul.mubr.msk.bf16.vlgmr.msra.gmra.mrb[100].mxu1 %vm3131_vm10, %v5767_v21  ;;  %v8534_v21 = vld [vmem:[%s11450_s7 + $0x90] sm:$0xff]  }
 0x372   : > { %v5779_v43 = vpop.permute.xlu0 %5778  ;;  %7912 = vmatpush3.bf16.msra.mxu1 %v8498_v50  ;;  %v8532_v50 = vld [vmem:[%s11450_s7 + $0x10] sm:$0xff]  }
 0x373   : > { %v5794_v44 = vsel %vm3131_vm10, %v5755_v29, %v5779_v43  ;;  %7913 = vmatprep.subr.bf16.mxu1 %v8501_v8  ;;  %v6284_v60 = vpop.permute.xlu1 %6283  ;;  %v8535_v8 = vld [vmem:[%s11450_s7 + $0x58] sm:$0xff]   ;;  %v8539_v43 = vld [vmem:[%s11450_s7 + $0x60] sm:$0xff]  }
 0x374   : > { %6159 = vmatprep.mubr.bf16.mxu0 %v5794_v44  ;;  %v6296_v61 = vsel %vm3131_vm10, %v6234_v26, %v6284_v60  ;;  %v8536_v29 = vld [vmem:[%s11450_s7 + $0x18] sm:$0xff]   ;;  %v8542_v44 = vld [vmem:[%s11450_s7 + $0xa0] sm:$0xff]  }
 0x375   : > { %6160 = vmatmul.mubr.bf16.vlgmr.msra.gmra.mrb[96].mxu0 %v5790_v3  ;;  %v8544_v3 = vld [vmem:[%s11450_s7 + $0x28] sm:$0xff]   ;;  %v7485_v60 = vld [vmem:[%s11449_s6] ss:$0 sm:$0xff] }
 0x376   : > { %7890 = vmatpush3.bf16.msra.mxu0 %v8488_v23  ;;  %7914 = vmatpush3.bf16.msra.mxu1 %v8502_v10  ;;  %v8541_v23 = vld [vmem:[%s11450_s7 + $0xe0] sm:$0xff]  }
 0x377   : > { %7891 = vmatprep.subr.bf16.mxu0 %v8489_v11  ;;  %7915 = vmatprep.subr.bf16.mxu1 %v8505_v27  ;;  %v8540_v10 = vld [vmem:[%s11450_s7 + $0x20] sm:$0xff]   ;;  %v8543_v11 = vld [vmem:[%s11450_s7 + $0x68] sm:$0xff]  }
 0x378   : > { %v8545_v27 = vld [vmem:[%s11450_s7 + $0xe8] sm:$0xff]  }
 0x37a   : > { %7892 = vmatpush3.bf16.msra.mxu0 %v8490_v41  ;;  %7916 = vmatpush3.bf16.msra.mxu1 %v8506_v30  ;;  %v8546_v41 = vld [vmem:[%s11450_s7 + $0xa8] sm:$0xff]   ;;  %v8547_v30 = vld [vmem:[%s11450_s7 + $0x70] sm:$0xff]  }
 0x37b   : > { %7893 = vmatprep.subr.bf16.mxu0 %v8491_v4  ;;  %7917 = vmatprep.subr.bf16.mxu1 %v8509_v45  ;;  %v8549_v4 = vld [vmem:[%s11450_s7 + $0xf0] sm:$0xff]  }
 0x37c   : > { %v8548_v45 = vld [vmem:[%s11450_s7 + $0x30] sm:$0xff]  }
 0x37e   : > { %7894 = vmatpush3.bf16.msra.mxu0 %v8492_v36  ;;  %7918 = vmatpush3.bf16.msra.mxu1 %v8510_v51  ;;  %v8550_v36 = vld [vmem:[%s11450_s7 + $0xb0] sm:$0xff]   ;;  %v8551_v51 = vld [vmem:[%s11450_s7 + $0x78] sm:$0xff]  }
 0x37f   : > { %7895 = vmatprep.subr.bf16.mxu0 %v8493_v15  ;;  %7919 = vmatprep.subr.bf16.mxu1 %v8511_v62  ;;  %v8553_v15 = vld [vmem:[%s11450_s7 + $0xf8] sm:$0xff]  }
 0x380   : > { %v8552_v62 = vld [vmem:[%s11450_s7 + $0x38] sm:$0xff]  }
 0x382   : > { %7896 = vmatpush3.bf16.msra.mxu0 %v8494_v47  ;;  %7920 = vmatpush3.bf16.msra.mxu1 %v8513_v9  ;;  %v8554_v47 = vld [vmem:[%s11450_s7 + $0xb8] sm:$0xff]  }
 0x383   : > { %7897 = vmatprep.subr.bf16.mxu0 %v8495_v6  ;;  %7921 = vmatprep.subr.bf16.mxu1 %v8514_v33 }
 0x386   : > { %7898 = vmatpush3.bf16.msra.mxu0 %v8496_v56  ;;  %7922 = vmatpush3.bf16.msra.mxu1 %v8516_v25 }
 0x387   : > { %7899 = vmatprep.subr.bf16.mxu0 %v8499_v2  ;;  %7923 = vmatprep.subr.bf16.mxu1 %v8517_v38 }
 0x38a   : > { %7900 = vmatpush3.bf16.msra.mxu0 %v8500_v63  ;;  %7924 = vmatpush3.bf16.msra.mxu1 %v8519_v53 }
 0x38b   : > { %7901 = vmatprep.subr.bf16.mxu0 %v8503_v57  ;;  %7925 = vmatprep.subr.bf16.mxu1 %v8520_v0 }
 0x38e   : > { %7902 = vmatpush3.bf16.msra.mxu0 %v8504_v20  ;;  %v6287_v31 = vpop.permute.xlu0 %6286  ;;  %7926 = vmatpush3.bf16.msra.mxu1 %v8522_v22  ;;  %v6290_v24 = vpop.permute.xlu1 %6289 }
 0x38f   : > { %7903 = vmatprep.subr.bf16.mxu0 %v8507_v46  ;;  %v6300_v54 = vsel %vm3131_vm10, %v6247_v55, %v6287_v31  ;;  %v6304_v37 = vsel %vm3131_vm10, %v6258_v18, %v6290_v24 }
 0x390   : > { %6633 = vmatprep.mubr.bf16.mxu0 %v6300_v54 }
 0x392   : > { %7904 = vmatpush3.bf16.msra.mxu0 %v8508_v12 }
 0x393   : > { %8222 = vmatprep.subr.bf16.mxu0 %v8593_v58 }
 0x395   : > { %6634 = vmatmul.mubr.bf16.vlgmr.msra.gmra.mrb[100].mxu0 %v6296_v61 }
 0x396   : > { %8223 = vmatpush3.bf16.msra.mxu0 %v8512_v28  ;;  %8230 = vmatprep.mubr.msk.bf16.mxu0 %vm8594_vm14, %v8593_v58 }
 0x397   : > { %8224 = vmatprep.subr.bf16.mxu0 %v8593_v58 }
 0x39a   : > { %8225 = vmatpush3.bf16.msra.mxu0 %v8515_v34 }
 0x39b   : > { %8226 = vmatprep.subr.bf16.mxu0 %v8593_v58 }
 0x39e   : > { %8227 = vmatpush3.bf16.msra.mxu0 %v8518_v39 }
 0x39f   : > { %8228 = vmatprep.subr.bf16.mxu0 %v8593_v58  ;;  %v8523_v58 = vld [vmem:[%s11450_s7 + $0x40] sm:$0xff]  }
 0x3a0   : > { %7938 = vmatprep.subr.bf16.mxu1 %v8523_v58 }
 0x3a2   : > { %8229 = vmatpush3.bf16.msra.mxu0 %v8521_v48  ;;  %v6293_v19 = vpop.permute.xlu0 %6292 }
 0x3a3   : > { %v6308_v16 = vsel %vm3131_vm10, %v6269_v17, %v6293_v19  ;;  %7960 = vmatprep.subr.bf16.mxu0 %v8525_v14 }
 0x3a4   : > { %6673 = vmatprep.mubr.bf16.mxu1 %v6308_v16 }
 0x3a5   : > { %8231 = vmatmul.mubr.msk.bf16.vlgmr.msra.gmra.mrb[104].mxu0 %vm3131_vm10, %v6281_v40  ;;  %6674 = vmatmul.mubr.bf16.vlgmr.msra.gmra.mrb[104].mxu1 %v6304_v37 }
 0x3a6   : > { %7939 = vmatpush3.bf16.msra.mxu1 %v8524_v5  ;;  %7961 = vmatpush3.bf16.msra.mxu0 %v8526_v7 }
 0x3a7   : > { %7940 = vmatprep.subr.bf16.mxu1 %v8527_v42  ;;  %7962 = vmatprep.subr.bf16.mxu0 %v8529_v13 }
 0x3aa   : > { %7941 = vmatpush3.bf16.msra.mxu1 %v8528_v49  ;;  %7963 = vmatpush3.bf16.msra.mxu0 %v8530_v59 }
 0x3ab   : > { %7942 = vmatprep.subr.bf16.mxu1 %v8531_v35  ;;  %7964 = vmatprep.subr.bf16.mxu0 %v8533_v32 }
 0x3ae   : > { %7943 = vmatpush3.bf16.msra.mxu1 %v8532_v50  ;;  %7965 = vmatpush3.bf16.msra.mxu0 %v8534_v21 }
 0x3af   : > { %7944 = vmatprep.subr.bf16.mxu1 %v8535_v8  ;;  %7966 = vmatprep.subr.bf16.mxu0 %v8537_v52 }
 0x3b2   : > { %7945 = vmatpush3.bf16.msra.mxu1 %v8536_v29  ;;  %7967 = vmatpush3.bf16.msra.mxu0 %v8538_v1 }
 0x3b3   : > { %7946 = vmatprep.subr.bf16.mxu1 %v8539_v43  ;;  %7968 = vmatprep.subr.bf16.mxu0 %v8541_v23 }
 0x3b6   : > { %7947 = vmatpush3.bf16.msra.mxu1 %v8540_v10  ;;  %7969 = vmatpush3.bf16.msra.mxu0 %v8542_v44 }
 0x3b7   : > { %7948 = vmatprep.subr.bf16.mxu1 %v8543_v11  ;;  %7970 = vmatprep.subr.bf16.mxu0 %v8545_v27  ;;  %v6814_v27 = vld [vmem:[%s11451_s8] sm:$0x1] }
 0x3ba   : > { %7949 = vmatpush3.bf16.msra.mxu1 %v8544_v3  ;;  %7971 = vmatpush3.bf16.msra.mxu0 %v8546_v41 }
 0x3bb   : > { %7950 = vmatprep.subr.bf16.mxu1 %v8547_v30  ;;  %7972 = vmatprep.subr.bf16.mxu0 %v8549_v4 }
 0x3be   : > { %7951 = vmatpush3.bf16.msra.mxu1 %v8548_v45  ;;  %7973 = vmatpush3.bf16.msra.mxu0 %v8550_v36 }
 0x3bf   : > { %7952 = vmatprep.subr.bf16.mxu1 %v8551_v51  ;;  %7974 = vmatprep.subr.bf16.mxu0 %v8553_v15 }
 0x3c2   : > { %7953 = vmatpush3.bf16.msra.mxu1 %v8552_v62  ;;  %7975 = vmatpush3.bf16.msra.mxu0 %v8554_v47 }
 0x434   : > { %v7856_v9 = vpop.f32.mrb[96].mxu1 }
 0x435   : > { %v7857_v6 = vpop.f32.mrb[97].mxu1 }
 0x436   : > { %v7858_v33 = vadd.f32 %v7857_v6, %v7856_v9  ;;  %v7859_v56 = vpop.f32.mrb[98].mxu1  ;;  %v7088_v6 = vld [vmem:[%s11452_s9] sm:$0x1] }
 0x437   : > { %v7860_v25 = vpop.f32.mrb[99].mxu1 }
 0x444   : > { %v6201_v2 = vpop.f32.mrb[100].mxu1 }
 0x445   : > { %v8220_v38 = vpop.f32.mrb[101].mxu1 }
 0x446   : > { %v6204_v63 = vpop.f32.mrb[102].mxu1 }
 0x447   : > { %v8221_v53 = vpop.f32.mrb[103].mxu1 }
 0x448   : > { %v7878_v57 = vpop.f32.mrb[96].mxu0 }
 0x449   : > { %v7879_v0 = vpop.f32.mrb[97].mxu0 }
 0x44a   : > { %v7880_v20 = vadd.f32 %v7879_v0, %v7878_v57  ;;  %v7881_v22 = vpop.f32.mrb[98].mxu0 }
 0x44b   : > { %v7882_v46 = vpop.f32.mrb[99].mxu0 }
 0x44c   : > { %v6162_v55 = vadd.f32 %v7880_v20, %v7858_v33 }
 0x44e   : > { %v6202_v31 = vadd.f32 %v6201_v2, %v6162_v55  ;;  %v7094_v2 = vld [vmem:[#allocation8] sm:$0x1] }
 0x450   : > { %v6209_v12 = vrot.slane %v6202_v31, 4 }
 0x452   : > { %v6211_v54 = vmax.f32 %v6202_v31, %v6209_v12 }
 0x454   : > { %6212 = vst [vmem:[#allocation7] sm:$0xf] %v6211_v54 }
 0x45b   : > { %v6213_v26 = vld [vmem:[#allocation7] ss:$2 sm:$0x3]  ;;  %v6215_v28 = vld [vmem:[#allocation7 + $0x1] ss:$2 sm:$0x3] }
 0x45c   : > { %v6216_v61 = vmax.f32 %v6213_v26, %v6215_v28 }
 0x45e   : > { %v6223_v34 = vadd.f32 %v7485_v60, %v6216_v61 }
 0x460   : > { %v6224_v39 = vmax.f32 %v6223_v34, 0.0 }
 0x462   : > { %6225 = vst [vmem:[#allocation4] sm:$0x3] %v6224_v39 }
 0x468   : > { %v7905_v48 = vpop.f32.mrb[100].mxu0 }
 0x469   : > { %v7906_v24 = vpop.f32.mrb[101].mxu0 }
 0x46a   : > { %v7907_v17 = vadd.f32 %v7906_v24, %v7905_v48  ;;  %v7908_v18 = vpop.f32.mrb[102].mxu0 }
 0x46b   : > { %v7909_v19 = vpop.f32.mrb[103].mxu0 }
 0x478   : > { %v6715_v16 = vpop.f32.mrb[104].mxu0  ;;  %v7927_v40 = vpop.f32.mrb[104].mxu1 }
 0x479   : > { %v8232_v37 = vpop.f32.mrb[105].mxu0  ;;  %v7928_v58 = vpop.f32.mrb[105].mxu1 }
 0x47a   : > { %v7929_v5 = vadd.f32 %v7928_v58, %v7927_v40  ;;  %v6718_v14 = vpop.f32.mrb[106].mxu0  ;;  %v7930_v7 = vpop.f32.mrb[106].mxu1 }
 0x47b   : > { %v8233_v42 = vpop.f32.mrb[107].mxu0  ;;  %v7931_v13 = vpop.f32.mrb[107].mxu1 }
 0x47c   : > { %v6676_v49 = vadd.f32 %v7929_v5, %v7907_v17 }
 0x47e   : > { %v6716_v59 = vadd.f32 %v6715_v16, %v6676_v49 }
 0x480   : > { %v6723_v35 = vrot.slane %v6716_v59, 4 }
 0x482   : > { %v6725_v32 = vmax.f32 %v6716_v59, %v6723_v35 }
 0x484   : > { %6726 = vst [vmem:[#allocation7] sm:$0xf] %v6725_v32 }
 0x48b   : > { %v6727_v50 = vld [vmem:[#allocation7] ss:$2 sm:$0x3]  ;;  %v6728_v21 = vld [vmem:[#allocation7 + $0x1] ss:$2 sm:$0x3] }
 0x48c   : > { %v6729_v8 = vmax.f32 %v6727_v50, %v6728_v21 }
 0x48e   : > { %v6736_v52 = vadd.f32 %v7485_v60, %v6729_v8 }
 0x490   : > { %v6737_v29 = vmax.f32 %v6736_v52, 0.0 }
 0x492   : > { %6738 = vst [vmem:[#allocation4 + $0x2] sm:$0x3] %v6737_v29 }
 0x499   : > { %v6739_v1 = vld [vmem:[#allocation4] sm:$0xf] }
 0x49a   : > { %v6740_v43 = vpack.c.bf16 %v6739_v1, %v6739_v1 }
 0x49c   : > { %v6742_v23 = vshrl.u32 %v6740_v43, 16  ;;  %v6746_v44 = vrot.slane %v6740_v43, 1 }
 0x49e   : > { %7039 = vmatprep.mubr.bf16.mxu1 %v6742_v23  ;;  %v6748_v10 = vrot.slane %v6742_v23, 1 }
 0x49f   : > { %7040 = vmatmul.mubr.bf16.vlgmr.msra.gmra.mrb[108].mxu1 %v6740_v43 }
 0x4a0   : > { %7079 = vmatprep.mubr.bf16.mxu0 %v6748_v10 }
 0x4a1   : > { %7080 = vmatmul.mubr.bf16.vlgmr.msra.gmra.mrb[108].mxu0 %v6746_v44 }
 0x572   : > { %v7954_v11 = vpop.f32.mrb[108].mxu1 }
 0x573   : > { %v7955_v3 = vpop.f32.mrb[109].mxu1 }
 0x574   : > { %v7956_v41 = vadd.f32 %v7955_v3, %v7954_v11  ;;  %v7957_v30 = vpop.f32.mrb[110].mxu1  ;;  %v7976_v4 = vpop.f32.mrb[108].mxu0 }
 0x575   : > { %v7958_v45 = vpop.f32.mrb[111].mxu1  ;;  %v7977_v36 = vpop.f32.mrb[109].mxu0 }
 0x576   : > { %v7042_v51 = vadd.f32 %v7956_v41, %v6814_v27  ;;  %v7978_v15 = vadd.f32 %v7977_v36, %v7976_v4  ;;  %v7979_v62 = vpop.f32.mrb[110].mxu0 }
 0x577   : > { %v7980_v47 = vpop.f32.mrb[111].mxu0 }
 0x578   : > { %v7082_v9 = vadd.f32 %v7978_v15, %v7042_v51 }
 0x57a   : > { %v7087_v33 = vmax.f32 %v7082_v9, 0.0 }
 0x57c   : > { %v7089_v56 = vmul.f32 %v7088_v6, %v7087_v33 }
 0x57e   : > { %v7091_v25 = vsel %vm7090_vm15, %v7089_v56, 0.0 }
 0x57f   : > { %7092 = vadd.xlane.f32.xlu0 %v7091_v25 }
 0x60c   : > { %v7093_v38 = vpop.xlane.xlu0 %7092 }
 0x60d   : > { %v7095_v63 = vadd.f32 %v7094_v2, %v7093_v38 }
 0x60f   : > { %v7096_v53 = vsub.f32 0.0, %v7095_v63 }
 0x611   : > { %v7097_v57 = vmul.f32 1.442695, %v7096_v53 }
 0x613   : > { %8555 = vpow2.f32 %v7097_v57 }
 0x61d   : > { %v8556_v0 = vpop.eup %8555 }
 0x61e   : > { %v7099_v20 = vadd.f32 1.0, %v8556_v0 }
 0x620   : > { %8557 = vrcp.f32 %v7099_v20 }
 0x62a   : > { %v8558_v22 = vpop.eup %8557 }
 0x62b   : > { %7103 = vst.msk [vmem:[%s384_s12] sm:$0x1] %vm7102_vm0, %v8558_v22 }
 0x62c PF: > { %s23_s19 = sadd.s32 1, %s8587_s19  }
 0x62d   : > { %p20_p4 = scmp.ge.s32.totalorder %s23_s19, 4  }
 0x62f   :  { %22 = sbr.rel (!%p20_p4) target bundleno = 3 (0x3), region = 99 }

</bundles_post_ra>
